<compile_context>
chip_gen: v7x
topology: tpu7x:2x2x1
jax: 0.10.0
libtpu: 0.0.40
codegen_flags: <defaults>
</compile_context>

<pallas_src>
import jax
import jax.numpy as jnp
from jax.experimental import pallas as pl
from jax.experimental.pallas import tpu as pltpu

# ----------------------------- dimensions / hyperparams -----------------------------
OBS_DIM = 16
ACT_DIM = 4
T = 8                  # length of masks; sequences are T+1 long
B = 2
T1 = T + 1
N_ROWS = T1 * B        # 18
NB_ROWS = T * B        # 16
EMB_A = 8              # action embedding
EMB_R = 8              # reward embedding
EMB_O = 16             # observation embedding
RNN_IN = EMB_A + EMB_R + EMB_O     # 32 (per-encoder GRU input)
HID = 32               # GRU hidden size (per encoder)
GATE = 3 * HID         # per-encoder fused [r | z | n] gate width (96)
GATE_PAD = 128         # per-gate lane block in the fused layout (tile aligned)
H3 = 3 * HID           # 96: fused hidden width [actor | critic | critic_target]
IN_DIM = OBS_DIM + ACT_DIM + 1     # 21: packed input x = [obs | act | rew]
EMB_CUR = 16           # shortcut embedding for current obs/action
MLP_H = 32             # hidden width of Q / policy MLP heads
GAMMA = 0.99
ALPHA = 0.1            # fixed SAC entropy coefficient (TODO(synk): no automatic alpha tuning)
LOG_STD_MIN, LOG_STD_MAX = -20.0, 2.0
OUT_LANES = 128        # lane-dense loss output

_VMEM = pl.BlockSpec(memory_space=pltpu.MemorySpace.VMEM)

# ---- encoder slab layout (lane width 3*GATE_PAD = 384) ----
R_WEMB = 0             # (IN_DIM, 3*RNN_IN): lane-stacked embedders of all 3 encoders
R_BEMB = 24            # (1, 3*RNN_IN)
R_WIH = 32             # (3*RNN_IN, 384): input->gate, block-diag per encoder, 128-lane gate blocks
R_BIH = 128            # (1, 384)
R_WHH = 136            # (3*HID, 384): hidden->gate, block-diag per encoder
R_BHH = 232            # (1, 384)
ENC_ROWS = 240

# ---- actor head slab layout (lane width MLP_H = 32) ----
AR_WPE = 0             # (OBS_DIM, EMB_CUR)
AR_BPE = 16
AR_W1 = 24             # (HID+EMB_CUR, MLP_H)  : [h | pe] -> hidden  (w1h/w1e row-fused)
AR_B1 = 72
AR_W2 = 80             # (MLP_H, MLP_H)
AR_B2 = 112
AR_WMS = 120           # (MLP_H, 2*ACT_DIM)    : fused [mean | log_std]
AR_BMS = 152
ACTOR_ROWS = 160

# ---- twin-Q head slab layout (lane width 2*MLP_H = 64) ----
QR_WSC = 0             # (OBS_DIM+ACT_DIM, EMB_CUR): [obs | act] -> shortcut embedding (row-fused)
QR_BSC = 24
QR_W1 = 32             # (HID+EMB_CUR, 2*MLP_H): [h | ce] -> hidden (twin heads lane-fused)
QR_B1 = 80
QR_W2 = 88             # (2*MLP_H, 2*MLP_H): block-diag twin
QR_B2 = 152
QR_W3 = 160            # (2*MLP_H, 2): block-structured -> [q1 | q2]
QR_B3 = 224
Q_ROWS = 232


# =============================== the fused Pallas kernel =============================
def fused_forward_kernel(x_ref, nxt_ref, enc_ref, actor_ref, critic_ref, target_ref, out_ref):
    """3 block-diag fused GRU encoders + policy head + twin-Q heads + masked SAC losses."""
    x = x_ref[...]                                   # (N_ROWS, IN_DIM) = [obs | act | rew]
    obs = x[:, 0:OBS_DIM]                            # (N, 16), lane-aligned slice

    # ---------------- three GRU encoders in one fused recurrence ----------------
    w_emb = enc_ref[R_WEMB:R_WEMB + IN_DIM, 0:3 * RNN_IN]
    b_emb = enc_ref[R_BEMB:R_BEMB + 1, 0:3 * RNN_IN]
    # one embed matmul for all 3 encoders: e_all = [e_actor | e_critic | e_target], e_k = [ea|er|eo]
    e_all = jax.nn.relu(jnp.dot(x, w_emb, preferred_element_type=jnp.float32) + b_emb)   # (N, 96)

    wih = enc_ref[R_WIH:R_WIH + 3 * RNN_IN, :]       # (96, 384)
    bih = enc_ref[R_BIH:R_BIH + 1, :]
    gi = jnp.dot(e_all, wih, preferred_element_type=jnp.float32) + bih                   # (N, 384)

    whh = enc_ref[R_WHH:R_WHH + H3, :]               # (96, 384), block-diag per encoder
    bhh = enc_ref[R_BHH:R_BHH + 1, :]

    h = jnp.zeros((B, H3), jnp.float32)              # [h_actor | h_critic | h_target], h0 = 0
    hs = []
    for t in range(T1):                              # static unroll: T1 = 9
        gh = jnp.dot(h, whh, preferred_element_type=jnp.float32) + bhh                   # (B, 384)
        g_t = gi[t * B:(t + 1) * B, :]
        r_g = jax.nn.sigmoid(g_t[:, 0:H3] + gh[:, 0:H3])
        z_g = jax.nn.sigmoid(g_t[:, GATE_PAD:GATE_PAD + H3] + gh[:, GATE_PAD:GATE_PAD + H3])
        n_g = jnp.tanh(g_t[:, 2 * GATE_PAD:2 * GATE_PAD + H3]
                       + r_g * gh[:, 2 * GATE_PAD:2 * GATE_PAD + H3])
        h = (1.0 - z_g) * n_g + z_g * h
        hs.append(h)
    # keep everything in vregs; one concatenation instead of 9 masked partial stores
    h_seq = jnp.concatenate(hs, axis=0)              # (N, 96)

    h_actor = h_seq[:, 0:HID]
    h_critic = h_seq[:, HID:2 * HID]
    h_target = h_seq[:, 2 * HID:3 * HID]

    # ---------------- tanh-Gaussian policy head (all T+1 steps) ----------------
    wpe = actor_ref[AR_WPE:AR_WPE + OBS_DIM, 0:EMB_CUR]
    bpe = actor_ref[AR_BPE:AR_BPE + 1, 0:EMB_CUR]
    pe = jax.nn.relu(jnp.dot(obs, wpe, preferred_element_type=jnp.float32) + bpe)        # (N, 16)
    w1 = actor_ref[AR_W1:AR_W1 + HID + EMB_CUR, :]
    b1 = actor_ref[AR_B1:AR_B1 + 1, :]
    z1 = jax.nn.relu(jnp.dot(jnp.concatenate([h_actor, pe], axis=1), w1,
                             preferred_element_type=jnp.float32) + b1)
    w2 = actor_ref[AR_W2:AR_W2 + MLP_H, :]
    b2 = actor_ref[AR_B2:AR_B2 + 1, :]
    z2 = jax.nn.relu(jnp.dot(z1, w2, preferred_element_type=jnp.float32) + b2)
    wms = actor_ref[AR_WMS:AR_WMS + MLP_H, 0:2 * ACT_DIM]
    bms = actor_ref[AR_BMS:AR_BMS + 1, 0:2 * ACT_DIM]
    ms = jnp.dot(z2, wms, preferred_element_type=jnp.float32) + bms                      # (N, 8)

    mean = ms[:, 0:ACT_DIM]
    log_std = jnp.clip(ms[:, ACT_DIM:2 * ACT_DIM], LOG_STD_MIN, LOG_STD_MAX)
    u = mean                        # TODO(synk): deterministic (no rsample noise); logp at the mean
    new_act = jnp.tanh(u)
    logp_gauss = -0.5 * jnp.log(2.0 * jnp.pi) - log_std
    tanh_corr = 2.0 * (jnp.log(2.0) - u - jax.nn.softplus(-2.0 * u))   # log(1 - tanh(u)^2), stable
    new_logp = jnp.sum(logp_gauss - tanh_corr, axis=-1, keepdims=True)                   # (N, 1)

    # ---------------- fused twin-Q head: one matmul chain -> [q1 | q2] ----------------
    def twin_q(slab, hq, oa):
        wsc = slab[QR_WSC:QR_WSC + OBS_DIM + ACT_DIM, 0:EMB_CUR]
        bsc = slab[QR_BSC:QR_BSC + 1, 0:EMB_CUR]
        ce = jax.nn.relu(jnp.dot(oa, wsc, preferred_element_type=jnp.float32) + bsc)
        qw1 = slab[QR_W1:QR_W1 + HID + EMB_CUR, :]
        qb1 = slab[QR_B1:QR_B1 + 1, :]
        q1 = jax.nn.relu(jnp.dot(jnp.concatenate([hq, ce], axis=1), qw1,
                                 preferred_element_type=jnp.float32) + qb1)
        qw2 = slab[QR_W2:QR_W2 + 2 * MLP_H, :]
        qb2 = slab[QR_B2:QR_B2 + 1, :]
        q2 = jax.nn.relu(jnp.dot(q1, qw2, preferred_element_type=jnp.float32) + qb2)
        qw3 = slab[QR_W3:QR_W3 + 2 * MLP_H, 0:2]
        qb3 = slab[QR_B3:QR_B3 + 1, 0:2]
        return jnp.dot(q2, qw3, preferred_element_type=jnp.float32) + qb3                # (rows, 2)

    nxt = nxt_ref[...]                               # (NB, 7) = [act_next | rew_next | done_next | mask]
    act_next = nxt[:, 0:ACT_DIM]
    rew_next = nxt[:, ACT_DIM:ACT_DIM + 1]
    done_next = nxt[:, ACT_DIM + 1:ACT_DIM + 2]
    masks = nxt[:, ACT_DIM + 2:ACT_DIM + 3]

    oa_pi = jnp.concatenate([obs, new_act], axis=1)                                      # (N, 20)
    # critic_target twin-Q on the policy's actions (all T+1 steps) -> q_target
    nq = twin_q(target_ref, h_target, oa_pi)                                             # (N, 2)

    # critic twin-Q: single row-concatenated pass covering both
    #   q_pred = Q(h[t], a[t+1]) and q_pi = Q(h[t], pi(h[t])), t in [0, T)
    h_cat = jnp.concatenate([h_critic[0:NB_ROWS, :], h_critic[0:NB_ROWS, :]], axis=0)    # (32, 32)
    oa_cat = jnp.concatenate(
        [jnp.concatenate([obs[0:NB_ROWS, :], act_next], axis=1),
         oa_pi[0:NB_ROWS, :]], axis=0)                                                   # (32, 20)
    qc = twin_q(critic_ref, h_cat, oa_cat)                                               # (32, 2)
    q_pred = qc[0:NB_ROWS, :]
    q_pi = qc[NB_ROWS:2 * NB_ROWS, :]

    # ---------------- masked SAC losses ----------------
    num_valid = jnp.maximum(jnp.sum(masks, keepdims=True), 1.0)                          # (1, 1)

    nq_next = nq[B:, :]
    nlogp = new_logp[B:, :]
    min_next_q = jnp.minimum(nq_next[:, 0:1], nq_next[:, 1:2]) - ALPHA * nlogp
    q_target = rew_next + (1.0 - done_next) * GAMMA * min_next_q                         # (NB, 1)

    qtm = q_target * masks
    qf1 = jnp.sum((q_pred[:, 0:1] * masks - qtm) ** 2, keepdims=True) / num_valid
    qf2 = jnp.sum((q_pred[:, 1:2] * masks - qtm) ** 2, keepdims=True) / num_valid

    min_q_pi = jnp.minimum(q_pi[:, 0:1], q_pi[:, 1:2])
    logp_cur = new_logp[0:NB_ROWS, :]
    pol = jnp.sum((-min_q_pi + ALPHA * logp_cur) * masks, keepdims=True) / num_valid
    clp = jnp.sum(logp_cur * masks, keepdims=True) / num_valid

    # single lane-dense store: [qf1, qf2, policy_loss, current_log_probs, num_valid, 0, ...]
    out_ref[...] = jnp.concatenate(
        [qf1, qf2, pol, clp, num_valid,
         jnp.zeros((1, OUT_LANES - 5), jnp.float32)], axis=1)


# =============================== wrapper (glue) ======================================
def fused_forward(packed, actions, rewards, observations, dones, masks):
    t1, b, _ = actions.shape
    t = t1 - 1
    n = t1 * b
    # pack data into two lane-concatenated inputs (one DMA each)
    x_flat = jnp.concatenate(
        [observations.reshape(n, OBS_DIM),
         actions.reshape(n, ACT_DIM),
         rewards.reshape(n, 1)], axis=1)                               # (N, 21)
    nxt = jnp.concatenate(
        [actions[1:].reshape(t * b, ACT_DIM),
         rewards[1:].reshape(t * b, 1),
         dones[1:].reshape(t * b, 1),
         masks.reshape(t * b, 1)], axis=1)                             # (NB, 7)
    out = pl.pallas_call(
        fused_forward_kernel,
        out_shape=jax.ShapeDtypeStruct((1, OUT_LANES), jnp.float32),
        in_specs=[_VMEM] * 6,
        out_specs=_VMEM,
    )(x_flat, nxt, packed['enc'], packed['actor'], packed['critic'], packed['critic_target'])
    return out[0, 0:5]                        # [qf1, qf2, policy_loss, current_log_probs, num_valid]


model_forward = jax.jit(fused_forward)


# =============================== parameter init ======================================
def _init(key, shape, scale=0.1):
    return scale * jax.random.normal(key, shape, dtype=jnp.float32)


def init_encoder_params(key):
    k = jax.random.split(key, 18)
    wir, wiz, win_ = _init(k[6], (RNN_IN, HID)), _init(k[7], (RNN_IN, HID)), _init(k[8], (RNN_IN, HID))
    bir, biz, bin_ = _init(k[9], (1, HID)), _init(k[10], (1, HID)), _init(k[11], (1, HID))
    whr, whz, whn = _init(k[12], (HID, HID)), _init(k[13], (HID, HID)), _init(k[14], (HID, HID))
    bhr, bhz, bhn = _init(k[15], (1, HID)), _init(k[16], (1, HID)), _init(k[17], (1, HID))
    return {
        'wa': _init(k[0], (ACT_DIM, EMB_A)), 'ba': _init(k[1], (1, EMB_A)),
        'wr': _init(k[2], (1, EMB_R)),       'br': _init(k[3], (1, EMB_R)),
        'wo': _init(k[4], (OBS_DIM, EMB_O)), 'bo': _init(k[5], (1, EMB_O)),
        # per-encoder fused gate weights: columns = [r | z | n]
        'wih': jnp.concatenate([wir, wiz, win_], axis=1),
        'bih': jnp.concatenate([bir, biz, bin_], axis=1),
        'whh': jnp.concatenate([whr, whz, whn], axis=1),
        'bhh': jnp.concatenate([bhr, bhz, bhn], axis=1),
    }


def init_critic_head_params(key):
    ks = jax.random.split(key, 17)
    wsc_o = _init(ks[0], (OBS_DIM, EMB_CUR))
    wsc_a = _init(ks[1], (ACT_DIM, EMB_CUR))
    bsc = _init(ks[2], (1, EMB_CUR))

    def q(off):
        return dict(w1h=_init(ks[off + 0], (HID, MLP_H)), w1c=_init(ks[off + 1], (EMB_CUR, MLP_H)),
                    b1=_init(ks[off + 2], (1, MLP_H)),
                    w2=_init(ks[off + 3], (MLP_H, MLP_H)), b2=_init(ks[off + 4], (1, MLP_H)),
                    w3=_init(ks[off + 5], (MLP_H, 1)), b3=_init(ks[off + 6], (1, 1)))

    q1, q2 = q(3), q(10)
    # fuse the twin heads into one <=128-lane weight set (block-diagonal where layers are private)
    w2 = jnp.zeros((2 * MLP_H, 2 * MLP_H), jnp.float32)
    w2 = w2.at[:MLP_H, :MLP_H].set(q1['w2']).at[MLP_H:, MLP_H:].set(q2['w2'])
    w3 = jnp.zeros((2 * MLP_H, 2), jnp.float32)
    w3 = w3.at[:MLP_H, 0:1].set(q1['w3']).at[MLP_H:, 1:2].set(q2['w3'])
    return {
        'wsc_o': wsc_o, 'wsc_a': wsc_a, 'bsc': bsc,
        'w1h': jnp.concatenate([q1['w1h'], q2['w1h']], axis=1),
        'w1c': jnp.concatenate([q1['w1c'], q2['w1c']], axis=1),
        'b1': jnp.concatenate([q1['b1'], q2['b1']], axis=1),
        'w2': w2, 'b2': jnp.concatenate([q1['b2'], q2['b2']], axis=1),
        'w3': w3, 'b3': jnp.concatenate([q1['b3'], q2['b3']], axis=1),
    }


def init_actor_head_params(key):
    kk = jax.random.split(key, 11)
    wmu, wls = _init(kk[7], (MLP_H, ACT_DIM)), _init(kk[9], (MLP_H, ACT_DIM))
    bmu, bls = _init(kk[8], (1, ACT_DIM)), _init(kk[10], (1, ACT_DIM))
    return {
        'wpe': _init(kk[0], (OBS_DIM, EMB_CUR)), 'bpe': _init(kk[1], (1, EMB_CUR)),
        'w1h': _init(kk[2], (HID, MLP_H)), 'w1e': _init(kk[3], (EMB_CUR, MLP_H)),
        'b1': _init(kk[4], (1, MLP_H)),
        'w2': _init(kk[5], (MLP_H, MLP_H)), 'b2': _init(kk[6], (1, MLP_H)),
        # fused [mean | log_std] output projection
        'wms': jnp.concatenate([wmu, wls], axis=1), 'bms': jnp.concatenate([bmu, bls], axis=1),
    }


# =============================== host-side slab packing ==============================
def pack_encoder_slab(encs):
    """Block-diagonally fuse the 3 GRU encoders into one (ENC_ROWS, 3*GATE_PAD) slab."""
    slab = jnp.zeros((ENC_ROWS, 3 * GATE_PAD), jnp.float32)
    for k, e in enumerate(encs):
        c0 = k * RNN_IN
        # embedders: x rows are [obs | act | rew]; per-encoder embedding lanes are [ea | er | eo]
        slab = slab.at[R_WEMB:R_WEMB + OBS_DIM,
                       c0 + EMB_A + EMB_R:c0 + RNN_IN].set(e['wo'])
        slab = slab.at[R_WEMB + OBS_DIM:R_WEMB + OBS_DIM + ACT_DIM,
                       c0:c0 + EMB_A].set(e['wa'])
        slab = slab.at[R_WEMB + OBS_DIM + ACT_DIM:R_WEMB + IN_DIM,
                       c0 + EMB_A:c0 + EMB_A + EMB_R].set(e['wr'])
        slab = slab.at[R_BEMB:R_BEMB + 1, c0:c0 + EMB_A].set(e['ba'])
        slab = slab.at[R_BEMB:R_BEMB + 1, c0 + EMB_A:c0 + EMB_A + EMB_R].set(e['br'])
        slab = slab.at[R_BEMB:R_BEMB + 1, c0 + EMB_A + EMB_R:c0 + RNN_IN].set(e['bo'])
        # gates: fused column layout [r | z | n], each gate block padded to GATE_PAD lanes; encoder k
        # occupies lanes [k*HID, (k+1)*HID) inside each gate block (matching the fused h layout)
        for g in range(3):
            gc = g * GATE_PAD + k * HID
            slab = slab.at[R_WIH + k * RNN_IN:R_WIH + (k + 1) * RNN_IN,
                           gc:gc + HID].set(e['wih'][:, g * HID:(g + 1) * HID])
            slab = slab.at[R_BIH:R_BIH + 1, gc:gc + HID].set(e['bih'][:, g * HID:(g + 1) * HID])
            slab = slab.at[R_WHH + k * HID:R_WHH + (k + 1) * HID,
                           gc:gc + HID].set(e['whh'][:, g * HID:(g + 1) * HID])
            slab = slab.at[R_BHH:R_BHH + 1, gc:gc + HID].set(e['bhh'][:, g * HID:(g + 1) * HID])
    return slab


def pack_actor_slab(p):
    slab = jnp.zeros((ACTOR_ROWS, MLP_H), jnp.float32)
    w1 = jnp.concatenate([p['w1h'], p['w1e']], axis=0)                  # input = [h | pe]
    slab = slab.at[AR_WPE:AR_WPE + OBS_DIM, 0:EMB_CUR].set(p['wpe'])
    slab = slab.at[AR_BPE:AR_BPE + 1, 0:EMB_CUR].set(p['bpe'])
    slab = slab.at[AR_W1:AR_W1 + HID + EMB_CUR, :].set(w1)
    slab = slab.at[AR_B1:AR_B1 + 1, :].set(p['b1'])
    slab = slab.at[AR_W2:AR_W2 + MLP_H, :].set(p['w2'])
    slab = slab.at[AR_B2:AR_B2 + 1, :].set(p['b2'])
    slab = slab.at[AR_WMS:AR_WMS + MLP_H, 0:2 * ACT_DIM].set(p['wms'])
    slab = slab.at[AR_BMS:AR_BMS + 1, 0:2 * ACT_DIM].set(p['bms'])
    return slab


def pack_q_slab(p):
    slab = jnp.zeros((Q_ROWS, 2 * MLP_H), jnp.float32)
    wsc = jnp.concatenate([p['wsc_o'], p['wsc_a']], axis=0)             # input = [obs | act]
    w1 = jnp.concatenate([p['w1h'], p['w1c']], axis=0)                  # input = [h | ce]
    slab = slab.at[QR_WSC:QR_WSC + OBS_DIM + ACT_DIM, 0:EMB_CUR].set(wsc)
    slab = slab.at[QR_BSC:QR_BSC + 1, 0:EMB_CUR].set(p['bsc'])
    slab = slab.at[QR_W1:QR_W1 + HID + EMB_CUR, :].set(w1)
    slab = slab.at[QR_B1:QR_B1 + 1, :].set(p['b1'])
    slab = slab.at[QR_W2:QR_W2 + 2 * MLP_H, :].set(p['w2'])
    slab = slab.at[QR_B2:QR_B2 + 1, :].set(p['b2'])
    slab = slab.at[QR_W3:QR_W3 + 2 * MLP_H, 0:2].set(p['w3'])
    slab = slab.at[QR_B3:QR_B3 + 1, 0:2].set(p['b3'])
    return slab


def init_model_params(key):
    k_c, k_a = jax.random.split(key)
    k_c_rnn, k_c_head = jax.random.split(k_c)
    k_a_rnn, k_a_head = jax.random.split(k_a)
    actor_rnn = init_encoder_params(k_a_rnn)
    critic_rnn = init_encoder_params(k_c_rnn)
    critic_head = init_critic_head_params(k_c_head)
    actor_head = init_actor_head_params(k_a_head)
    # deepcopy in the PyTorch module -> targets start identical to the online nets
    ct_rnn, ct_head = critic_rnn, critic_head
    # TODO(synk): actor_target exists in the PyTorch module but SAC does not use it in forward().
    return {
        'enc': pack_encoder_slab([actor_rnn, critic_rnn, ct_rnn]),      # order = [actor, critic, target]
        'actor': pack_actor_slab(actor_head),
        'critic': pack_q_slab(critic_head),
        'critic_target': pack_q_slab(ct_head),
    }


# =============================== main =================================================
if __name__ == "__main__":
    key = jax.random.PRNGKey(0)
    k_param, k_a, k_r, k_o, k_d, k_m = jax.random.split(key, 6)

    params = init_model_params(k_param)

    # a[0] = r[0] = d[0] = 0 as in the PyTorch module's update()
    actions = jax.random.normal(k_a, (T + 1, B, ACT_DIM), jnp.float32).at[0].set(0.0)
    rewards = jax.random.normal(k_r, (T + 1, B, 1), jnp.float32).at[0].set(0.0)
    observations = jax.random.normal(k_o, (T + 1, B, OBS_DIM), jnp.float32)
    dones = jax.random.bernoulli(k_d, 0.1, (T + 1, B, 1)).astype(jnp.float32).at[0].set(0.0)
    masks = jax.random.bernoulli(k_m, 0.9, (T, B, 1)).astype(jnp.float32)

    assert actions.ndim == rewards.ndim == dones.ndim == observations.ndim == masks.ndim == 3
    assert actions.shape[0] == rewards.shape[0] == dones.shape[0] == observations.shape[0] == masks.shape[0] + 1

    losses = jax.block_until_ready(
        model_forward(params, actions, rewards, observations, dones, masks))

    outputs = {
        'qf1_loss': float(losses[0]),
        'qf2_loss': float(losses[1]),
        'policy_loss': float(losses[2]),
        'current_log_probs': float(losses[3]),
        'num_valid': float(losses[4]),
    }
    _ = outputs  # loss dict analogous to the PyTorch forward() return value
    print("KERNEL_OK")
</pallas_src>

<mosaic_0001>
module attributes {stable_mosaic.version = 11 : i64} {
  func.func @fused_forward_kernel(%arg0: memref<18x21xf32, #tpu.memory_space<vmem>>, %arg1: memref<16x7xf32, #tpu.memory_space<vmem>>, %arg2: memref<240x384xf32, #tpu.memory_space<vmem>>, %arg3: memref<160x32xf32, #tpu.memory_space<vmem>>, %arg4: memref<232x64xf32, #tpu.memory_space<vmem>>, %arg5: memref<232x64xf32, #tpu.memory_space<vmem>>, %arg6: memref<1x128xf32, #tpu.memory_space<vmem>>) attributes {dimension_semantics = [], scalar_prefetch = 0 : i64, scratch_operands = 0 : i64, tpu.core_type = #tpu.core_type<tc>} {
    %c0 = arith.constant 0 : index
    %c0_0 = arith.constant 0 : index
    %0 = vector.load %arg0[%c0, %c0_0] : memref<18x21xf32, #tpu.memory_space<vmem>>, vector<18x21xf32>
    %1 = vector.extract_strided_slice %0 {offsets = [0, 0], sizes = [18, 16], strides = [1, 1]} : vector<18x21xf32> to vector<18x16xf32>
    %c0_1 = arith.constant 0 : index
    %c0_2 = arith.constant 0 : index
    %2 = vector.load %arg2[%c0_1, %c0_2] : memref<240x384xf32, #tpu.memory_space<vmem>>, vector<21x96xf32>
    %c24 = arith.constant 24 : index
    %c0_3 = arith.constant 0 : index
    %3 = vector.load %arg2[%c24, %c0_3] : memref<240x384xf32, #tpu.memory_space<vmem>>, vector<1x96xf32>
    %cst = arith.constant dense<0.000000e+00> : vector<18x96xf32>
    %4 = tpu.matmul %0, %2, %cst {dimension_numbers = #tpu.dot_dimension_numbers<[1], [0], [0], [1], [0, 0, 1, 1], [], []>} : vector<18x21xf32>, vector<21x96xf32>, vector<18x96xf32> -> vector<18x96xf32>
    %5 = vector.broadcast %3 : vector<1x96xf32> to vector<18x96xf32>
    %6 = arith.addf %4, %5 : vector<18x96xf32>
    %cst_4 = arith.constant 0.000000e+00 : f32
    %7 = vector.broadcast %cst_4 : f32 to vector<18x96xf32>
    %8 = arith.maximumf %6, %7 : vector<18x96xf32>
    %c32 = arith.constant 32 : index
    %c0_5 = arith.constant 0 : index
    %9 = vector.load %arg2[%c32, %c0_5] : memref<240x384xf32, #tpu.memory_space<vmem>>, vector<96x384xf32>
    %c128 = arith.constant 128 : index
    %c0_6 = arith.constant 0 : index
    %10 = vector.load %arg2[%c128, %c0_6] : memref<240x384xf32, #tpu.memory_space<vmem>>, vector<1x384xf32>
    %cst_7 = arith.constant dense<0.000000e+00> : vector<18x384xf32>
    %11 = tpu.matmul %8, %9, %cst_7 {dimension_numbers = #tpu.dot_dimension_numbers<[1], [0], [0], [1], [0, 0, 1, 1], [], []>} : vector<18x96xf32>, vector<96x384xf32>, vector<18x384xf32> -> vector<18x384xf32>
    %12 = vector.broadcast %10 : vector<1x384xf32> to vector<18x384xf32>
    %13 = arith.addf %11, %12 : vector<18x384xf32>
    %c136 = arith.constant 136 : index
    %c0_8 = arith.constant 0 : index
    %14 = vector.load %arg2[%c136, %c0_8] : memref<240x384xf32, #tpu.memory_space<vmem>>, vector<96x384xf32>
    %c232 = arith.constant 232 : index
    %c0_9 = arith.constant 0 : index
    %15 = vector.load %arg2[%c232, %c0_9] : memref<240x384xf32, #tpu.memory_space<vmem>>, vector<1x384xf32>
    %cst_10 = arith.constant 0.000000e+00 : f32
    %16 = vector.broadcast %cst_10 : f32 to vector<2x96xf32>
    %cst_11 = arith.constant dense<0.000000e+00> : vector<2x384xf32>
    %17 = tpu.matmul %16, %14, %cst_11 {dimension_numbers = #tpu.dot_dimension_numbers<[1], [0], [0], [1], [0, 0, 1, 1], [], []>} : vector<2x96xf32>, vector<96x384xf32>, vector<2x384xf32> -> vector<2x384xf32>
    %18 = vector.broadcast %15 : vector<1x384xf32> to vector<2x384xf32>
    %19 = arith.addf %17, %18 : vector<2x384xf32>
    %20 = vector.extract_strided_slice %13 {offsets = [0, 0], sizes = [2, 384], strides = [1, 1]} : vector<18x384xf32> to vector<2x384xf32>
    %21 = vector.extract_strided_slice %20 {offsets = [0, 0], sizes = [2, 96], strides = [1, 1]} : vector<2x384xf32> to vector<2x96xf32>
    %22 = vector.extract_strided_slice %19 {offsets = [0, 0], sizes = [2, 96], strides = [1, 1]} : vector<2x384xf32> to vector<2x96xf32>
    %23 = arith.addf %21, %22 : vector<2x96xf32>
    %24 = arith.negf %23 : vector<2x96xf32>
    %25 = math.exp %24 : vector<2x96xf32>
    %cst_12 = arith.constant 1.000000e+00 : f32
    %26 = vector.broadcast %cst_12 : f32 to vector<2x96xf32>
    %27 = arith.addf %26, %25 : vector<2x96xf32>
    %28 = arith.divf %26, %27 : vector<2x96xf32>
    %29 = vector.extract_strided_slice %20 {offsets = [0, 128], sizes = [2, 96], strides = [1, 1]} : vector<2x384xf32> to vector<2x96xf32>
    %30 = vector.extract_strided_slice %19 {offsets = [0, 128], sizes = [2, 96], strides = [1, 1]} : vector<2x384xf32> to vector<2x96xf32>
    %31 = arith.addf %29, %30 : vector<2x96xf32>
    %32 = arith.negf %31 : vector<2x96xf32>
    %33 = math.exp %32 : vector<2x96xf32>
    %cst_13 = arith.constant 1.000000e+00 : f32
    %34 = vector.broadcast %cst_13 : f32 to vector<2x96xf32>
    %35 = arith.addf %34, %33 : vector<2x96xf32>
    %36 = arith.divf %34, %35 : vector<2x96xf32>
    %37 = vector.extract_strided_slice %20 {offsets = [0, 256], sizes = [2, 96], strides = [1, 1]} : vector<2x384xf32> to vector<2x96xf32>
    %38 = vector.extract_strided_slice %19 {offsets = [0, 256], sizes = [2, 96], strides = [1, 1]} : vector<2x384xf32> to vector<2x96xf32>
    %39 = arith.mulf %28, %38 : vector<2x96xf32>
    %40 = arith.addf %37, %39 : vector<2x96xf32>
    %41 = math.tanh %40 : vector<2x96xf32>
    %cst_14 = arith.constant 1.000000e+00 : f32
    %42 = vector.broadcast %cst_14 : f32 to vector<2x96xf32>
    %43 = arith.subf %42, %36 : vector<2x96xf32>
    %44 = arith.mulf %43, %41 : vector<2x96xf32>
    %45 = arith.mulf %36, %16 : vector<2x96xf32>
    %46 = arith.addf %44, %45 : vector<2x96xf32>
    %cst_15 = arith.constant dense<0.000000e+00> : vector<2x384xf32>
    %47 = tpu.matmul %46, %14, %cst_15 {dimension_numbers = #tpu.dot_dimension_numbers<[1], [0], [0], [1], [0, 0, 1, 1], [], []>} : vector<2x96xf32>, vector<96x384xf32>, vector<2x384xf32> -> vector<2x384xf32>
    %48 = vector.broadcast %15 : vector<1x384xf32> to vector<2x384xf32>
    %49 = arith.addf %47, %48 : vector<2x384xf32>
    %50 = vector.extract_strided_slice %13 {offsets = [2, 0], sizes = [2, 384], strides = [1, 1]} : vector<18x384xf32> to vector<2x384xf32>
    %51 = vector.extract_strided_slice %50 {offsets = [0, 0], sizes = [2, 96], strides = [1, 1]} : vector<2x384xf32> to vector<2x96xf32>
    %52 = vector.extract_strided_slice %49 {offsets = [0, 0], sizes = [2, 96], strides = [1, 1]} : vector<2x384xf32> to vector<2x96xf32>
    %53 = arith.addf %51, %52 : vector<2x96xf32>
    %54 = arith.negf %53 : vector<2x96xf32>
    %55 = math.exp %54 : vector<2x96xf32>
    %cst_16 = arith.constant 1.000000e+00 : f32
    %56 = vector.broadcast %cst_16 : f32 to vector<2x96xf32>
    %57 = arith.addf %56, %55 : vector<2x96xf32>
    %58 = arith.divf %56, %57 : vector<2x96xf32>
    %59 = vector.extract_strided_slice %50 {offsets = [0, 128], sizes = [2, 96], strides = [1, 1]} : vector<2x384xf32> to vector<2x96xf32>
    %60 = vector.extract_strided_slice %49 {offsets = [0, 128], sizes = [2, 96], strides = [1, 1]} : vector<2x384xf32> to vector<2x96xf32>
    %61 = arith.addf %59, %60 : vector<2x96xf32>
    %62 = arith.negf %61 : vector<2x96xf32>
    %63 = math.exp %62 : vector<2x96xf32>
    %cst_17 = arith.constant 1.000000e+00 : f32
    %64 = vector.broadcast %cst_17 : f32 to vector<2x96xf32>
    %65 = arith.addf %64, %63 : vector<2x96xf32>
    %66 = arith.divf %64, %65 : vector<2x96xf32>
    %67 = vector.extract_strided_slice %50 {offsets = [0, 256], sizes = [2, 96], strides = [1, 1]} : vector<2x384xf32> to vector<2x96xf32>
    %68 = vector.extract_strided_slice %49 {offsets = [0, 256], sizes = [2, 96], strides = [1, 1]} : vector<2x384xf32> to vector<2x96xf32>
    %69 = arith.mulf %58, %68 : vector<2x96xf32>
    %70 = arith.addf %67, %69 : vector<2x96xf32>
    %71 = math.tanh %70 : vector<2x96xf32>
    %cst_18 = arith.constant 1.000000e+00 : f32
    %72 = vector.broadcast %cst_18 : f32 to vector<2x96xf32>
    %73 = arith.subf %72, %66 : vector<2x96xf32>
    %74 = arith.mulf %73, %71 : vector<2x96xf32>
    %75 = arith.mulf %66, %46 : vector<2x96xf32>
    %76 = arith.addf %74, %75 : vector<2x96xf32>
    %cst_19 = arith.constant dense<0.000000e+00> : vector<2x384xf32>
    %77 = tpu.matmul %76, %14, %cst_19 {dimension_numbers = #tpu.dot_dimension_numbers<[1], [0], [0], [1], [0, 0, 1, 1], [], []>} : vector<2x96xf32>, vector<96x384xf32>, vector<2x384xf32> -> vector<2x384xf32>
    %78 = vector.broadcast %15 : vector<1x384xf32> to vector<2x384xf32>
    %79 = arith.addf %77, %78 : vector<2x384xf32>
    %80 = vector.extract_strided_slice %13 {offsets = [4, 0], sizes = [2, 384], strides = [1, 1]} : vector<18x384xf32> to vector<2x384xf32>
    %81 = vector.extract_strided_slice %80 {offsets = [0, 0], sizes = [2, 96], strides = [1, 1]} : vector<2x384xf32> to vector<2x96xf32>
    %82 = vector.extract_strided_slice %79 {offsets = [0, 0], sizes = [2, 96], strides = [1, 1]} : vector<2x384xf32> to vector<2x96xf32>
    %83 = arith.addf %81, %82 : vector<2x96xf32>
    %84 = arith.negf %83 : vector<2x96xf32>
    %85 = math.exp %84 : vector<2x96xf32>
    %cst_20 = arith.constant 1.000000e+00 : f32
    %86 = vector.broadcast %cst_20 : f32 to vector<2x96xf32>
    %87 = arith.addf %86, %85 : vector<2x96xf32>
    %88 = arith.divf %86, %87 : vector<2x96xf32>
    %89 = vector.extract_strided_slice %80 {offsets = [0, 128], sizes = [2, 96], strides = [1, 1]} : vector<2x384xf32> to vector<2x96xf32>
    %90 = vector.extract_strided_slice %79 {offsets = [0, 128], sizes = [2, 96], strides = [1, 1]} : vector<2x384xf32> to vector<2x96xf32>
    %91 = arith.addf %89, %90 : vector<2x96xf32>
    %92 = arith.negf %91 : vector<2x96xf32>
    %93 = math.exp %92 : vector<2x96xf32>
    %cst_21 = arith.constant 1.000000e+00 : f32
    %94 = vector.broadcast %cst_21 : f32 to vector<2x96xf32>
    %95 = arith.addf %94, %93 : vector<2x96xf32>
    %96 = arith.divf %94, %95 : vector<2x96xf32>
    %97 = vector.extract_strided_slice %80 {offsets = [0, 256], sizes = [2, 96], strides = [1, 1]} : vector<2x384xf32> to vector<2x96xf32>
    %98 = vector.extract_strided_slice %79 {offsets = [0, 256], sizes = [2, 96], strides = [1, 1]} : vector<2x384xf32> to vector<2x96xf32>
    %99 = arith.mulf %88, %98 : vector<2x96xf32>
    %100 = arith.addf %97, %99 : vector<2x96xf32>
    %101 = math.tanh %100 : vector<2x96xf32>
    %cst_22 = arith.constant 1.000000e+00 : f32
    %102 = vector.broadcast %cst_22 : f32 to vector<2x96xf32>
    %103 = arith.subf %102, %96 : vector<2x96xf32>
    %104 = arith.mulf %103, %101 : vector<2x96xf32>
    %105 = arith.mulf %96, %76 : vector<2x96xf32>
    %106 = arith.addf %104, %105 : vector<2x96xf32>
    %cst_23 = arith.constant dense<0.000000e+00> : vector<2x384xf32>
    %107 = tpu.matmul %106, %14, %cst_23 {dimension_numbers = #tpu.dot_dimension_numbers<[1], [0], [0], [1], [0, 0, 1, 1], [], []>} : vector<2x96xf32>, vector<96x384xf32>, vector<2x384xf32> -> vector<2x384xf32>
    %108 = vector.broadcast %15 : vector<1x384xf32> to vector<2x384xf32>
    %109 = arith.addf %107, %108 : vector<2x384xf32>
    %110 = vector.extract_strided_slice %13 {offsets = [6, 0], sizes = [2, 384], strides = [1, 1]} : vector<18x384xf32> to vector<2x384xf32>
    %111 = vector.extract_strided_slice %110 {offsets = [0, 0], sizes = [2, 96], strides = [1, 1]} : vector<2x384xf32> to vector<2x96xf32>
    %112 = vector.extract_strided_slice %109 {offsets = [0, 0], sizes = [2, 96], strides = [1, 1]} : vector<2x384xf32> to vector<2x96xf32>
    %113 = arith.addf %111, %112 : vector<2x96xf32>
    %114 = arith.negf %113 : vector<2x96xf32>
    %115 = math.exp %114 : vector<2x96xf32>
    %cst_24 = arith.constant 1.000000e+00 : f32
    %116 = vector.broadcast %cst_24 : f32 to vector<2x96xf32>
    %117 = arith.addf %116, %115 : vector<2x96xf32>
    %118 = arith.divf %116, %117 : vector<2x96xf32>
    %119 = vector.extract_strided_slice %110 {offsets = [0, 128], sizes = [2, 96], strides = [1, 1]} : vector<2x384xf32> to vector<2x96xf32>
    %120 = vector.extract_strided_slice %109 {offsets = [0, 128], sizes = [2, 96], strides = [1, 1]} : vector<2x384xf32> to vector<2x96xf32>
    %121 = arith.addf %119, %120 : vector<2x96xf32>
    %122 = arith.negf %121 : vector<2x96xf32>
    %123 = math.exp %122 : vector<2x96xf32>
    %cst_25 = arith.constant 1.000000e+00 : f32
    %124 = vector.broadcast %cst_25 : f32 to vector<2x96xf32>
    %125 = arith.addf %124, %123 : vector<2x96xf32>
    %126 = arith.divf %124, %125 : vector<2x96xf32>
    %127 = vector.extract_strided_slice %110 {offsets = [0, 256], sizes = [2, 96], strides = [1, 1]} : vector<2x384xf32> to vector<2x96xf32>
    %128 = vector.extract_strided_slice %109 {offsets = [0, 256], sizes = [2, 96], strides = [1, 1]} : vector<2x384xf32> to vector<2x96xf32>
    %129 = arith.mulf %118, %128 : vector<2x96xf32>
    %130 = arith.addf %127, %129 : vector<2x96xf32>
    %131 = math.tanh %130 : vector<2x96xf32>
    %cst_26 = arith.constant 1.000000e+00 : f32
    %132 = vector.broadcast %cst_26 : f32 to vector<2x96xf32>
    %133 = arith.subf %132, %126 : vector<2x96xf32>
    %134 = arith.mulf %133, %131 : vector<2x96xf32>
    %135 = arith.mulf %126, %106 : vector<2x96xf32>
    %136 = arith.addf %134, %135 : vector<2x96xf32>
    %cst_27 = arith.constant dense<0.000000e+00> : vector<2x384xf32>
    %137 = tpu.matmul %136, %14, %cst_27 {dimension_numbers = #tpu.dot_dimension_numbers<[1], [0], [0], [1], [0, 0, 1, 1], [], []>} : vector<2x96xf32>, vector<96x384xf32>, vector<2x384xf32> -> vector<2x384xf32>
    %138 = vector.broadcast %15 : vector<1x384xf32> to vector<2x384xf32>
    %139 = arith.addf %137, %138 : vector<2x384xf32>
    %140 = vector.extract_strided_slice %13 {offsets = [8, 0], sizes = [2, 384], strides = [1, 1]} : vector<18x384xf32> to vector<2x384xf32>
    %141 = vector.extract_strided_slice %140 {offsets = [0, 0], sizes = [2, 96], strides = [1, 1]} : vector<2x384xf32> to vector<2x96xf32>
    %142 = vector.extract_strided_slice %139 {offsets = [0, 0], sizes = [2, 96], strides = [1, 1]} : vector<2x384xf32> to vector<2x96xf32>
    %143 = arith.addf %141, %142 : vector<2x96xf32>
    %144 = arith.negf %143 : vector<2x96xf32>
    %145 = math.exp %144 : vector<2x96xf32>
    %cst_28 = arith.constant 1.000000e+00 : f32
    %146 = vector.broadcast %cst_28 : f32 to vector<2x96xf32>
    %147 = arith.addf %146, %145 : vector<2x96xf32>
    %148 = arith.divf %146, %147 : vector<2x96xf32>
    %149 = vector.extract_strided_slice %140 {offsets = [0, 128], sizes = [2, 96], strides = [1, 1]} : vector<2x384xf32> to vector<2x96xf32>
    %150 = vector.extract_strided_slice %139 {offsets = [0, 128], sizes = [2, 96], strides = [1, 1]} : vector<2x384xf32> to vector<2x96xf32>
    %151 = arith.addf %149, %150 : vector<2x96xf32>
    %152 = arith.negf %151 : vector<2x96xf32>
    %153 = math.exp %152 : vector<2x96xf32>
    %cst_29 = arith.constant 1.000000e+00 : f32
    %154 = vector.broadcast %cst_29 : f32 to vector<2x96xf32>
    %155 = arith.addf %154, %153 : vector<2x96xf32>
    %156 = arith.divf %154, %155 : vector<2x96xf32>
    %157 = vector.extract_strided_slice %140 {offsets = [0, 256], sizes = [2, 96], strides = [1, 1]} : vector<2x384xf32> to vector<2x96xf32>
    %158 = vector.extract_strided_slice %139 {offsets = [0, 256], sizes = [2, 96], strides = [1, 1]} : vector<2x384xf32> to vector<2x96xf32>
    %159 = arith.mulf %148, %158 : vector<2x96xf32>
    %160 = arith.addf %157, %159 : vector<2x96xf32>
    %161 = math.tanh %160 : vector<2x96xf32>
    %cst_30 = arith.constant 1.000000e+00 : f32
    %162 = vector.broadcast %cst_30 : f32 to vector<2x96xf32>
    %163 = arith.subf %162, %156 : vector<2x96xf32>
    %164 = arith.mulf %163, %161 : vector<2x96xf32>
    %165 = arith.mulf %156, %136 : vector<2x96xf32>
    %166 = arith.addf %164, %165 : vector<2x96xf32>
    %cst_31 = arith.constant dense<0.000000e+00> : vector<2x384xf32>
    %167 = tpu.matmul %166, %14, %cst_31 {dimension_numbers = #tpu.dot_dimension_numbers<[1], [0], [0], [1], [0, 0, 1, 1], [], []>} : vector<2x96xf32>, vector<96x384xf32>, vector<2x384xf32> -> vector<2x384xf32>
    %168 = vector.broadcast %15 : vector<1x384xf32> to vector<2x384xf32>
    %169 = arith.addf %167, %168 : vector<2x384xf32>
    %170 = vector.extract_strided_slice %13 {offsets = [10, 0], sizes = [2, 384], strides = [1, 1]} : vector<18x384xf32> to vector<2x384xf32>
    %171 = vector.extract_strided_slice %170 {offsets = [0, 0], sizes = [2, 96], strides = [1, 1]} : vector<2x384xf32> to vector<2x96xf32>
    %172 = vector.extract_strided_slice %169 {offsets = [0, 0], sizes = [2, 96], strides = [1, 1]} : vector<2x384xf32> to vector<2x96xf32>
    %173 = arith.addf %171, %172 : vector<2x96xf32>
    %174 = arith.negf %173 : vector<2x96xf32>
    %175 = math.exp %174 : vector<2x96xf32>
    %cst_32 = arith.constant 1.000000e+00 : f32
    %176 = vector.broadcast %cst_32 : f32 to vector<2x96xf32>
    %177 = arith.addf %176, %175 : vector<2x96xf32>
    %178 = arith.divf %176, %177 : vector<2x96xf32>
    %179 = vector.extract_strided_slice %170 {offsets = [0, 128], sizes = [2, 96], strides = [1, 1]} : vector<2x384xf32> to vector<2x96xf32>
    %180 = vector.extract_strided_slice %169 {offsets = [0, 128], sizes = [2, 96], strides = [1, 1]} : vector<2x384xf32> to vector<2x96xf32>
    %181 = arith.addf %179, %180 : vector<2x96xf32>
    %182 = arith.negf %181 : vector<2x96xf32>
    %183 = math.exp %182 : vector<2x96xf32>
    %cst_33 = arith.constant 1.000000e+00 : f32
    %184 = vector.broadcast %cst_33 : f32 to vector<2x96xf32>
    %185 = arith.addf %184, %183 : vector<2x96xf32>
    %186 = arith.divf %184, %185 : vector<2x96xf32>
    %187 = vector.extract_strided_slice %170 {offsets = [0, 256], sizes = [2, 96], strides = [1, 1]} : vector<2x384xf32> to vector<2x96xf32>
    %188 = vector.extract_strided_slice %169 {offsets = [0, 256], sizes = [2, 96], strides = [1, 1]} : vector<2x384xf32> to vector<2x96xf32>
    %189 = arith.mulf %178, %188 : vector<2x96xf32>
    %190 = arith.addf %187, %189 : vector<2x96xf32>
    %191 = math.tanh %190 : vector<2x96xf32>
    %cst_34 = arith.constant 1.000000e+00 : f32
    %192 = vector.broadcast %cst_34 : f32 to vector<2x96xf32>
    %193 = arith.subf %192, %186 : vector<2x96xf32>
    %194 = arith.mulf %193, %191 : vector<2x96xf32>
    %195 = arith.mulf %186, %166 : vector<2x96xf32>
    %196 = arith.addf %194, %195 : vector<2x96xf32>
    %cst_35 = arith.constant dense<0.000000e+00> : vector<2x384xf32>
    %197 = tpu.matmul %196, %14, %cst_35 {dimension_numbers = #tpu.dot_dimension_numbers<[1], [0], [0], [1], [0, 0, 1, 1], [], []>} : vector<2x96xf32>, vector<96x384xf32>, vector<2x384xf32> -> vector<2x384xf32>
    %198 = vector.broadcast %15 : vector<1x384xf32> to vector<2x384xf32>
    %199 = arith.addf %197, %198 : vector<2x384xf32>
    %200 = vector.extract_strided_slice %13 {offsets = [12, 0], sizes = [2, 384], strides = [1, 1]} : vector<18x384xf32> to vector<2x384xf32>
    %201 = vector.extract_strided_slice %200 {offsets = [0, 0], sizes = [2, 96], strides = [1, 1]} : vector<2x384xf32> to vector<2x96xf32>
    %202 = vector.extract_strided_slice %199 {offsets = [0, 0], sizes = [2, 96], strides = [1, 1]} : vector<2x384xf32> to vector<2x96xf32>
    %203 = arith.addf %201, %202 : vector<2x96xf32>
    %204 = arith.negf %203 : vector<2x96xf32>
    %205 = math.exp %204 : vector<2x96xf32>
    %cst_36 = arith.constant 1.000000e+00 : f32
    %206 = vector.broadcast %cst_36 : f32 to vector<2x96xf32>
    %207 = arith.addf %206, %205 : vector<2x96xf32>
    %208 = arith.divf %206, %207 : vector<2x96xf32>
    %209 = vector.extract_strided_slice %200 {offsets = [0, 128], sizes = [2, 96], strides = [1, 1]} : vector<2x384xf32> to vector<2x96xf32>
    %210 = vector.extract_strided_slice %199 {offsets = [0, 128], sizes = [2, 96], strides = [1, 1]} : vector<2x384xf32> to vector<2x96xf32>
    %211 = arith.addf %209, %210 : vector<2x96xf32>
    %212 = arith.negf %211 : vector<2x96xf32>
    %213 = math.exp %212 : vector<2x96xf32>
    %cst_37 = arith.constant 1.000000e+00 : f32
    %214 = vector.broadcast %cst_37 : f32 to vector<2x96xf32>
    %215 = arith.addf %214, %213 : vector<2x96xf32>
    %216 = arith.divf %214, %215 : vector<2x96xf32>
    %217 = vector.extract_strided_slice %200 {offsets = [0, 256], sizes = [2, 96], strides = [1, 1]} : vector<2x384xf32> to vector<2x96xf32>
    %218 = vector.extract_strided_slice %199 {offsets = [0, 256], sizes = [2, 96], strides = [1, 1]} : vector<2x384xf32> to vector<2x96xf32>
    %219 = arith.mulf %208, %218 : vector<2x96xf32>
    %220 = arith.addf %217, %219 : vector<2x96xf32>
    %221 = math.tanh %220 : vector<2x96xf32>
    %cst_38 = arith.constant 1.000000e+00 : f32
    %222 = vector.broadcast %cst_38 : f32 to vector<2x96xf32>
    %223 = arith.subf %222, %216 : vector<2x96xf32>
    %224 = arith.mulf %223, %221 : vector<2x96xf32>
    %225 = arith.mulf %216, %196 : vector<2x96xf32>
    %226 = arith.addf %224, %225 : vector<2x96xf32>
    %cst_39 = arith.constant dense<0.000000e+00> : vector<2x384xf32>
    %227 = tpu.matmul %226, %14, %cst_39 {dimension_numbers = #tpu.dot_dimension_numbers<[1], [0], [0], [1], [0, 0, 1, 1], [], []>} : vector<2x96xf32>, vector<96x384xf32>, vector<2x384xf32> -> vector<2x384xf32>
    %228 = vector.broadcast %15 : vector<1x384xf32> to vector<2x384xf32>
    %229 = arith.addf %227, %228 : vector<2x384xf32>
    %230 = vector.extract_strided_slice %13 {offsets = [14, 0], sizes = [2, 384], strides = [1, 1]} : vector<18x384xf32> to vector<2x384xf32>
    %231 = vector.extract_strided_slice %230 {offsets = [0, 0], sizes = [2, 96], strides = [1, 1]} : vector<2x384xf32> to vector<2x96xf32>
    %232 = vector.extract_strided_slice %229 {offsets = [0, 0], sizes = [2, 96], strides = [1, 1]} : vector<2x384xf32> to vector<2x96xf32>
    %233 = arith.addf %231, %232 : vector<2x96xf32>
    %234 = arith.negf %233 : vector<2x96xf32>
    %235 = math.exp %234 : vector<2x96xf32>
    %cst_40 = arith.constant 1.000000e+00 : f32
    %236 = vector.broadcast %cst_40 : f32 to vector<2x96xf32>
    %237 = arith.addf %236, %235 : vector<2x96xf32>
    %238 = arith.divf %236, %237 : vector<2x96xf32>
    %239 = vector.extract_strided_slice %230 {offsets = [0, 128], sizes = [2, 96], strides = [1, 1]} : vector<2x384xf32> to vector<2x96xf32>
    %240 = vector.extract_strided_slice %229 {offsets = [0, 128], sizes = [2, 96], strides = [1, 1]} : vector<2x384xf32> to vector<2x96xf32>
    %241 = arith.addf %239, %240 : vector<2x96xf32>
    %242 = arith.negf %241 : vector<2x96xf32>
    %243 = math.exp %242 : vector<2x96xf32>
    %cst_41 = arith.constant 1.000000e+00 : f32
    %244 = vector.broadcast %cst_41 : f32 to vector<2x96xf32>
    %245 = arith.addf %244, %243 : vector<2x96xf32>
    %246 = arith.divf %244, %245 : vector<2x96xf32>
    %247 = vector.extract_strided_slice %230 {offsets = [0, 256], sizes = [2, 96], strides = [1, 1]} : vector<2x384xf32> to vector<2x96xf32>
    %248 = vector.extract_strided_slice %229 {offsets = [0, 256], sizes = [2, 96], strides = [1, 1]} : vector<2x384xf32> to vector<2x96xf32>
    %249 = arith.mulf %238, %248 : vector<2x96xf32>
    %250 = arith.addf %247, %249 : vector<2x96xf32>
    %251 = math.tanh %250 : vector<2x96xf32>
    %cst_42 = arith.constant 1.000000e+00 : f32
    %252 = vector.broadcast %cst_42 : f32 to vector<2x96xf32>
    %253 = arith.subf %252, %246 : vector<2x96xf32>
    %254 = arith.mulf %253, %251 : vector<2x96xf32>
    %255 = arith.mulf %246, %226 : vector<2x96xf32>
    %256 = arith.addf %254, %255 : vector<2x96xf32>
    %cst_43 = arith.constant dense<0.000000e+00> : vector<2x384xf32>
    %257 = tpu.matmul %256, %14, %cst_43 {dimension_numbers = #tpu.dot_dimension_numbers<[1], [0], [0], [1], [0, 0, 1, 1], [], []>} : vector<2x96xf32>, vector<96x384xf32>, vector<2x384xf32> -> vector<2x384xf32>
    %258 = vector.broadcast %15 : vector<1x384xf32> to vector<2x384xf32>
    %259 = arith.addf %257, %258 : vector<2x384xf32>
    %260 = vector.extract_strided_slice %13 {offsets = [16, 0], sizes = [2, 384], strides = [1, 1]} : vector<18x384xf32> to vector<2x384xf32>
    %261 = vector.extract_strided_slice %260 {offsets = [0, 0], sizes = [2, 96], strides = [1, 1]} : vector<2x384xf32> to vector<2x96xf32>
    %262 = vector.extract_strided_slice %259 {offsets = [0, 0], sizes = [2, 96], strides = [1, 1]} : vector<2x384xf32> to vector<2x96xf32>
    %263 = arith.addf %261, %262 : vector<2x96xf32>
    %264 = arith.negf %263 : vector<2x96xf32>
    %265 = math.exp %264 : vector<2x96xf32>
    %cst_44 = arith.constant 1.000000e+00 : f32
    %266 = vector.broadcast %cst_44 : f32 to vector<2x96xf32>
    %267 = arith.addf %266, %265 : vector<2x96xf32>
    %268 = arith.divf %266, %267 : vector<2x96xf32>
    %269 = vector.extract_strided_slice %260 {offsets = [0, 128], sizes = [2, 96], strides = [1, 1]} : vector<2x384xf32> to vector<2x96xf32>
    %270 = vector.extract_strided_slice %259 {offsets = [0, 128], sizes = [2, 96], strides = [1, 1]} : vector<2x384xf32> to vector<2x96xf32>
    %271 = arith.addf %269, %270 : vector<2x96xf32>
    %272 = arith.negf %271 : vector<2x96xf32>
    %273 = math.exp %272 : vector<2x96xf32>
    %cst_45 = arith.constant 1.000000e+00 : f32
    %274 = vector.broadcast %cst_45 : f32 to vector<2x96xf32>
    %275 = arith.addf %274, %273 : vector<2x96xf32>
    %276 = arith.divf %274, %275 : vector<2x96xf32>
    %277 = vector.extract_strided_slice %260 {offsets = [0, 256], sizes = [2, 96], strides = [1, 1]} : vector<2x384xf32> to vector<2x96xf32>
    %278 = vector.extract_strided_slice %259 {offsets = [0, 256], sizes = [2, 96], strides = [1, 1]} : vector<2x384xf32> to vector<2x96xf32>
    %279 = arith.mulf %268, %278 : vector<2x96xf32>
    %280 = arith.addf %277, %279 : vector<2x96xf32>
    %281 = math.tanh %280 : vector<2x96xf32>
    %cst_46 = arith.constant 1.000000e+00 : f32
    %282 = vector.broadcast %cst_46 : f32 to vector<2x96xf32>
    %283 = arith.subf %282, %276 : vector<2x96xf32>
    %284 = arith.mulf %283, %281 : vector<2x96xf32>
    %285 = arith.mulf %276, %256 : vector<2x96xf32>
    %286 = arith.addf %284, %285 : vector<2x96xf32>
    %287 = tpu.concatenate %46, %76, %106, %136, %166, %196, %226, %256, %286 in 0 : vector<2x96xf32>, vector<2x96xf32>, vector<2x96xf32>, vector<2x96xf32>, vector<2x96xf32>, vector<2x96xf32>, vector<2x96xf32>, vector<2x96xf32>, vector<2x96xf32> -> vector<18x96xf32>
    %288 = vector.extract_strided_slice %287 {offsets = [0, 0], sizes = [18, 32], strides = [1, 1]} : vector<18x96xf32> to vector<18x32xf32>
    %289 = vector.extract_strided_slice %287 {offsets = [0, 32], sizes = [18, 32], strides = [1, 1]} : vector<18x96xf32> to vector<18x32xf32>
    %290 = vector.extract_strided_slice %287 {offsets = [0, 64], sizes = [18, 32], strides = [1, 1]} : vector<18x96xf32> to vector<18x32xf32>
    %c0_47 = arith.constant 0 : index
    %c0_48 = arith.constant 0 : index
    %291 = vector.load %arg3[%c0_47, %c0_48] : memref<160x32xf32, #tpu.memory_space<vmem>>, vector<16x16xf32>
    %c16 = arith.constant 16 : index
    %c0_49 = arith.constant 0 : index
    %292 = vector.load %arg3[%c16, %c0_49] : memref<160x32xf32, #tpu.memory_space<vmem>>, vector<1x16xf32>
    %cst_50 = arith.constant dense<0.000000e+00> : vector<18x16xf32>
    %293 = tpu.matmul %1, %291, %cst_50 {dimension_numbers = #tpu.dot_dimension_numbers<[1], [0], [0], [1], [0, 0, 1, 1], [], []>} : vector<18x16xf32>, vector<16x16xf32>, vector<18x16xf32> -> vector<18x16xf32>
    %294 = vector.broadcast %292 : vector<1x16xf32> to vector<18x16xf32>
    %295 = arith.addf %293, %294 : vector<18x16xf32>
    %cst_51 = arith.constant 0.000000e+00 : f32
    %296 = vector.broadcast %cst_51 : f32 to vector<18x16xf32>
    %297 = arith.maximumf %295, %296 : vector<18x16xf32>
    %c24_52 = arith.constant 24 : index
    %c0_53 = arith.constant 0 : index
    %298 = vector.load %arg3[%c24_52, %c0_53] : memref<160x32xf32, #tpu.memory_space<vmem>>, vector<48x32xf32>
    %c72 = arith.constant 72 : index
    %c0_54 = arith.constant 0 : index
    %299 = vector.load %arg3[%c72, %c0_54] : memref<160x32xf32, #tpu.memory_space<vmem>>, vector<1x32xf32>
    %300 = tpu.concatenate %288, %297 in 1 : vector<18x32xf32>, vector<18x16xf32> -> vector<18x48xf32>
    %cst_55 = arith.constant dense<0.000000e+00> : vector<18x32xf32>
    %301 = tpu.matmul %300, %298, %cst_55 {dimension_numbers = #tpu.dot_dimension_numbers<[1], [0], [0], [1], [0, 0, 1, 1], [], []>} : vector<18x48xf32>, vector<48x32xf32>, vector<18x32xf32> -> vector<18x32xf32>
    %302 = vector.broadcast %299 : vector<1x32xf32> to vector<18x32xf32>
    %303 = arith.addf %301, %302 : vector<18x32xf32>
    %cst_56 = arith.constant 0.000000e+00 : f32
    %304 = vector.broadcast %cst_56 : f32 to vector<18x32xf32>
    %305 = arith.maximumf %303, %304 : vector<18x32xf32>
    %c80 = arith.constant 80 : index
    %c0_57 = arith.constant 0 : index
    %306 = vector.load %arg3[%c80, %c0_57] : memref<160x32xf32, #tpu.memory_space<vmem>>, vector<32x32xf32>
    %c112 = arith.constant 112 : index
    %c0_58 = arith.constant 0 : index
    %307 = vector.load %arg3[%c112, %c0_58] : memref<160x32xf32, #tpu.memory_space<vmem>>, vector<1x32xf32>
    %cst_59 = arith.constant dense<0.000000e+00> : vector<18x32xf32>
    %308 = tpu.matmul %305, %306, %cst_59 {dimension_numbers = #tpu.dot_dimension_numbers<[1], [0], [0], [1], [0, 0, 1, 1], [], []>} : vector<18x32xf32>, vector<32x32xf32>, vector<18x32xf32> -> vector<18x32xf32>
    %309 = vector.broadcast %307 : vector<1x32xf32> to vector<18x32xf32>
    %310 = arith.addf %308, %309 : vector<18x32xf32>
    %cst_60 = arith.constant 0.000000e+00 : f32
    %311 = vector.broadcast %cst_60 : f32 to vector<18x32xf32>
    %312 = arith.maximumf %310, %311 : vector<18x32xf32>
    %c120 = arith.constant 120 : index
    %c0_61 = arith.constant 0 : index
    %313 = vector.load %arg3[%c120, %c0_61] : memref<160x32xf32, #tpu.memory_space<vmem>>, vector<32x8xf32>
    %c152 = arith.constant 152 : index
    %c0_62 = arith.constant 0 : index
    %314 = vector.load %arg3[%c152, %c0_62] : memref<160x32xf32, #tpu.memory_space<vmem>>, vector<1x8xf32>
    %cst_63 = arith.constant dense<0.000000e+00> : vector<18x8xf32>
    %315 = tpu.matmul %312, %313, %cst_63 {dimension_numbers = #tpu.dot_dimension_numbers<[1], [0], [0], [1], [0, 0, 1, 1], [], []>} : vector<18x32xf32>, vector<32x8xf32>, vector<18x8xf32> -> vector<18x8xf32>
    %316 = vector.broadcast %314 : vector<1x8xf32> to vector<18x8xf32>
    %317 = arith.addf %315, %316 : vector<18x8xf32>
    %318 = vector.extract_strided_slice %317 {offsets = [0, 0], sizes = [18, 4], strides = [1, 1]} : vector<18x8xf32> to vector<18x4xf32>
    %319 = vector.extract_strided_slice %317 {offsets = [0, 4], sizes = [18, 4], strides = [1, 1]} : vector<18x8xf32> to vector<18x4xf32>
    %cst_64 = arith.constant -2.000000e+01 : f32
    %cst_65 = arith.constant 2.000000e+00 : f32
    %320 = vector.broadcast %cst_64 : f32 to vector<18x4xf32>
    %321 = arith.maximumf %320, %319 : vector<18x4xf32>
    %322 = vector.broadcast %cst_65 : f32 to vector<18x4xf32>
    %323 = arith.minimumf %322, %321 : vector<18x4xf32>
    %324 = math.tanh %318 : vector<18x4xf32>
    %cst_66 = arith.constant 6.28318548 : f32
    %325 = math.log %cst_66 : f32
    %cst_67 = arith.constant -5.000000e-01 : f32
    %326 = arith.mulf %cst_67, %325 : f32
    %327 = vector.broadcast %326 : f32 to vector<18x4xf32>
    %328 = arith.subf %327, %323 : vector<18x4xf32>
    %cst_68 = arith.constant 2.000000e+00 : f32
    %329 = math.log %cst_68 : f32
    %330 = vector.broadcast %329 : f32 to vector<18x4xf32>
    %331 = arith.subf %330, %318 : vector<18x4xf32>
    %cst_69 = arith.constant -2.000000e+00 : f32
    %332 = vector.broadcast %cst_69 : f32 to vector<18x4xf32>
    %333 = arith.mulf %332, %318 : vector<18x4xf32>
    %cst_70 = arith.constant 0.000000e+00 : f32
    %334 = vector.broadcast %cst_70 : f32 to vector<18x4xf32>
    %335 = arith.maximumf %333, %334 : vector<18x4xf32>
    %336 = vector.broadcast %cst_70 : f32 to vector<18x4xf32>
    %337 = arith.subf %333, %336 : vector<18x4xf32>
    %338 = arith.cmpf one, %337, %337 : vector<18x4xf32>
    %339 = vector.broadcast %cst_70 : f32 to vector<18x4xf32>
    %340 = arith.addf %333, %339 : vector<18x4xf32>
    %341 = math.absf %337 : vector<18x4xf32>
    %cst_71 = arith.constant 0.000000e+00 : f32
    %342 = vector.broadcast %cst_71 : f32 to vector<18x4xf32>
    %343 = arith.subf %342, %341 : vector<18x4xf32>
    %344 = math.exp %343 : vector<18x4xf32>
    %345 = math.log1p %344 : vector<18x4xf32>
    %346 = arith.addf %335, %345 : vector<18x4xf32>
    %347 = arith.select %338, %340, %346 : vector<18x4xi1>, vector<18x4xf32>
    %348 = arith.subf %331, %347 : vector<18x4xf32>
    %cst_72 = arith.constant 2.000000e+00 : f32
    %349 = vector.broadcast %cst_72 : f32 to vector<18x4xf32>
    %350 = arith.mulf %349, %348 : vector<18x4xf32>
    %351 = arith.subf %328, %350 : vector<18x4xf32>
    %cst_73 = arith.constant dense<0.000000e+00> : vector<18xf32>
    %352 = vector.multi_reduction <add>, %351, %cst_73 [1] : vector<18x4xf32> to vector<18xf32>
    %353 = vector.shape_cast %352 : vector<18xf32> to vector<18x1xf32>
    %c0_74 = arith.constant 0 : index
    %c0_75 = arith.constant 0 : index
    %354 = vector.load %arg1[%c0_74, %c0_75] : memref<16x7xf32, #tpu.memory_space<vmem>>, vector<16x7xf32>
    %355 = vector.extract_strided_slice %354 {offsets = [0, 0], sizes = [16, 4], strides = [1, 1]} : vector<16x7xf32> to vector<16x4xf32>
    %356 = vector.extract_strided_slice %354 {offsets = [0, 4], sizes = [16, 1], strides = [1, 1]} : vector<16x7xf32> to vector<16x1xf32>
    %357 = vector.extract_strided_slice %354 {offsets = [0, 5], sizes = [16, 1], strides = [1, 1]} : vector<16x7xf32> to vector<16x1xf32>
    %358 = vector.extract_strided_slice %354 {offsets = [0, 6], sizes = [16, 1], strides = [1, 1]} : vector<16x7xf32> to vector<16x1xf32>
    %359 = tpu.concatenate %1, %324 in 1 : vector<18x16xf32>, vector<18x4xf32> -> vector<18x20xf32>
    %c0_76 = arith.constant 0 : index
    %c0_77 = arith.constant 0 : index
    %360 = vector.load %arg5[%c0_76, %c0_77] : memref<232x64xf32, #tpu.memory_space<vmem>>, vector<20x16xf32>
    %c24_78 = arith.constant 24 : index
    %c0_79 = arith.constant 0 : index
    %361 = vector.load %arg5[%c24_78, %c0_79] : memref<232x64xf32, #tpu.memory_space<vmem>>, vector<1x16xf32>
    %cst_80 = arith.constant dense<0.000000e+00> : vector<18x16xf32>
    %362 = tpu.matmul %359, %360, %cst_80 {dimension_numbers = #tpu.dot_dimension_numbers<[1], [0], [0], [1], [0, 0, 1, 1], [], []>} : vector<18x20xf32>, vector<20x16xf32>, vector<18x16xf32> -> vector<18x16xf32>
    %363 = vector.broadcast %361 : vector<1x16xf32> to vector<18x16xf32>
    %364 = arith.addf %362, %363 : vector<18x16xf32>
    %cst_81 = arith.constant 0.000000e+00 : f32
    %365 = vector.broadcast %cst_81 : f32 to vector<18x16xf32>
    %366 = arith.maximumf %364, %365 : vector<18x16xf32>
    %c32_82 = arith.constant 32 : index
    %c0_83 = arith.constant 0 : index
    %367 = vector.load %arg5[%c32_82, %c0_83] : memref<232x64xf32, #tpu.memory_space<vmem>>, vector<48x64xf32>
    %c80_84 = arith.constant 80 : index
    %c0_85 = arith.constant 0 : index
    %368 = vector.load %arg5[%c80_84, %c0_85] : memref<232x64xf32, #tpu.memory_space<vmem>>, vector<1x64xf32>
    %369 = tpu.concatenate %290, %366 in 1 : vector<18x32xf32>, vector<18x16xf32> -> vector<18x48xf32>
    %cst_86 = arith.constant dense<0.000000e+00> : vector<18x64xf32>
    %370 = tpu.matmul %369, %367, %cst_86 {dimension_numbers = #tpu.dot_dimension_numbers<[1], [0], [0], [1], [0, 0, 1, 1], [], []>} : vector<18x48xf32>, vector<48x64xf32>, vector<18x64xf32> -> vector<18x64xf32>
    %371 = vector.broadcast %368 : vector<1x64xf32> to vector<18x64xf32>
    %372 = arith.addf %370, %371 : vector<18x64xf32>
    %cst_87 = arith.constant 0.000000e+00 : f32
    %373 = vector.broadcast %cst_87 : f32 to vector<18x64xf32>
    %374 = arith.maximumf %372, %373 : vector<18x64xf32>
    %c88 = arith.constant 88 : index
    %c0_88 = arith.constant 0 : index
    %375 = vector.load %arg5[%c88, %c0_88] : memref<232x64xf32, #tpu.memory_space<vmem>>, vector<64x64xf32>
    %c152_89 = arith.constant 152 : index
    %c0_90 = arith.constant 0 : index
    %376 = vector.load %arg5[%c152_89, %c0_90] : memref<232x64xf32, #tpu.memory_space<vmem>>, vector<1x64xf32>
    %cst_91 = arith.constant dense<0.000000e+00> : vector<18x64xf32>
    %377 = tpu.matmul %374, %375, %cst_91 {dimension_numbers = #tpu.dot_dimension_numbers<[1], [0], [0], [1], [0, 0, 1, 1], [], []>} : vector<18x64xf32>, vector<64x64xf32>, vector<18x64xf32> -> vector<18x64xf32>
    %378 = vector.broadcast %376 : vector<1x64xf32> to vector<18x64xf32>
    %379 = arith.addf %377, %378 : vector<18x64xf32>
    %cst_92 = arith.constant 0.000000e+00 : f32
    %380 = vector.broadcast %cst_92 : f32 to vector<18x64xf32>
    %381 = arith.maximumf %379, %380 : vector<18x64xf32>
    %c160 = arith.constant 160 : index
    %c0_93 = arith.constant 0 : index
    %382 = vector.load %arg5[%c160, %c0_93] : memref<232x64xf32, #tpu.memory_space<vmem>>, vector<64x2xf32>
    %c224 = arith.constant 224 : index
    %c0_94 = arith.constant 0 : index
    %383 = vector.load %arg5[%c224, %c0_94] : memref<232x64xf32, #tpu.memory_space<vmem>>, vector<1x2xf32>
    %cst_95 = arith.constant dense<0.000000e+00> : vector<18x2xf32>
    %384 = tpu.matmul %381, %382, %cst_95 {dimension_numbers = #tpu.dot_dimension_numbers<[1], [0], [0], [1], [0, 0, 1, 1], [], []>} : vector<18x64xf32>, vector<64x2xf32>, vector<18x2xf32> -> vector<18x2xf32>
    %385 = vector.broadcast %383 : vector<1x2xf32> to vector<18x2xf32>
    %386 = arith.addf %384, %385 : vector<18x2xf32>
    %387 = vector.extract_strided_slice %289 {offsets = [0, 0], sizes = [16, 32], strides = [1, 1]} : vector<18x32xf32> to vector<16x32xf32>
    %388 = vector.extract_strided_slice %289 {offsets = [0, 0], sizes = [16, 32], strides = [1, 1]} : vector<18x32xf32> to vector<16x32xf32>
    %389 = tpu.concatenate %387, %388 in 0 : vector<16x32xf32>, vector<16x32xf32> -> vector<32x32xf32>
    %390 = vector.extract_strided_slice %1 {offsets = [0, 0], sizes = [16, 16], strides = [1, 1]} : vector<18x16xf32> to vector<16x16xf32>
    %391 = tpu.concatenate %390, %355 in 1 : vector<16x16xf32>, vector<16x4xf32> -> vector<16x20xf32>
    %392 = vector.extract_strided_slice %359 {offsets = [0, 0], sizes = [16, 20], strides = [1, 1]} : vector<18x20xf32> to vector<16x20xf32>
    %393 = tpu.concatenate %391, %392 in 0 : vector<16x20xf32>, vector<16x20xf32> -> vector<32x20xf32>
    %c0_96 = arith.constant 0 : index
    %c0_97 = arith.constant 0 : index
    %394 = vector.load %arg4[%c0_96, %c0_97] : memref<232x64xf32, #tpu.memory_space<vmem>>, vector<20x16xf32>
    %c24_98 = arith.constant 24 : index
    %c0_99 = arith.constant 0 : index
    %395 = vector.load %arg4[%c24_98, %c0_99] : memref<232x64xf32, #tpu.memory_space<vmem>>, vector<1x16xf32>
    %cst_100 = arith.constant dense<0.000000e+00> : vector<32x16xf32>
    %396 = tpu.matmul %393, %394, %cst_100 {dimension_numbers = #tpu.dot_dimension_numbers<[1], [0], [0], [1], [0, 0, 1, 1], [], []>} : vector<32x20xf32>, vector<20x16xf32>, vector<32x16xf32> -> vector<32x16xf32>
    %397 = vector.broadcast %395 : vector<1x16xf32> to vector<32x16xf32>
    %398 = arith.addf %396, %397 : vector<32x16xf32>
    %cst_101 = arith.constant 0.000000e+00 : f32
    %399 = vector.broadcast %cst_101 : f32 to vector<32x16xf32>
    %400 = arith.maximumf %398, %399 : vector<32x16xf32>
    %c32_102 = arith.constant 32 : index
    %c0_103 = arith.constant 0 : index
    %401 = vector.load %arg4[%c32_102, %c0_103] : memref<232x64xf32, #tpu.memory_space<vmem>>, vector<48x64xf32>
    %c80_104 = arith.constant 80 : index
    %c0_105 = arith.constant 0 : index
    %402 = vector.load %arg4[%c80_104, %c0_105] : memref<232x64xf32, #tpu.memory_space<vmem>>, vector<1x64xf32>
    %403 = tpu.concatenate %389, %400 in 1 : vector<32x32xf32>, vector<32x16xf32> -> vector<32x48xf32>
    %cst_106 = arith.constant dense<0.000000e+00> : vector<32x64xf32>
    %404 = tpu.matmul %403, %401, %cst_106 {dimension_numbers = #tpu.dot_dimension_numbers<[1], [0], [0], [1], [0, 0, 1, 1], [], []>} : vector<32x48xf32>, vector<48x64xf32>, vector<32x64xf32> -> vector<32x64xf32>
    %405 = vector.broadcast %402 : vector<1x64xf32> to vector<32x64xf32>
    %406 = arith.addf %404, %405 : vector<32x64xf32>
    %cst_107 = arith.constant 0.000000e+00 : f32
    %407 = vector.broadcast %cst_107 : f32 to vector<32x64xf32>
    %408 = arith.maximumf %406, %407 : vector<32x64xf32>
    %c88_108 = arith.constant 88 : index
    %c0_109 = arith.constant 0 : index
    %409 = vector.load %arg4[%c88_108, %c0_109] : memref<232x64xf32, #tpu.memory_space<vmem>>, vector<64x64xf32>
    %c152_110 = arith.constant 152 : index
    %c0_111 = arith.constant 0 : index
    %410 = vector.load %arg4[%c152_110, %c0_111] : memref<232x64xf32, #tpu.memory_space<vmem>>, vector<1x64xf32>
    %cst_112 = arith.constant dense<0.000000e+00> : vector<32x64xf32>
    %411 = tpu.matmul %408, %409, %cst_112 {dimension_numbers = #tpu.dot_dimension_numbers<[1], [0], [0], [1], [0, 0, 1, 1], [], []>} : vector<32x64xf32>, vector<64x64xf32>, vector<32x64xf32> -> vector<32x64xf32>
    %412 = vector.broadcast %410 : vector<1x64xf32> to vector<32x64xf32>
    %413 = arith.addf %411, %412 : vector<32x64xf32>
    %cst_113 = arith.constant 0.000000e+00 : f32
    %414 = vector.broadcast %cst_113 : f32 to vector<32x64xf32>
    %415 = arith.maximumf %413, %414 : vector<32x64xf32>
    %c160_114 = arith.constant 160 : index
    %c0_115 = arith.constant 0 : index
    %416 = vector.load %arg4[%c160_114, %c0_115] : memref<232x64xf32, #tpu.memory_space<vmem>>, vector<64x2xf32>
    %c224_116 = arith.constant 224 : index
    %c0_117 = arith.constant 0 : index
    %417 = vector.load %arg4[%c224_116, %c0_117] : memref<232x64xf32, #tpu.memory_space<vmem>>, vector<1x2xf32>
    %cst_118 = arith.constant dense<0.000000e+00> : vector<32x2xf32>
    %418 = tpu.matmul %415, %416, %cst_118 {dimension_numbers = #tpu.dot_dimension_numbers<[1], [0], [0], [1], [0, 0, 1, 1], [], []>} : vector<32x64xf32>, vector<64x2xf32>, vector<32x2xf32> -> vector<32x2xf32>
    %419 = vector.broadcast %417 : vector<1x2xf32> to vector<32x2xf32>
    %420 = arith.addf %418, %419 : vector<32x2xf32>
    %421 = vector.extract_strided_slice %420 {offsets = [0, 0], sizes = [16, 2], strides = [1, 1]} : vector<32x2xf32> to vector<16x2xf32>
    %422 = vector.extract_strided_slice %420 {offsets = [16, 0], sizes = [16, 2], strides = [1, 1]} : vector<32x2xf32> to vector<16x2xf32>
    %423 = vector.shape_cast %358 : vector<16x1xf32> to vector<1x16x1xf32>
    %cst_119 = arith.constant dense<0.000000e+00> : vector<1xf32>
    %424 = vector.multi_reduction <add>, %423, %cst_119 [1, 2] : vector<1x16x1xf32> to vector<1xf32>
    %425 = vector.shape_cast %424 : vector<1xf32> to vector<1x1x1xf32>
    %426 = vector.extract %425[0, 0, 0] : f32 from vector<1x1x1xf32>
    %427 = vector.broadcast %426 : f32 to vector<1x1xf32>
    %cst_120 = arith.constant 1.000000e+00 : f32
    %428 = vector.broadcast %cst_120 : f32 to vector<1x1xf32>
    %429 = arith.maximumf %427, %428 : vector<1x1xf32>
    %430 = vector.extract_strided_slice %386 {offsets = [2, 0], sizes = [16, 2], strides = [1, 1]} : vector<18x2xf32> to vector<16x2xf32>
    %431 = vector.extract_strided_slice %353 {offsets = [2, 0], sizes = [16, 1], strides = [1, 1]} : vector<18x1xf32> to vector<16x1xf32>
    %432 = vector.extract_strided_slice %430 {offsets = [0, 0], sizes = [16, 1], strides = [1, 1]} : vector<16x2xf32> to vector<16x1xf32>
    %433 = vector.extract_strided_slice %430 {offsets = [0, 1], sizes = [16, 1], strides = [1, 1]} : vector<16x2xf32> to vector<16x1xf32>
    %434 = arith.minimumf %432, %433 : vector<16x1xf32>
    %cst_121 = arith.constant 1.000000e-01 : f32
    %435 = vector.broadcast %cst_121 : f32 to vector<16x1xf32>
    %436 = arith.mulf %435, %431 : vector<16x1xf32>
    %437 = arith.subf %434, %436 : vector<16x1xf32>
    %cst_122 = arith.constant 1.000000e+00 : f32
    %438 = vector.broadcast %cst_122 : f32 to vector<16x1xf32>
    %439 = arith.subf %438, %357 : vector<16x1xf32>
    %cst_123 = arith.constant 9.900000e-01 : f32
    %440 = vector.broadcast %cst_123 : f32 to vector<16x1xf32>
    %441 = arith.mulf %439, %440 : vector<16x1xf32>
    %442 = arith.mulf %441, %437 : vector<16x1xf32>
    %443 = arith.addf %356, %442 : vector<16x1xf32>
    %444 = arith.mulf %443, %358 : vector<16x1xf32>
    %445 = vector.extract_strided_slice %421 {offsets = [0, 0], sizes = [16, 1], strides = [1, 1]} : vector<16x2xf32> to vector<16x1xf32>
    %446 = arith.mulf %445, %358 : vector<16x1xf32>
    %447 = arith.subf %446, %444 : vector<16x1xf32>
    %448 = arith.mulf %447, %447 : vector<16x1xf32>
    %449 = vector.shape_cast %448 : vector<16x1xf32> to vector<1x16x1xf32>
    %cst_124 = arith.constant dense<0.000000e+00> : vector<1xf32>
    %450 = vector.multi_reduction <add>, %449, %cst_124 [1, 2] : vector<1x16x1xf32> to vector<1xf32>
    %451 = vector.shape_cast %450 : vector<1xf32> to vector<1x1x1xf32>
    %452 = vector.extract %451[0, 0, 0] : f32 from vector<1x1x1xf32>
    %453 = vector.broadcast %452 : f32 to vector<1x1xf32>
    %454 = arith.divf %453, %429 : vector<1x1xf32>
    %455 = vector.extract_strided_slice %421 {offsets = [0, 1], sizes = [16, 1], strides = [1, 1]} : vector<16x2xf32> to vector<16x1xf32>
    %456 = arith.mulf %455, %358 : vector<16x1xf32>
    %457 = arith.subf %456, %444 : vector<16x1xf32>
    %458 = arith.mulf %457, %457 : vector<16x1xf32>
    %459 = vector.shape_cast %458 : vector<16x1xf32> to vector<1x16x1xf32>
    %cst_125 = arith.constant dense<0.000000e+00> : vector<1xf32>
    %460 = vector.multi_reduction <add>, %459, %cst_125 [1, 2] : vector<1x16x1xf32> to vector<1xf32>
    %461 = vector.shape_cast %460 : vector<1xf32> to vector<1x1x1xf32>
    %462 = vector.extract %461[0, 0, 0] : f32 from vector<1x1x1xf32>
    %463 = vector.broadcast %462 : f32 to vector<1x1xf32>
    %464 = arith.divf %463, %429 : vector<1x1xf32>
    %465 = vector.extract_strided_slice %422 {offsets = [0, 0], sizes = [16, 1], strides = [1, 1]} : vector<16x2xf32> to vector<16x1xf32>
    %466 = vector.extract_strided_slice %422 {offsets = [0, 1], sizes = [16, 1], strides = [1, 1]} : vector<16x2xf32> to vector<16x1xf32>
    %467 = arith.minimumf %465, %466 : vector<16x1xf32>
    %468 = vector.extract_strided_slice %353 {offsets = [0, 0], sizes = [16, 1], strides = [1, 1]} : vector<18x1xf32> to vector<16x1xf32>
    %cst_126 = arith.constant 0.000000e+00 : f32
    %469 = vector.broadcast %cst_126 : f32 to vector<16x1xf32>
    %470 = arith.subf %469, %467 : vector<16x1xf32>
    %cst_127 = arith.constant 1.000000e-01 : f32
    %471 = vector.broadcast %cst_127 : f32 to vector<16x1xf32>
    %472 = arith.mulf %471, %468 : vector<16x1xf32>
    %473 = arith.addf %470, %472 : vector<16x1xf32>
    %474 = arith.mulf %473, %358 : vector<16x1xf32>
    %475 = vector.shape_cast %474 : vector<16x1xf32> to vector<1x16x1xf32>
    %cst_128 = arith.constant dense<0.000000e+00> : vector<1xf32>
    %476 = vector.multi_reduction <add>, %475, %cst_128 [1, 2] : vector<1x16x1xf32> to vector<1xf32>
    %477 = vector.shape_cast %476 : vector<1xf32> to vector<1x1x1xf32>
    %478 = vector.extract %477[0, 0, 0] : f32 from vector<1x1x1xf32>
    %479 = vector.broadcast %478 : f32 to vector<1x1xf32>
    %480 = arith.divf %479, %429 : vector<1x1xf32>
    %481 = arith.mulf %468, %358 : vector<16x1xf32>
    %482 = vector.shape_cast %481 : vector<16x1xf32> to vector<1x16x1xf32>
    %cst_129 = arith.constant dense<0.000000e+00> : vector<1xf32>
    %483 = vector.multi_reduction <add>, %482, %cst_129 [1, 2] : vector<1x16x1xf32> to vector<1xf32>
    %484 = vector.shape_cast %483 : vector<1xf32> to vector<1x1x1xf32>
    %485 = vector.extract %484[0, 0, 0] : f32 from vector<1x1x1xf32>
    %486 = vector.broadcast %485 : f32 to vector<1x1xf32>
    %487 = arith.divf %486, %429 : vector<1x1xf32>
    %cst_130 = arith.constant 0.000000e+00 : f32
    %488 = vector.broadcast %cst_130 : f32 to vector<1x123xf32>
    %489 = tpu.concatenate %454, %464, %480, %487, %429, %488 in 1 : vector<1x1xf32>, vector<1x1xf32>, vector<1x1xf32>, vector<1x1xf32>, vector<1x1xf32>, vector<1x123xf32> -> vector<1x128xf32>
    %c0_131 = arith.constant 0 : index
    %c0_132 = arith.constant 0 : index
    %490 = vector.load %arg6[%c0_131, %c0_132] : memref<1x128xf32, #tpu.memory_space<vmem>>, vector<1x128xf32>
    tpu.vector_store %arg6[%c0_131, %c0_132], %489 {strides = array<i32>} : memref<1x128xf32, #tpu.memory_space<vmem>>, vector<1x128xf32>,
    return
  }
}

</mosaic_0001>

<bundles_post_ra>
// kernel: fused_forward.1
= control target key start
LH: loop header
LB: loop body
LE: loop exit
PB: predicated region body
PF: predicated region fallthrough
CT: control target
= control target key end

     0   :  { %v5199_v0 = vmov 0.0|0.0   ;;  %vm5200_vm0 = vmmov 0   ;;  %v5201_v3 = vmov 0.0   ;;  %vm40_vm1 = vcmask 1044480   ;;  %s5202_s16 = smov 32   ;;  %s5204_s15 = smov 64   ;;  %s6492_s2 = inlined_call_operand.vmem [shape: f32[240,384], index: 2, kind: input, shape index: {}]   ;;  %s6493_s0 = inlined_call_operand.vmem [shape: f32[18,21], index: 0, kind: input, shape index: {}]   ;;  %s6494_s3 = inlined_call_operand.vmem [shape: f32[160,32], index: 3, kind: input, shape index: {}]   ;;  %s6495_s5 = inlined_call_operand.vmem [shape: f32[232,64], index: 5, kind: input, shape index: {}]   ;;  %s6496_s1 = inlined_call_operand.vmem [shape: f32[16,7], index: 1, kind: input, shape index: {}]   ;;  %s6497_s4 = inlined_call_operand.vmem [shape: f32[232,64], index: 4, kind: input, shape index: {}]   ;;  %s6498_s6 = inlined_call_operand.vmem [shape: f32[1,128], index: 6, kind: output, shape index: {}]  }
   0x1   :  { %4524 = vmatprep.subr.bf16.mxu1 %v5199_v0  ;;  %v26_v1 = vld [vmem:[%s6492_s2] sm:$0xff]  ;;  %v27_v2 = vld [vmem:[%s6492_s2 + $0x18] sm:$0xff]  ;;  %4011 = vmatprep.mubr.msk.f32.mxu1 %vm5200_vm0, %v5201_v3  ;;  %v128_v5 = vld [vmem:[%s6492_s2 + $0x68] sm:$0xff]  ;;  %vm30_vm2 = vcmask 171008   ;;  %vm181_vm3 = vcmask 785408   ;;  %vm1967_vm4 = vcmask 1041408  }
   0x2   :  { %v4525_v4 = vpack.c.bf16 %v27_v2, %v26_v1  ;;  %4551 = vmatprep.subr.bf16.mxu0 %v5199_v0  ;;  %4044 = vmatprep.mubr.msk.f32.mxu0 %vm5200_vm0, %v5201_v3  ;;  %v131_v6 = vld [vmem:[%s6492_s2 + $0x80] sm:$0xff]  ;;  %v130_v8 = vld [vmem:[%s6492_s2 + $0x78] sm:$0xff]  ;;  %v129_v9 = vld [vmem:[%s6492_s2 + $0x70] sm:$0xff]  ;;  %vm1969_vm5 = vcmask 1043456   ;;  %vm1971_vm6 = vcmask 1045504   ;;  %vm1983_vm7 = vcmask 130048  }
   0x3   :  { %v127_v7 = vld [vmem:[%s6492_s2 + $0x60] sm:$0xff]  ;;  %v132_v10 = vld [vmem:[%s6492_s2 + $0x88] sm:$0xff]  ;;  %v28_v11 = vld [vmem:[%s6492_s2 + $0x30] sm:$0x1f]  ;;  %v4527_v12 = vpack.c.bf16 %v131_v6, %v128_v5  ;;  %vm2092_vm8 = vcmask 261120   ;;  %vm2100_vm9 = vcmask 392192  }
   0x4   :  { %4526 = vmatpush3.bf16.msra.mxu1 %v4525_v4  ;;  %v4552_v13 = vpack.c.bf16 %v132_v10, %v129_v9  ;;  %v134_v14 = vld [vmem:[%s6492_s2 + $0x98] sm:$0xff]  ;;  %v137_v15 = vld [vmem:[%s6492_s2 + $0xb0] sm:$0xff]  ;;  %v23_v16 = vld [vmem:[%s6493_s0] sm:$0xff]  ;;  %v4529_v17 = vpack.c.bf16 %v130_v8, %v127_v7  ;;  %s5205_s19 = smov 96   ;;  %vm2533_vm10 = vcmask 162816   ;;  %vm2772_vm11 = vcmask 523264  }
   0x5   :  { %4009 = vmatprep.subr.mxu1 %v5201_v3  ;;  %v135_v18 = vld [vmem:[%s6492_s2 + $0xa0] sm:$0xff]  ;;  %v138_v19 = vld [vmem:[%s6492_s2 + $0xb8] sm:$0xff]  ;;  %v4531_v20 = vpack.c.bf16 %v137_v15, %v134_v14  ;;  %v133_v21 = vld [vmem:[%s6492_s2 + $0x90] sm:$0xff]  ;;  %s5206_s13 = smov 4   ;;  %s5211_s23 = smov 123  }
   0x6   :  { %4553 = vmatpush3.bf16.msra.mxu0 %v4552_v13  ;;  %v136_v22 = vld [vmem:[%s6492_s2 + $0xa8] sm:$0xff]  ;;  %v4555_v23 = vpack.c.bf16 %v138_v19, %v135_v18  ;;  %v143_v25 = vld [vmem:[%s6492_s2 + $0xe0] sm:$0xff]  ;;  %v141_v26 = vld [vmem:[%s6492_s2 + $0xd0] sm:$0xff]  ;;  %s5212_s26 = smov 125   ;;  %s5213_s27 = smov 122  }
   0x7   :  { %v140_v24 = vld [vmem:[%s6492_s2 + $0xc8] sm:$0xff]  ;;  %4554 = vmatprep.subr.bf16.mxu0 %v5199_v0  ;;  %v4533_v29 = vpack.c.bf16 %v136_v22, %v133_v21  ;;  %v139_v31 = vld [vmem:[%s6492_s2 + $0xc0] sm:$0xff]  ;;  %v142_v32 = vld [vmem:[%s6492_s2 + $0xd8] sm:$0xff] }
   0x8   :  { %4010 = vmatpush3.msk.msra.mxu1 %vm40_vm1, %v28_v11  ;;  %v144_v27 = vld [vmem:[%s6492_s2 + $0xe8] sm:$0xff]  ;;  %v4535_v30 = vpack.c.bf16 %v143_v25, %v140_v24  ;;  %v146_v34 = vld [vmem:[%s6492_s2 + $0xf8] sm:$0xff]  ;;  %v149_v35 = vld [vmem:[%s6492_s2 + $0x110] sm:$0xff]  ;;  %v4537_v39 = vpack.c.bf16 %v142_v32, %v139_v31 }
   0x9   :  { %4012 = vmatmul.mubr.msk.f32.vlgmr.msra.gmra.mrb[0].mxu1 %vm30_vm2, %v23_v16  ;;  %4528 = vmatprep.subr.bf16.mxu1 %v4527_v12  ;;  %v24_v28 = vld [vmem:[%s6493_s0 + $0x8] sm:$0xff]  ;;  %v4558_v33 = vpack.c.bf16 %v144_v27, %v141_v26  ;;  %v147_v36 = vld [vmem:[%s6492_s2 + $0x100] sm:$0xff]  ;;  %v150_v37 = vld [vmem:[%s6492_s2 + $0x118] sm:$0xff]  ;;  %v4539_v40 = vpack.c.bf16 %v149_v35, %v146_v34 }
   0xa   :  { %4014 = vmatprep.mubr.msk.f32.mxu1 %vm5200_vm0, %v5201_v3  ;;  %4530 = vmatpush1.bf16.msra.mxu1 %v4529_v17  ;;  %v25_v38 = vld [vmem:[%s6493_s0 + $0x10] sm:$0x3]  ;;  %v148_v42 = vld [vmem:[%s6492_s2 + $0x108] sm:$0xff]  ;;  %v4561_v43 = vpack.c.bf16 %v150_v37, %v147_v36  ;;  %v155_v45 = vld [vmem:[%s6492_s2 + $0x140] sm:$0xff] }
   0xb   :  { %4532 = vmatprep.subr.bf16.mxu1 %v4531_v20  ;;  %4556 = vmatpush3.bf16.msra.mxu0 %v4555_v23  ;;  %v145_v41 = vld [vmem:[%s6492_s2 + $0xf0] sm:$0xff]  ;;  %v152_v44 = vld [vmem:[%s6492_s2 + $0x128] sm:$0xff]  ;;  %v151_v50 = vld [vmem:[%s6492_s2 + $0x120] sm:$0xff] }
   0xc   :  { %4557 = vmatprep.subr.bf16.mxu0 %v5199_v0  ;;  %v153_v46 = vld [vmem:[%s6492_s2 + $0x130] sm:$0xff]  ;;  %v156_v47 = vld [vmem:[%s6492_s2 + $0x148] sm:$0xff]  ;;  %v4541_v48 = vpack.c.bf16 %v148_v42, %v145_v41  ;;  %v4543_v49 = vpack.c.bf16 %v155_v45, %v152_v44  ;;  %v154_v51 = vld [vmem:[%s6492_s2 + $0x138] sm:$0xff] }
   0xd   :  { %4015 = vmatmul.mubr.msk.f32.gmra.mrb[2].mxu1 %vm30_vm2, %v24_v28  ;;  %v4564_v52 = vpack.c.bf16 %v156_v47, %v153_v46  ;;  %v4545_v53 = vpack.c.bf16 %v154_v51, %v151_v50  ;;  %v158_v54 = vld [vmem:[%s6492_s2 + $0x158] sm:$0xff]  ;;  %v161_v55 = vld [vmem:[%s6492_s2 + $0x170] sm:$0xff]  ;;  %v160_v58 = vld [vmem:[%s6492_s2 + $0x168] sm:$0xff] }
   0xe   :  { %4017 = vmatprep.mubr.msk.f32.mxu1 %vm5200_vm0, %v5201_v3  ;;  %4534 = vmatpush1.bf16.msra.mxu1 %v4533_v29  ;;  %v4547_v56 = vpack.c.bf16 %v161_v55, %v158_v54  ;;  %v157_v57 = vld [vmem:[%s6492_s2 + $0x150] sm:$0xff]  ;;  %v159_v60 = vld [vmem:[%s6492_s2 + $0x160] sm:$0xff]  ;;  %v162_v61 = vld [vmem:[%s6492_s2 + $0x178] sm:$0xff] }
   0xf   :  { %4536 = vmatprep.subr.bf16.mxu1 %v4535_v30  ;;  %4559 = vmatpush3.bf16.msra.mxu0 %v4558_v33  ;;  %v4549_v59 = vpack.c.bf16 %v160_v58, %v157_v57  ;;  %v4567_v62 = vpack.c.bf16 %v162_v61, %v159_v60  ;;  %v355_v63 = vld [vmem:[%s6492_s2 + $0x1a0] sm:$0xff]  ;;  %v358_v1 = vld [vmem:[%s6492_s2 + $0x1b8] sm:$0xff]  ;;  %v29_v4 = vld [vmem:[%s6492_s2 + $0x48] ss:$0 sm:$0xff] }
  0x10   :  { %4560 = vmatprep.subr.bf16.mxu0 %v5199_v0  ;;  %v5402_v2 = vpack.c.bf16 %v358_v1, %v355_v63  ;;  %v354_v5 = vld [vmem:[%s6492_s2 + $0x198] sm:$0xff]  ;;  %v357_v6 = vld [vmem:[%s6492_s2 + $0x1b0] sm:$0xff]  ;;  %v364_v9 = vld [vmem:[%s6492_s2 + $0x1e8] sm:$0xff] }
  0x11   :  { %4018 = vmatmul.mubr.msk.f32.gmra.mrb[4].mxu1 %vm30_vm2, %v25_v38  ;;  %v361_v8 = vld [vmem:[%s6492_s2 + $0x1d0] sm:$0xff]  ;;  %v356_v12 = vld [vmem:[%s6492_s2 + $0x1a8] sm:$0xff]  ;;  %v359_v13 = vld [vmem:[%s6492_s2 + $0x1c0] sm:$0xff]  ;;  %v5427_v14 = vpack.c.bf16 %v357_v6, %v354_v5  ;;  %vm2497_vm2 = vcmask 31744  }
  0x12   :  { %4538 = vmatpush1.bf16.msra.mxu1 %v4537_v39  ;;  %255 = vmatprep.mubr.f32.mxu1 %v5201_v3  ;;  %v5429_v16 = vpack.c.bf16 %v364_v9, %v361_v8  ;;  %v360_v17 = vld [vmem:[%s6492_s2 + $0x1c8] sm:$0xff]  ;;  %v363_v18 = vld [vmem:[%s6492_s2 + $0x1e0] sm:$0xff]  ;;  %v370_v20 = vld [vmem:[%s6492_s2 + $0x218] sm:$0xff]  ;;  %v5443_v22 = vpack.c.bf16 %v359_v13, %v356_v12 }
  0x13   :  { %4540 = vmatprep.subr.bf16.mxu1 %v4539_v40  ;;  %4562 = vmatpush3.bf16.msra.mxu0 %v4561_v43  ;;  %v367_v19 = vld [vmem:[%s6492_s2 + $0x200] sm:$0xff]  ;;  %v5448_v25 = vpack.c.bf16 %v363_v18, %v360_v17  ;;  %v366_v27 = vld [vmem:[%s6492_s2 + $0x1f8] sm:$0xff]  ;;  %v369_v28 = vld [vmem:[%s6492_s2 + $0x210] sm:$0xff] }
  0x14   :  { %4563 = vmatprep.subr.bf16.mxu0 %v5199_v0  ;;  %v5452_v26 = vpack.c.bf16 %v370_v20, %v367_v19  ;;  %v373_v30 = vld [vmem:[%s6492_s2 + $0x230] sm:$0xff]  ;;  %v376_v31 = vld [vmem:[%s6492_s2 + $0x248] sm:$0xff]  ;;  %v362_v33 = vld [vmem:[%s6492_s2 + $0x1d8] sm:$0xff]  ;;  %v5478_v37 = vpack.c.bf16 %v369_v28, %v366_v27 }
  0x15   :  { %v365_v34 = vld [vmem:[%s6492_s2 + $0x1f0] sm:$0xff]  ;;  %v5483_v38 = vpack.c.bf16 %v376_v31, %v373_v30  ;;  %v372_v39 = vld [vmem:[%s6492_s2 + $0x228] sm:$0xff]  ;;  %v375_v40 = vld [vmem:[%s6492_s2 + $0x240] sm:$0xff] }
  0x16   :  { %4542 = vmatpush1.bf16.msra.mxu1 %v4541_v48  ;;  %v379_v42 = vld [vmem:[%s6492_s2 + $0x260] sm:$0xff]  ;;  %v5495_v43 = vpack.c.bf16 %v365_v34, %v362_v33  ;;  %v382_v44 = vld [vmem:[%s6492_s2 + $0x278] sm:$0xff]  ;;  %v368_v45 = vld [vmem:[%s6492_s2 + $0x208] sm:$0xff]  ;;  %v5510_v47 = vpack.c.bf16 %v375_v40, %v372_v39 }
  0x17   :  { %4544 = vmatprep.subr.bf16.mxu1 %v4543_v49  ;;  %4565 = vmatpush3.bf16.msra.mxu0 %v4564_v52  ;;  %v371_v46 = vld [vmem:[%s6492_s2 + $0x220] sm:$0xff]  ;;  %v5514_v48 = vpack.c.bf16 %v382_v44, %v379_v42  ;;  %v378_v49 = vld [vmem:[%s6492_s2 + $0x258] sm:$0xff]  ;;  %v381_v50 = vld [vmem:[%s6492_s2 + $0x270] sm:$0xff] }
  0x18   :  { %4566 = vmatprep.subr.bf16.mxu0 %v5199_v0  ;;  %v385_v51 = vld [vmem:[%s6492_s2 + $0x290] sm:$0xff]  ;;  %v5526_v52 = vpack.c.bf16 %v371_v46, %v368_v45  ;;  %v374_v54 = vld [vmem:[%s6492_s2 + $0x238] sm:$0xff]  ;;  %v384_v58 = vld [vmem:[%s6492_s2 + $0x288] sm:$0xff] }
  0x19   :  { %v377_v55 = vld [vmem:[%s6492_s2 + $0x250] sm:$0xff]  ;;  %v380_v61 = vld [vmem:[%s6492_s2 + $0x268] sm:$0xff] }
  0x1a   :  { %4546 = vmatpush1.bf16.msra.mxu1 %v4545_v53  ;;  %v388_v53 = vld [vmem:[%s6492_s2 + $0x2a8] sm:$0xff]  ;;  %v5553_v60 = vpack.c.bf16 %v377_v55, %v374_v54  ;;  %v389_v5 = vld [vmem:[%s6492_s2 + $0x2b0] sm:$0xff] }
  0x1b   :  { %4548 = vmatprep.subr.bf16.mxu1 %v4547_v56  ;;  %4568 = vmatpush3.bf16.msra.mxu0 %v4567_v62  ;;  %v5541_v56 = vpack.c.bf16 %v381_v50, %v378_v49  ;;  %v5544_v57 = vpack.c.bf16 %v388_v53, %v385_v51  ;;  %v383_v62 = vld [vmem:[%s6492_s2 + $0x280] sm:$0xff] }
  0x1c   :  { %4593 = vmatprep.subr.bf16.mxu0 %v5199_v0  ;;  %v5567_v1 = vpack.c.bf16 %v383_v62, %v380_v61  ;;  %v3672_v30 = vld [vmem:[%s6492_s2 + $0x2b8] ss:$8 sm:$0x7] }
  0x1e   :  { %4550 = vmatpush1.bf16.msra.mxu1 %v4549_v59  ;;  %v387_v59 = vld [vmem:[%s6492_s2 + $0x2a0] sm:$0xff] }
  0x1f   :  { %4570 = vmatprep.subr.bf16.mxu1 %v5402_v2  ;;  %v5563_v63 = vpack.c.bf16 %v387_v59, %v384_v58 }
  0xdc   :  { %v110_v7 = vpop.f32.mrb[0].mxu1 }
  0xdd   :  { %v111_v10 = vadd.f32 %v110_v7, %v29_v4  ;;  %v4013_v11 = vpop.f32.mrb[1].mxu1  ;;  %v166_v7 = vlaneseq }
  0xdf   :  { %v124_v15 = vmax.f32 %v111_v10, 0.0  ;;  %v167_v8 = vshrl.u32 %v166_v7, 7  ;;  %v3665_v10 = vld [vmem:[%s6492_s2 + $0x180] ss:$8 sm:$0x7] }
  0xe0   :  { %v115_v21 = vpop.f32.mrb[2].mxu1 }
  0xe1   :  { %3666 = vmatmul.mubr.msk.f32.vlgmr.msra.gmra.mrb[6].mxu1 %vm181_vm3, %v124_v15  ;;  %4045 = vmatmul.mubr.msk.f32.vlgmr.msra.gmra.mrb[0].mxu0 %vm181_vm3, %v124_v15  ;;  %v116_v23 = vadd.f32 %v115_v21, %v29_v4  ;;  %v4016_v24 = vpop.f32.mrb[3].mxu1  ;;  %v176_v9 = vsub.s32 2, %v167_v8  ;;  %v172_v31 = vsub.s32 1, %v167_v8 }
  0xe2   :  { %4572 = vmatpush1.bf16.msra.mxu1 %v5427_v14  ;;  %261 = vmatprep.mubr.f32.mxu1 %v5201_v3 }
  0xe3   :  { %4574 = vmatprep.subr.bf16.mxu1 %v5429_v16  ;;  %v125_v29 = vmax.f32 %v116_v23, 0.0  ;;  %4047 = vmatprep.mubr.msk.f32.mxu0 %vm5200_vm0, %v5201_v3  ;;  %v177_v17 = vrot.slane %v3665_v10, %v176_v9  ;;  %v5631_v34 = vrot.slane %v3672_v30, %v172_v31  ;;  %v5645_v58 = vrot.slane %v3672_v30, %v176_v9 }
  0xe4   :  { %v120_v32 = vpop.f32.mrb[4].mxu1  ;;  %4595 = vmatpush3.bf16.msra.mxu0 %v5443_v22 }
  0xe5   :  { %v121_v35 = vadd.f32 %v120_v32, %v29_v4  ;;  %v4019_v36 = vpop.f32.mrb[5].mxu1  ;;  %3667 = vmatmul.mubr.msk.f32.gmra.mrb[8].mxu1 %vm181_vm3, %v125_v29  ;;  %4048 = vmatmul.mubr.msk.f32.gmra.mrb[2].mxu0 %vm181_vm3, %v125_v29  ;;  %v386_v4 = vld [vmem:[%s6492_s2 + $0x298] sm:$0xff]  ;;  %v168_v29 = vsub.s32 0, %v167_v8 }
  0xe6   :  { %4576 = vmatpush1.bf16.msra.mxu1 %v5448_v25  ;;  %4050 = vmatprep.mubr.msk.f32.mxu0 %vm5200_vm0, %v5201_v3  ;;  %v5578_v6 = vpack.c.bf16 %v389_v5, %v386_v4 }
  0xe7   :  { %4578 = vmatprep.subr.bf16.mxu1 %v5452_v26  ;;  %v126_v41 = vmax.f32 %v121_v35, 0.0  ;;  %267 = vmatprep.mubr.f32.mxu1 %v5201_v3  ;;  %v5627_v32 = vrot.slane %v3665_v10, %v168_v29  ;;  %v5629_v33 = vrot.slane %v3672_v30, %v168_v29  ;;  %v5633_v35 = vrot.slane %v3665_v10, %v172_v31 }
  0xe8   :  { %4596 = vmatprep.subr.bf16.mxu0 %v5199_v0 }
  0xe9   :  { %4051 = vmatmul.mubr.msk.f32.gmra.mrb[4].mxu0 %vm181_vm3, %v126_v41  ;;  %3668 = vmatmul.mubr.msk.f32.gmra.mrb[10].mxu1 %vm181_vm3, %v126_v41 }
  0xea   :  { %4580 = vmatpush1.bf16.msra.mxu1 %v5478_v37  ;;  %475 = vmatprep.mubr.f32.mxu1 %v5201_v3 }
  0xeb   :  { %4582 = vmatprep.subr.bf16.mxu1 %v5483_v38  ;;  %4598 = vmatpush3.bf16.msra.mxu0 %v5495_v43 }
  0xec   :  { %4599 = vmatprep.subr.bf16.mxu0 %v5199_v0  ;;  %4077 = vmatprep.mubr.msk.f32.mxu0 %vm5200_vm0, %v5201_v3 }
  0xee   :  { %4584 = vmatpush1.bf16.msra.mxu1 %v5510_v47 }
  0xef   :  { %4586 = vmatprep.subr.bf16.mxu1 %v5514_v48  ;;  %4601 = vmatpush3.bf16.msra.mxu0 %v5526_v52 }
  0xf0   :  { %4602 = vmatprep.subr.bf16.mxu0 %v5199_v0 }
  0xf2   :  { %4588 = vmatpush1.bf16.msra.mxu1 %v5541_v56 }
  0xf3   :  { %4590 = vmatprep.subr.bf16.mxu1 %v5544_v57  ;;  %4604 = vmatpush3.bf16.msra.mxu0 %v5553_v60 }
  0xf4   :  { %4605 = vmatprep.subr.bf16.mxu0 %v5199_v0 }
  0xf6   :  { %4592 = vmatpush1.bf16.msra.mxu1 %v5563_v63 }
  0xf7   :  { %4607 = vmatpush3.bf16.msra.mxu0 %v5567_v1  ;;  %4612 = vmatprep.subr.bf16.mxu1 %v5402_v2 }
  0xf8   :  { %4608 = vmatprep.subr.bf16.mxu0 %v5199_v0 }
  0xf9   :  { %476 = vmatmul.mubr.f32.vlgmr.msra.gmra.mrb[12].mxu1 %v5201_v3 }
  0xfa   :  { %4614 = vmatpush1.bf16.msra.mxu1 %v5427_v14  ;;  %640 = vmatprep.mubr.f32.mxu1 %v5201_v3 }
  0xfb   :  { %4610 = vmatpush3.bf16.msra.mxu0 %v5578_v6  ;;  %4616 = vmatprep.subr.bf16.mxu1 %v5429_v16 }
  0xfc   :  { %4635 = vmatprep.subr.bf16.mxu0 %v5199_v0 }
  0xfe   :  { %4078 = vmatmul.mubr.f32.vlgmr.msra.gmra.mrb[6].mxu0 %v5201_v3  ;;  %4618 = vmatpush1.bf16.msra.mxu1 %v5448_v25 }
  0xff   :  { %4637 = vmatpush3.bf16.msra.mxu0 %v5443_v22  ;;  %4620 = vmatprep.subr.bf16.mxu1 %v5452_v26 }
 0x100   :  { %4638 = vmatprep.subr.bf16.mxu0 %v5199_v0  ;;  %4104 = vmatprep.mubr.msk.f32.mxu0 %vm5200_vm0, %v5201_v3 }
 0x102   :  { %4622 = vmatpush1.bf16.msra.mxu1 %v5478_v37 }
 0x103   :  { %4640 = vmatpush3.bf16.msra.mxu0 %v5495_v43  ;;  %4624 = vmatprep.subr.bf16.mxu1 %v5483_v38 }
 0x104   :  { %4641 = vmatprep.subr.bf16.mxu0 %v5199_v0 }
 0x106   :  { %4626 = vmatpush1.bf16.msra.mxu1 %v5510_v47 }
 0x107   :  { %4643 = vmatpush3.bf16.msra.mxu0 %v5526_v52  ;;  %4628 = vmatprep.subr.bf16.mxu1 %v5514_v48 }
 0x108   :  { %4644 = vmatprep.subr.bf16.mxu0 %v5199_v0 }
 0x10a   :  { %4630 = vmatpush1.bf16.msra.mxu1 %v5541_v56 }
 0x10b   :  { %4646 = vmatpush3.bf16.msra.mxu0 %v5553_v60  ;;  %4632 = vmatprep.subr.bf16.mxu1 %v5544_v57 }
 0x10c   :  { %4647 = vmatprep.subr.bf16.mxu0 %v5199_v0 }
 0x10e   :  { %4634 = vmatpush1.bf16.msra.mxu1 %v5563_v63 }
 0x10f   :  { %4649 = vmatpush3.bf16.msra.mxu0 %v5567_v1  ;;  %4654 = vmatprep.subr.bf16.mxu1 %v5402_v2 }
 0x110   :  { %4650 = vmatprep.subr.bf16.mxu0 %v5199_v0 }
 0x113   :  { %4652 = vmatpush3.bf16.msra.mxu0 %v5578_v6 }
 0x114   :  { %4677 = vmatprep.subr.bf16.mxu0 %v5199_v0 }
 0x1b4   :  { %v257_v11 = vpop.f32.mrb[6].mxu1  ;;  %v340_v12 = vpop.f32.mrb[0].mxu0 }
 0x1b5   :  { %v259_v13 = vpop.f32.mrb[7].mxu1  ;;  %v4046_v15 = vpop.f32.mrb[1].mxu0  ;;  %v5636_v39 = vadd.f32 %v257_v11, %v5627_v32  ;;  %v5648_v5 = vadd.f32 %v340_v12, %v177_v17 }
 0x1b6   :  { %v5642_v45 = vadd.f32 %v259_v13, %v5633_v35 }
 0x1b8   :  { %v5616_v18 = vpop.f32.mrb[8].mxu1  ;;  %v345_v19 = vpop.f32.mrb[2].mxu0 }
 0x1b9   :  { %v5618_v20 = vadd.f32 %v345_v19, %v177_v17  ;;  %v5620_v21 = vpop.f32.mrb[9].mxu1  ;;  %v4049_v23 = vpop.f32.mrb[3].mxu0 }
 0x1bc   :  { %v350_v24 = vpop.f32.mrb[4].mxu0 }
 0x1bd   :  { %v5622_v27 = vadd.f32 %v350_v24, %v177_v17  ;;  %v4052_v28 = vpop.f32.mrb[5].mxu0 }
 0x1cc   :  { %v477_v36 = vpop.f32.mrb[12].mxu1 }
 0x1cd   :  { %v478_v40 = vadd.f32 %v477_v36, %v5629_v33  ;;  %v479_v41 = vpop.f32.mrb[13].mxu1 }
 0x1ce   :  { %v480_v42 = vadd.f32 %v479_v41, %v5631_v34 }
 0x1cf   :  { %v552_v44 = vadd.f32 %v478_v40, %v5636_v39 }
 0x1d0   :  { %v559_v50 = vadd.f32 %v480_v42, %v5642_v45 }
 0x1d1   :  { %v3673_v46 = vmul.f32 -1.442695, %v552_v44  ;;  %v548_v49 = vpop.f32.mrb[6].mxu0 }
 0x1d2   :  { %v4079_v51 = vpop.f32.mrb[7].mxu0  ;;  %v3674_v53 = vmul.f32 -1.442695, %v559_v50  ;;  %v549_v62 = vadd.f32 %v548_v49, %v5645_v58 }
 0x1d3   :  { %5086 = vpow2.f32 %v3673_v46 }
 0x1d4   :  { %5088 = vpow2.f32 %v3674_v53 }
 0x1dd   :  { %v5087_v54 = vpop.eup %5086 }
 0x1de   :  { %v556_v55 = vadd.f32 1.0, %v5087_v54  ;;  %v5089_v59 = vpop.eup %5088 }
 0x1df   :  { %v563_v61 = vadd.f32 1.0, %v5089_v59 }
 0x1e0   :  { %5090 = vrcp.f32 %v556_v55 }
 0x1e1   :  { %5092 = vrcp.f32 %v563_v61 }
 0x1ea   :  { %v5091_v4 = vpop.eup %5090 }
 0x1eb   :  { %v566_v7 = vmul.f32 %v5091_v4, %v549_v62  ;;  %v5093_v10 = vpop.eup %5092 }
 0x1ec   :  { %v569_v11 = vsub.f32 1.0, %v5093_v10  ;;  %v571_v19 = vmul.f32 0.0, %v5093_v10 }
 0x1ed   :  { %v567_v8 = vadd.f32 %v566_v7, %v5648_v5 }
 0x1ef   :  { %5094 = vtanh.f32 %v567_v8 }
 0x1f9   :  { %v5095_v13 = vpop.eup %5094 }
 0x1fa   :  { %v570_v15 = vmul.f32 %v5095_v13, %v569_v11 }
 0x1fc   :  { %v5651_v23 = vadd.f32 %v571_v19, %v570_v15 }
 0x1fe   :  { %3675 = vmatmul.mubr.msk.f32.vlgmr.msra.gmra.mrb[14].mxu1 %vm181_vm3, %v5651_v23  ;;  %4105 = vmatmul.mubr.msk.f32.vlgmr.msra.gmra.mrb[8].mxu0 %vm181_vm3, %v5651_v23  ;;  %v745_v62 = vrot.slane %v5651_v23, 6 }
 0x1ff   :  { %4656 = vmatpush1.bf16.msra.mxu1 %v5427_v14  ;;  %4679 = vmatpush3.bf16.msra.mxu0 %v5443_v22 }
 0x200   :  { %4658 = vmatprep.subr.bf16.mxu1 %v5429_v16  ;;  %4680 = vmatprep.subr.bf16.mxu0 %v5199_v0 }
 0x201   :  { %817 = vmatprep.mubr.f32.mxu1 %v5201_v3  ;;  %4131 = vmatprep.mubr.msk.f32.mxu0 %vm5200_vm0, %v5201_v3 }
 0x203   :  { %4660 = vmatpush1.bf16.msra.mxu1 %v5448_v25  ;;  %4682 = vmatpush3.bf16.msra.mxu0 %v5495_v43 }
 0x204   :  { %4662 = vmatprep.subr.bf16.mxu1 %v5452_v26  ;;  %4683 = vmatprep.subr.bf16.mxu0 %v5199_v0 }
 0x207   :  { %4664 = vmatpush1.bf16.msra.mxu1 %v5478_v37  ;;  %4685 = vmatpush3.bf16.msra.mxu0 %v5526_v52 }
 0x208   :  { %4666 = vmatprep.subr.bf16.mxu1 %v5483_v38  ;;  %4686 = vmatprep.subr.bf16.mxu0 %v5199_v0 }
 0x20b   :  { %4668 = vmatpush1.bf16.msra.mxu1 %v5510_v47  ;;  %4688 = vmatpush3.bf16.msra.mxu0 %v5553_v60 }
 0x20c   :  { %4670 = vmatprep.subr.bf16.mxu1 %v5514_v48  ;;  %4689 = vmatprep.subr.bf16.mxu0 %v5199_v0 }
 0x20f   :  { %4672 = vmatpush1.bf16.msra.mxu1 %v5541_v56  ;;  %4691 = vmatpush3.bf16.msra.mxu0 %v5567_v1 }
 0x210   :  { %4674 = vmatprep.subr.bf16.mxu1 %v5544_v57  ;;  %4692 = vmatprep.subr.bf16.mxu0 %v5199_v0 }
 0x213   :  { %4676 = vmatpush1.bf16.msra.mxu1 %v5563_v63  ;;  %4694 = vmatpush3.bf16.msra.mxu0 %v5578_v6 }
 0x214   :  { %4696 = vmatprep.subr.bf16.mxu1 %v5402_v2  ;;  %4719 = vmatprep.subr.bf16.mxu0 %v5199_v0 }
 0x2d1   :  { %v642_v9 = vpop.f32.mrb[14].mxu1  ;;  %v713_v12 = vpop.f32.mrb[8].mxu0 }
 0x2d2   :  { %v643_v17 = vadd.f32 %v642_v9, %v5629_v33  ;;  %v644_v24 = vpop.f32.mrb[15].mxu1  ;;  %v4106_v28 = vpop.f32.mrb[9].mxu0  ;;  %v714_v50 = vadd.f32 %v713_v12, %v5645_v58 }
 0x2d3   :  { %v645_v29 = vadd.f32 %v644_v24, %v5631_v34 }
 0x2d4   :  { %v718_v30 = vrot.slane %v643_v17, 6  ;;  %v738_v53 = vrot.slane %v714_v50, 6 }
 0x2d5   :  { %v728_v31 = vrot.slane %v645_v29, 6 }
 0x2d6   :  { %v720_v36 = vadd.f32 %v718_v30, %v5636_v39 }
 0x2d7   :  { %v730_v41 = vadd.f32 %v728_v31, %v5642_v45 }
 0x2d8   :  { %v3677_v40 = vmul.f32 -1.442695, %v720_v36 }
 0x2d9   :  { %v3678_v42 = vmul.f32 -1.442695, %v730_v41 }
 0x2da   :  { %5096 = vpow2.f32 %v3677_v40 }
 0x2db   :  { %5098 = vpow2.f32 %v3678_v42 }
 0x2e4   :  { %v5097_v44 = vpop.eup %5096 }
 0x2e5   :  { %v724_v46 = vadd.f32 1.0, %v5097_v44  ;;  %v5099_v49 = vpop.eup %5098 }
 0x2e6   :  { %v734_v51 = vadd.f32 1.0, %v5099_v49 }
 0x2e7   :  { %5100 = vrcp.f32 %v724_v46 }
 0x2e8   :  { %5102 = vrcp.f32 %v734_v51 }
 0x2f1   :  { %v5101_v54 = vpop.eup %5100 }
 0x2f2   :  { %v740_v55 = vmul.f32 %v5101_v54, %v738_v53  ;;  %v5103_v61 = vpop.eup %5102 }
 0x2f3   :  { %v743_v4 = vsub.f32 1.0, %v5103_v61  ;;  %v747_v8 = vmul.f32 %v5103_v61, %v745_v62 }
 0x2f4   :  { %v741_v59 = vadd.f32 %v740_v55, %v5648_v5 }
 0x2f6   :  { %5104 = vtanh.f32 %v741_v59 }
 0x300   :  { %v5105_v7 = vpop.eup %5104 }
 0x301   :  { %v744_v10 = vmul.f32 %v5105_v7, %v743_v4 }
 0x303   :  { %v5691_v11 = vadd.f32 %v747_v8, %v744_v10 }
 0x305   :  { %v750_v13 = vrot.slane %v5691_v11, 2  ;;  %v922_v53 = vrot.slane %v5691_v11, 6  ;;  %v1968_v10 = vsel %vm1967_vm4, %v5651_v23, %v5691_v11 }
 0x307   :  { %3679 = vmatmul.mubr.msk.f32.vlgmr.msra.gmra.mrb[16].mxu1 %vm181_vm3, %v750_v13  ;;  %4132 = vmatmul.mubr.msk.f32.vlgmr.msra.gmra.mrb[10].mxu0 %vm181_vm3, %v750_v13 }
 0x308   :  { %4698 = vmatpush1.bf16.msra.mxu1 %v5427_v14  ;;  %4721 = vmatpush3.bf16.msra.mxu0 %v5443_v22 }
 0x309   :  { %4700 = vmatprep.subr.bf16.mxu1 %v5429_v16  ;;  %4722 = vmatprep.subr.bf16.mxu0 %v5199_v0 }
 0x30a   :  { %994 = vmatprep.mubr.f32.mxu1 %v5201_v3  ;;  %4158 = vmatprep.mubr.msk.f32.mxu0 %vm5200_vm0, %v5201_v3 }
 0x30c   :  { %4702 = vmatpush1.bf16.msra.mxu1 %v5448_v25  ;;  %4724 = vmatpush3.bf16.msra.mxu0 %v5495_v43 }
 0x30d   :  { %4704 = vmatprep.subr.bf16.mxu1 %v5452_v26  ;;  %4725 = vmatprep.subr.bf16.mxu0 %v5199_v0 }
 0x310   :  { %4706 = vmatpush1.bf16.msra.mxu1 %v5478_v37  ;;  %4727 = vmatpush3.bf16.msra.mxu0 %v5526_v52 }
 0x311   :  { %4708 = vmatprep.subr.bf16.mxu1 %v5483_v38  ;;  %4728 = vmatprep.subr.bf16.mxu0 %v5199_v0 }
 0x314   :  { %4710 = vmatpush1.bf16.msra.mxu1 %v5510_v47  ;;  %4730 = vmatpush3.bf16.msra.mxu0 %v5553_v60 }
 0x315   :  { %4712 = vmatprep.subr.bf16.mxu1 %v5514_v48  ;;  %4731 = vmatprep.subr.bf16.mxu0 %v5199_v0 }
 0x318   :  { %4714 = vmatpush1.bf16.msra.mxu1 %v5541_v56  ;;  %4733 = vmatpush3.bf16.msra.mxu0 %v5567_v1 }
 0x319   :  { %4716 = vmatprep.subr.bf16.mxu1 %v5544_v57  ;;  %4734 = vmatprep.subr.bf16.mxu0 %v5199_v0 }
 0x31c   :  { %4718 = vmatpush1.bf16.msra.mxu1 %v5563_v63  ;;  %4736 = vmatpush3.bf16.msra.mxu0 %v5578_v6 }
 0x31d   :  { %4738 = vmatprep.subr.bf16.mxu1 %v5402_v2  ;;  %4761 = vmatprep.subr.bf16.mxu0 %v5199_v0 }
 0x3da   :  { %v819_v15 = vpop.f32.mrb[16].mxu1  ;;  %v890_v19 = vpop.f32.mrb[10].mxu0 }
 0x3db   :  { %v820_v9 = vadd.f32 %v819_v15, %v5629_v33  ;;  %v821_v12 = vpop.f32.mrb[17].mxu1  ;;  %v4133_v17 = vpop.f32.mrb[11].mxu0  ;;  %v891_v49 = vadd.f32 %v890_v19, %v5645_v58 }
 0x3dc   :  { %v822_v24 = vadd.f32 %v821_v12, %v5631_v34 }
 0x3dd   :  { %v895_v28 = vrot.slane %v820_v9, 4  ;;  %v915_v50 = vrot.slane %v891_v49, 4 }
 0x3de   :  { %v905_v29 = vrot.slane %v822_v24, 4 }
 0x3df   :  { %v897_v30 = vadd.f32 %v895_v28, %v5636_v39 }
 0x3e0   :  { %v907_v31 = vadd.f32 %v905_v29, %v5642_v45 }
 0x3e1   :  { %v3681_v36 = vmul.f32 -1.442695, %v897_v30 }
 0x3e2   :  { %v3682_v40 = vmul.f32 -1.442695, %v907_v31 }
 0x3e3   :  { %5106 = vpow2.f32 %v3681_v36 }
 0x3e4   :  { %5108 = vpow2.f32 %v3682_v40 }
 0x3ed   :  { %v5107_v41 = vpop.eup %5106 }
 0x3ee   :  { %v5109_v42 = vpop.eup %5108  ;;  %v901_v44 = vadd.f32 1.0, %v5107_v41 }
 0x3ef   :  { %v911_v46 = vadd.f32 1.0, %v5109_v42 }
 0x3f0   :  { %5110 = vrcp.f32 %v901_v44 }
 0x3f1   :  { %5112 = vrcp.f32 %v911_v46 }
 0x3fa   :  { %v5111_v51 = vpop.eup %5110 }
 0x3fb   :  { %v5113_v54 = vpop.eup %5112  ;;  %v917_v55 = vmul.f32 %v5111_v51, %v915_v50 }
 0x3fc   :  { %v924_v59 = vmul.f32 %v5113_v54, %v922_v53  ;;  %v920_v62 = vsub.f32 1.0, %v5113_v54 }
 0x3fd   :  { %v918_v61 = vadd.f32 %v917_v55, %v5648_v5 }
 0x3ff   :  { %5114 = vtanh.f32 %v918_v61 }
 0x409   :  { %v5115_v4 = vpop.eup %5114 }
 0x40a   :  { %v921_v7 = vmul.f32 %v5115_v4, %v920_v62 }
 0x40c   :  { %v925_v8 = vadd.f32 %v924_v59, %v921_v7 }
 0x40e   :  { %v927_v13 = vrot.slane %v925_v8, 4  ;;  %v5734_v15 = vsel %vm1969_vm5, %v1968_v10, %v925_v8  ;;  %v1099_v51 = vrot.slane %v925_v8, 6  ;;  %v5806_v10 = vadd.f32 %v5616_v18, %v5627_v32 }
 0x410   :  { %3683 = vmatmul.mubr.msk.f32.vlgmr.msra.gmra.mrb[18].mxu1 %vm181_vm3, %v927_v13  ;;  %4159 = vmatmul.mubr.msk.f32.vlgmr.msra.gmra.mrb[12].mxu0 %vm181_vm3, %v927_v13 }
 0x411   :  { %4740 = vmatpush1.bf16.msra.mxu1 %v5427_v14  ;;  %4763 = vmatpush3.bf16.msra.mxu0 %v5443_v22 }
 0x412   :  { %4742 = vmatprep.subr.bf16.mxu1 %v5429_v16  ;;  %4764 = vmatprep.subr.bf16.mxu0 %v5199_v0 }
 0x413   :  { %1171 = vmatprep.mubr.f32.mxu1 %v5201_v3  ;;  %4185 = vmatprep.mubr.msk.f32.mxu0 %vm5200_vm0, %v5201_v3 }
 0x415   :  { %4744 = vmatpush1.bf16.msra.mxu1 %v5448_v25  ;;  %4766 = vmatpush3.bf16.msra.mxu0 %v5495_v43 }
 0x416   :  { %4746 = vmatprep.subr.bf16.mxu1 %v5452_v26  ;;  %4767 = vmatprep.subr.bf16.mxu0 %v5199_v0 }
 0x419   :  { %4748 = vmatpush1.bf16.msra.mxu1 %v5478_v37  ;;  %4769 = vmatpush3.bf16.msra.mxu0 %v5526_v52 }
 0x41a   :  { %4750 = vmatprep.subr.bf16.mxu1 %v5483_v38  ;;  %4770 = vmatprep.subr.bf16.mxu0 %v5199_v0 }
 0x41d   :  { %4752 = vmatpush1.bf16.msra.mxu1 %v5510_v47  ;;  %4772 = vmatpush3.bf16.msra.mxu0 %v5553_v60 }
 0x41e   :  { %4754 = vmatprep.subr.bf16.mxu1 %v5514_v48  ;;  %4773 = vmatprep.subr.bf16.mxu0 %v5199_v0 }
 0x421   :  { %4756 = vmatpush1.bf16.msra.mxu1 %v5541_v56  ;;  %4775 = vmatpush3.bf16.msra.mxu0 %v5567_v1 }
 0x422   :  { %4758 = vmatprep.subr.bf16.mxu1 %v5544_v57  ;;  %4776 = vmatprep.subr.bf16.mxu0 %v5199_v0 }
 0x425   :  { %4760 = vmatpush1.bf16.msra.mxu1 %v5563_v63  ;;  %4778 = vmatpush3.bf16.msra.mxu0 %v5578_v6 }
 0x426   :  { %4780 = vmatprep.subr.bf16.mxu1 %v5402_v2  ;;  %4803 = vmatprep.subr.bf16.mxu0 %v5199_v0 }
 0x4e3   :  { %v996_v23 = vpop.f32.mrb[18].mxu1  ;;  %v1067_v11 = vpop.f32.mrb[12].mxu0 }
 0x4e4   :  { %v997_v19 = vadd.f32 %v996_v23, %v5629_v33  ;;  %v998_v9 = vpop.f32.mrb[19].mxu1  ;;  %v4160_v12 = vpop.f32.mrb[13].mxu0  ;;  %v1068_v46 = vadd.f32 %v1067_v11, %v5645_v58 }
 0x4e5   :  { %v999_v17 = vadd.f32 %v998_v9, %v5631_v34  ;;  %v5813_v9 = vadd.f32 %v5620_v21, %v5633_v35 }
 0x4e6   :  { %v1072_v24 = vrot.slane %v997_v19, 2  ;;  %v1092_v49 = vrot.slane %v1068_v46, 2 }
 0x4e7   :  { %v1082_v28 = vrot.slane %v999_v17, 2 }
 0x4e8   :  { %v1074_v29 = vadd.f32 %v1072_v24, %v5636_v39 }
 0x4e9   :  { %v1084_v30 = vadd.f32 %v1082_v28, %v5642_v45 }
 0x4ea   :  { %v3685_v31 = vmul.f32 -1.442695, %v1074_v29 }
 0x4eb   :  { %v3686_v36 = vmul.f32 -1.442695, %v1084_v30 }
 0x4ec   :  { %5116 = vpow2.f32 %v3685_v31 }
 0x4ed   :  { %5118 = vpow2.f32 %v3686_v36 }
 0x4f6   :  { %v5117_v40 = vpop.eup %5116 }
 0x4f7   :  { %v5119_v41 = vpop.eup %5118  ;;  %v1078_v42 = vadd.f32 1.0, %v5117_v40 }
 0x4f8   :  { %v1088_v44 = vadd.f32 1.0, %v5119_v41 }
 0x4f9   :  { %5120 = vrcp.f32 %v1078_v42 }
 0x4fa   :  { %5122 = vrcp.f32 %v1088_v44 }
 0x503   :  { %v5121_v50 = vpop.eup %5120 }
 0x504   :  { %v5123_v53 = vpop.eup %5122  ;;  %v1094_v54 = vmul.f32 %v5121_v50, %v1092_v49 }
 0x505   :  { %v1101_v39 = vmul.f32 %v5123_v53, %v1099_v51  ;;  %v1097_v55 = vsub.f32 1.0, %v5123_v53 }
 0x506   :  { %v1095_v45 = vadd.f32 %v1094_v54, %v5648_v5 }
 0x508   :  { %5124 = vtanh.f32 %v1095_v45 }
 0x512   :  { %v5125_v59 = vpop.eup %5124 }
 0x513   :  { %v1098_v61 = vmul.f32 %v5125_v59, %v1097_v55 }
 0x515   :  { %v1102_v62 = vadd.f32 %v1101_v39, %v1098_v61 }
 0x517   :  { %v1104_v4 = vrot.slane %v1102_v62, 6  ;;  %v5773_v7 = vsel %vm1971_vm6, %v5734_v15, %v1102_v62 }
 0x519   :  { %3687 = vmatmul.mubr.msk.f32.vlgmr.msra.gmra.mrb[20].mxu1 %vm181_vm3, %v1104_v4  ;;  %4186 = vmatmul.mubr.msk.f32.vlgmr.msra.gmra.mrb[14].mxu0 %vm181_vm3, %v1104_v4 }
 0x51a   :  { %4782 = vmatpush1.bf16.msra.mxu1 %v5427_v14  ;;  %4805 = vmatpush3.bf16.msra.mxu0 %v5443_v22 }
 0x51b   :  { %4784 = vmatprep.subr.bf16.mxu1 %v5429_v16  ;;  %4806 = vmatprep.subr.bf16.mxu0 %v5199_v0 }
 0x51c   :  { %1337 = vmatprep.mubr.f32.mxu1 %v5201_v3  ;;  %4212 = vmatprep.mubr.msk.f32.mxu0 %vm5200_vm0, %v5201_v3 }
 0x51e   :  { %4786 = vmatpush1.bf16.msra.mxu1 %v5448_v25  ;;  %4808 = vmatpush3.bf16.msra.mxu0 %v5495_v43 }
 0x51f   :  { %4788 = vmatprep.subr.bf16.mxu1 %v5452_v26  ;;  %4809 = vmatprep.subr.bf16.mxu0 %v5199_v0 }
 0x522   :  { %4790 = vmatpush1.bf16.msra.mxu1 %v5478_v37  ;;  %4811 = vmatpush3.bf16.msra.mxu0 %v5526_v52 }
 0x523   :  { %4792 = vmatprep.subr.bf16.mxu1 %v5483_v38  ;;  %4812 = vmatprep.subr.bf16.mxu0 %v5199_v0 }
 0x526   :  { %4794 = vmatpush1.bf16.msra.mxu1 %v5510_v47  ;;  %4814 = vmatpush3.bf16.msra.mxu0 %v5553_v60 }
 0x527   :  { %4796 = vmatprep.subr.bf16.mxu1 %v5514_v48  ;;  %4815 = vmatprep.subr.bf16.mxu0 %v5199_v0 }
 0x52a   :  { %4798 = vmatpush1.bf16.msra.mxu1 %v5541_v56  ;;  %4817 = vmatpush3.bf16.msra.mxu0 %v5567_v1 }
 0x52b   :  { %4800 = vmatprep.subr.bf16.mxu1 %v5544_v57  ;;  %4818 = vmatprep.subr.bf16.mxu0 %v5199_v0 }
 0x52e   :  { %4802 = vmatpush1.bf16.msra.mxu1 %v5563_v63  ;;  %4820 = vmatpush3.bf16.msra.mxu0 %v5578_v6 }
 0x52f   :  { %4822 = vmatprep.subr.bf16.mxu1 %v5402_v2  ;;  %4845 = vmatprep.subr.bf16.mxu0 %v5199_v0 }
 0x5ec   :  { %v1173_v5 = vpop.f32.mrb[20].mxu1  ;;  %v1244_v8 = vpop.f32.mrb[14].mxu0 }
 0x5ed   :  { %v1174_v13 = vadd.f32 %v1173_v5, %v5629_v33  ;;  %v1175_v15 = vpop.f32.mrb[21].mxu1  ;;  %v4187_v23 = vpop.f32.mrb[15].mxu0  ;;  %v1245_v31 = vadd.f32 %v1244_v8, %v5645_v58 }
 0x5ee   :  { %v1176_v11 = vadd.f32 %v1175_v15, %v5631_v34 }
 0x5ef   :  { %v1248_v19 = vadd.f32 %v1174_v13, %v5806_v10 }
 0x5f0   :  { %v1255_v17 = vadd.f32 %v1176_v11, %v5813_v9 }
 0x5f1   :  { %v3689_v12 = vmul.f32 -1.442695, %v1248_v19 }
 0x5f2   :  { %v3690_v24 = vmul.f32 -1.442695, %v1255_v17 }
 0x5f3   :  { %5126 = vpow2.f32 %v3689_v12 }
 0x5f4   :  { %5128 = vpow2.f32 %v3690_v24 }
 0x5fd   :  { %v5127_v18 = vpop.eup %5126 }
 0x5fe   :  { %v1252_v28 = vadd.f32 1.0, %v5127_v18  ;;  %v5129_v29 = vpop.eup %5128 }
 0x5ff   :  { %v1259_v30 = vadd.f32 1.0, %v5129_v29 }
 0x600   :  { %5130 = vrcp.f32 %v1252_v28 }
 0x601   :  { %5132 = vrcp.f32 %v1259_v30 }
 0x60a   :  { %v5131_v36 = vpop.eup %5130 }
 0x60b   :  { %v1262_v40 = vmul.f32 %v5131_v36, %v1245_v31  ;;  %v5133_v21 = vpop.eup %5132 }
 0x60c   :  { %v1265_v42 = vsub.f32 1.0, %v5133_v21  ;;  %v1268_v49 = vmul.f32 %v5133_v21, %v1104_v4 }
 0x60d   :  { %v1263_v41 = vadd.f32 %v1262_v40, %v5618_v20 }
 0x60f   :  { %5134 = vtanh.f32 %v1263_v41 }
 0x619   :  { %v5135_v44 = vpop.eup %5134 }
 0x61a   :  { %v1266_v46 = vmul.f32 %v5135_v44, %v1265_v42 }
 0x61c   :  { %v5818_v50 = vadd.f32 %v1268_v49, %v1266_v46 }
 0x61e   :  { %3691 = vmatmul.mubr.msk.f32.vlgmr.msra.gmra.mrb[22].mxu1 %vm181_vm3, %v5818_v50  ;;  %4213 = vmatmul.mubr.msk.f32.vlgmr.msra.gmra.mrb[16].mxu0 %vm181_vm3, %v5818_v50  ;;  %v1442_v29 = vrot.slane %v5818_v50, 6 }
 0x61f   :  { %4824 = vmatpush1.bf16.msra.mxu1 %v5427_v14  ;;  %4847 = vmatpush3.bf16.msra.mxu0 %v5443_v22 }
 0x620   :  { %4826 = vmatprep.subr.bf16.mxu1 %v5429_v16  ;;  %4848 = vmatprep.subr.bf16.mxu0 %v5199_v0 }
 0x621   :  { %1514 = vmatprep.mubr.f32.mxu1 %v5201_v3  ;;  %4239 = vmatprep.mubr.msk.f32.mxu0 %vm5200_vm0, %v5201_v3 }
 0x623   :  { %4828 = vmatpush1.bf16.msra.mxu1 %v5448_v25  ;;  %4850 = vmatpush3.bf16.msra.mxu0 %v5495_v43 }
 0x624   :  { %4830 = vmatprep.subr.bf16.mxu1 %v5452_v26  ;;  %4851 = vmatprep.subr.bf16.mxu0 %v5199_v0 }
 0x627   :  { %4832 = vmatpush1.bf16.msra.mxu1 %v5478_v37  ;;  %4853 = vmatpush3.bf16.msra.mxu0 %v5526_v52 }
 0x628   :  { %4834 = vmatprep.subr.bf16.mxu1 %v5483_v38  ;;  %4854 = vmatprep.subr.bf16.mxu0 %v5199_v0 }
 0x62b   :  { %4836 = vmatpush1.bf16.msra.mxu1 %v5510_v47  ;;  %4856 = vmatpush3.bf16.msra.mxu0 %v5553_v60 }
 0x62c   :  { %4838 = vmatprep.subr.bf16.mxu1 %v5514_v48  ;;  %4857 = vmatprep.subr.bf16.mxu0 %v5199_v0 }
 0x62f   :  { %4840 = vmatpush1.bf16.msra.mxu1 %v5541_v56  ;;  %4859 = vmatpush3.bf16.msra.mxu0 %v5567_v1 }
 0x630   :  { %4842 = vmatprep.subr.bf16.mxu1 %v5544_v57  ;;  %4860 = vmatprep.subr.bf16.mxu0 %v5199_v0 }
 0x633   :  { %4844 = vmatpush1.bf16.msra.mxu1 %v5563_v63  ;;  %4862 = vmatpush3.bf16.msra.mxu0 %v5578_v6 }
 0x634   :  { %4864 = vmatprep.subr.bf16.mxu1 %v5402_v2  ;;  %4887 = vmatprep.subr.bf16.mxu0 %v5199_v0 }
 0x6f1   :  { %v1339_v51 = vpop.f32.mrb[22].mxu1  ;;  %v1410_v53 = vpop.f32.mrb[16].mxu0 }
 0x6f2   :  { %v1340_v54 = vadd.f32 %v1339_v51, %v5629_v33  ;;  %v1341_v39 = vpop.f32.mrb[23].mxu1  ;;  %v4214_v45 = vpop.f32.mrb[17].mxu0  ;;  %v1411_v11 = vadd.f32 %v1410_v53, %v5645_v58 }
 0x6f3   :  { %v1342_v55 = vadd.f32 %v1341_v39, %v5631_v34 }
 0x6f4   :  { %v1415_v59 = vrot.slane %v1340_v54, 6  ;;  %v1435_v12 = vrot.slane %v1411_v11, 6 }
 0x6f5   :  { %v1425_v61 = vrot.slane %v1342_v55, 6 }
 0x6f6   :  { %v1417_v62 = vadd.f32 %v1415_v59, %v5806_v10 }
 0x6f7   :  { %v1427_v5 = vadd.f32 %v1425_v61, %v5813_v9 }
 0x6f8   :  { %v3693_v4 = vmul.f32 -1.442695, %v1417_v62 }
 0x6f9   :  { %v3694_v8 = vmul.f32 -1.442695, %v1427_v5 }
 0x6fa   :  { %5136 = vpow2.f32 %v3693_v4 }
 0x6fb   :  { %5138 = vpow2.f32 %v3694_v8 }
 0x704   :  { %v5137_v13 = vpop.eup %5136 }
 0x705   :  { %v1421_v15 = vadd.f32 1.0, %v5137_v13  ;;  %v5139_v23 = vpop.eup %5138 }
 0x706   :  { %v1431_v19 = vadd.f32 1.0, %v5139_v23 }
 0x707   :  { %5140 = vrcp.f32 %v1421_v15 }
 0x708   :  { %5142 = vrcp.f32 %v1431_v19 }
 0x711   :  { %v5141_v17 = vpop.eup %5140 }
 0x712   :  { %v1437_v24 = vmul.f32 %v5141_v17, %v1435_v12  ;;  %v5143_v28 = vpop.eup %5142 }
 0x713   :  { %v1440_v30 = vsub.f32 1.0, %v5143_v28  ;;  %v1444_v36 = vmul.f32 %v5143_v28, %v1442_v29 }
 0x714   :  { %v1438_v18 = vadd.f32 %v1437_v24, %v5618_v20 }
 0x716   :  { %5144 = vtanh.f32 %v1438_v18 }
 0x720   :  { %v5145_v31 = vpop.eup %5144 }
 0x721   :  { %v1441_v40 = vmul.f32 %v5145_v31, %v1440_v30 }
 0x723   :  { %v5858_v41 = vadd.f32 %v1444_v36, %v1441_v40 }
 0x725   :  { %v1447_v21 = vrot.slane %v5858_v41, 2  ;;  %v1619_v23 = vrot.slane %v5858_v41, 6  ;;  %v1973_v30 = vsel %vm1967_vm4, %v5818_v50, %v5858_v41  ;;  %vm3451_vm4 = vcmask 7168  }
 0x727   :  { %3695 = vmatmul.mubr.msk.f32.vlgmr.msra.gmra.mrb[24].mxu1 %vm181_vm3, %v1447_v21  ;;  %4240 = vmatmul.mubr.msk.f32.vlgmr.msra.gmra.mrb[18].mxu0 %vm181_vm3, %v1447_v21 }
 0x728   :  { %4866 = vmatpush1.bf16.msra.mxu1 %v5427_v14  ;;  %4889 = vmatpush3.bf16.msra.mxu0 %v5443_v22 }
 0x729   :  { %4868 = vmatprep.subr.bf16.mxu1 %v5429_v16  ;;  %4890 = vmatprep.subr.bf16.mxu0 %v5199_v0 }
 0x72a   :  { %1691 = vmatprep.mubr.f32.mxu1 %v5201_v3  ;;  %4266 = vmatprep.mubr.msk.f32.mxu0 %vm5200_vm0, %v5201_v3 }
 0x72c   :  { %4870 = vmatpush1.bf16.msra.mxu1 %v5448_v25  ;;  %4892 = vmatpush3.bf16.msra.mxu0 %v5495_v43 }
 0x72d   :  { %4872 = vmatprep.subr.bf16.mxu1 %v5452_v26  ;;  %4893 = vmatprep.subr.bf16.mxu0 %v5199_v0 }
 0x730   :  { %4874 = vmatpush1.bf16.msra.mxu1 %v5478_v37  ;;  %4895 = vmatpush3.bf16.msra.mxu0 %v5526_v52 }
 0x731   :  { %4876 = vmatprep.subr.bf16.mxu1 %v5483_v38  ;;  %4896 = vmatprep.subr.bf16.mxu0 %v5199_v0 }
 0x734   :  { %4878 = vmatpush1.bf16.msra.mxu1 %v5510_v47  ;;  %4898 = vmatpush3.bf16.msra.mxu0 %v5553_v60 }
 0x735   :  { %4880 = vmatprep.subr.bf16.mxu1 %v5514_v48  ;;  %4899 = vmatprep.subr.bf16.mxu0 %v5199_v0 }
 0x738   :  { %4882 = vmatpush1.bf16.msra.mxu1 %v5541_v56  ;;  %4901 = vmatpush3.bf16.msra.mxu0 %v5567_v1 }
 0x739   :  { %4884 = vmatprep.subr.bf16.mxu1 %v5544_v57  ;;  %4902 = vmatprep.subr.bf16.mxu0 %v5199_v0 }
 0x73c   :  { %4886 = vmatpush1.bf16.msra.mxu1 %v5563_v63  ;;  %4904 = vmatpush3.bf16.msra.mxu0 %v5578_v6 }
 0x73d   :  { %4906 = vmatprep.subr.bf16.mxu1 %v5402_v2  ;;  %4929 = vmatprep.subr.bf16.mxu0 %v5199_v0 }
 0x7fa   :  { %v1516_v42 = vpop.f32.mrb[24].mxu1  ;;  %v1587_v44 = vpop.f32.mrb[18].mxu0 }
 0x7fb   :  { %v1517_v46 = vadd.f32 %v1516_v42, %v5629_v33  ;;  %v1518_v49 = vpop.f32.mrb[25].mxu1  ;;  %v4241_v51 = vpop.f32.mrb[19].mxu0  ;;  %v1588_v8 = vadd.f32 %v1587_v44, %v5645_v58 }
 0x7fc   :  { %v1519_v53 = vadd.f32 %v1518_v49, %v5631_v34  ;;  %v1976_v51 = vld [vmem:[%s6494_s3] sm:$0xff] }
 0x7fd   :  { %v1592_v54 = vrot.slane %v1517_v46, 4  ;;  %v1612_v13 = vrot.slane %v1588_v8, 4  ;;  %v2076_v8 = vld [vmem:[%s6494_s3 + $0x30] sm:$0xff] }
 0x7fe   :  { %v1602_v39 = vrot.slane %v1519_v53, 4  ;;  %v1977_v53 = vld [vmem:[%s6494_s3 + $0x8] sm:$0xff] }
 0x7ff   :  { %v1594_v45 = vadd.f32 %v1592_v54, %v5806_v10 }
 0x800   :  { %v1604_v55 = vadd.f32 %v1602_v39, %v5813_v9  ;;  %v4948_v39 = vpack.c.bf16 %v1977_v53, %v1976_v51 }
 0x801   :  { %v3697_v59 = vmul.f32 -1.442695, %v1594_v45 }
 0x802   :  { %v3698_v61 = vmul.f32 -1.442695, %v1604_v55 }
 0x803   :  { %5146 = vpow2.f32 %v3697_v59  ;;  %v5971_v59 = vld [vmem:[%s6493_s0 + $0x8] sm:$0xff] }
 0x804   :  { %5148 = vpow2.f32 %v3698_v61  ;;  %v5980_v61 = vld [vmem:[%s6493_s0 + $0x10] sm:$0x3] }
 0x80d   :  { %v5147_v2 = vpop.eup %5146 }
 0x80e   :  { %v5149_v62 = vpop.eup %5148  ;;  %v1598_v4 = vadd.f32 1.0, %v5147_v2  ;;  %v2073_v2 = vld [vmem:[%s6494_s3 + $0x18] sm:$0xff] }
 0x80f   :  { %v1608_v5 = vadd.f32 1.0, %v5149_v62  ;;  %v2074_v62 = vld [vmem:[%s6494_s3 + $0x20] sm:$0xff] }
 0x810   :  { %5150 = vrcp.f32 %v1598_v4  ;;  %v2075_v4 = vld [vmem:[%s6494_s3 + $0x28] sm:$0xff] }
 0x811   :  { %5152 = vrcp.f32 %v1608_v5  ;;  %v4951_v5 = vpack.c.bf16 %v2074_v62, %v2073_v2  ;;  %v3711_v62 = vld [vmem:[%s6494_s3 + $0x48] ss:$0 sm:$0xff] }
 0x81a   :  { %v5151_v15 = vpop.eup %5150 }
 0x81b   :  { %v5153_v11 = vpop.eup %5152  ;;  %v1614_v19 = vmul.f32 %v5151_v15, %v1612_v13  ;;  %v4954_v13 = vpack.c.bf16 %v2076_v8, %v2075_v4  ;;  %v2077_v15 = vld [vmem:[%s6494_s3 + $0x38] sm:$0xff] }
 0x81c   :  { %v1621_v12 = vmul.f32 %v5153_v11, %v1619_v23  ;;  %v1617_v24 = vsub.f32 1.0, %v5153_v11  ;;  %v2078_v23 = vld [vmem:[%s6494_s3 + $0x40] sm:$0xff]  ;;  %v2294_v4 = vld [vmem:[%s6494_s3 + $0x78] sm:$0xff] }
 0x81d   :  { %v1615_v17 = vadd.f32 %v1614_v19, %v5618_v20  ;;  %v4957_v11 = vpack.c.bf16 %v2078_v23, %v2077_v15  ;;  %v5055_v19 = vadd.f32 %v5629_v33, %v5627_v32  ;;  %v2193_v32 = vld [vmem:[%s6494_s3 + $0x50] sm:$0xff] }
 0x81f   :  { %5154 = vtanh.f32 %v1615_v17 }
 0x829   :  { %v5155_v18 = vpop.eup %5154 }
 0x82a   :  { %v1618_v28 = vmul.f32 %v5155_v18, %v1617_v24  ;;  %v5057_v24 = vadd.f32 %v5631_v34, %v5633_v35 }
 0x82c   :  { %v1622_v29 = vadd.f32 %v1621_v12, %v1618_v28 }
 0x82e   :  { %v1624_v31 = vrot.slane %v1622_v29, 4  ;;  %v5901_v36 = vsel %vm1969_vm5, %v1973_v30, %v1622_v29  ;;  %v1796_v41 = vrot.slane %v1622_v29, 6  ;;  %v3707_v30 = vld [vmem:[%s6494_s3 + $0x10] ss:$0 sm:$0xff] }
 0x830   :  { %3699 = vmatmul.mubr.msk.f32.vlgmr.msra.gmra.mrb[26].mxu1 %vm181_vm3, %v1624_v31  ;;  %4267 = vmatmul.mubr.msk.f32.vlgmr.msra.gmra.mrb[20].mxu0 %vm181_vm3, %v1624_v31 }
 0x831   :  { %4908 = vmatpush1.bf16.msra.mxu1 %v5427_v14  ;;  %4931 = vmatpush3.bf16.msra.mxu0 %v5443_v22 }
 0x832   :  { %4910 = vmatprep.subr.bf16.mxu1 %v5429_v16  ;;  %4932 = vmatprep.subr.bf16.mxu0 %v5199_v0 }
 0x833   :  { %1868 = vmatprep.mubr.f32.mxu1 %v5201_v3  ;;  %4293 = vmatprep.mubr.msk.f32.mxu0 %vm5200_vm0, %v5201_v3 }
 0x835   :  { %4912 = vmatpush1.bf16.msra.mxu1 %v5448_v25  ;;  %4934 = vmatpush3.bf16.msra.mxu0 %v5495_v43 }
 0x836   :  { %4914 = vmatprep.subr.bf16.mxu1 %v5452_v26  ;;  %4935 = vmatprep.subr.bf16.mxu0 %v5199_v0 }
 0x839   :  { %4916 = vmatpush1.bf16.msra.mxu1 %v5478_v37  ;;  %4937 = vmatpush3.bf16.msra.mxu0 %v5526_v52 }
 0x83a   :  { %4918 = vmatprep.subr.bf16.mxu1 %v5483_v38  ;;  %4938 = vmatprep.subr.bf16.mxu0 %v5199_v0 }
 0x83d   :  { %4920 = vmatpush1.bf16.msra.mxu1 %v5510_v47  ;;  %4940 = vmatpush3.bf16.msra.mxu0 %v5553_v60 }
 0x83e   :  { %4922 = vmatprep.subr.bf16.mxu1 %v5514_v48  ;;  %4941 = vmatprep.subr.bf16.mxu0 %v5199_v0 }
 0x841   :  { %4924 = vmatpush1.bf16.msra.mxu1 %v5541_v56  ;;  %4943 = vmatpush3.bf16.msra.mxu0 %v5567_v1 }
 0x842   :  { %4926 = vmatprep.subr.bf16.mxu1 %v5544_v57  ;;  %4944 = vmatprep.subr.bf16.mxu0 %v5199_v0 }
 0x845   :  { %4928 = vmatpush1.bf16.msra.mxu1 %v5563_v63  ;;  %4946 = vmatpush3.bf16.msra.mxu0 %v5578_v6 }
 0x846   :  { %4947 = vmatprep.subr.bf16.mxu1 %v5199_v0  ;;  %4959 = vmatprep.subr.bf16.mxu0 %v5199_v0 }
 0x903   :  { %v1693_v14 = vpop.f32.mrb[26].mxu1  ;;  %v1764_v16 = vpop.f32.mrb[20].mxu0 }
 0x904   :  { %v1694_v22 = vadd.f32 %v1693_v14, %v5629_v33  ;;  %v1695_v25 = vpop.f32.mrb[27].mxu1  ;;  %v4268_v26 = vpop.f32.mrb[21].mxu0  ;;  %v1765_v6 = vadd.f32 %v1764_v16, %v5645_v58  ;;  %v2194_v33 = vld [vmem:[%s6494_s3 + $0x58] sm:$0xff] }
 0x905   :  { %v1696_v37 = vadd.f32 %v1695_v25, %v5631_v34  ;;  %v4960_v34 = vpack.c.bf16 %v2194_v33, %v2193_v32 }
 0x906   :  { %v1769_v38 = vrot.slane %v1694_v22, 2  ;;  %v1789_v50 = vrot.slane %v1765_v6, 2 }
 0x907   :  { %v1779_v43 = vrot.slane %v1696_v37, 2 }
 0x908   :  { %v1771_v47 = vadd.f32 %v1769_v38, %v5806_v10 }
 0x909   :  { %v1781_v48 = vadd.f32 %v1779_v43, %v5813_v9 }
 0x90a   :  { %v3701_v52 = vmul.f32 -1.442695, %v1771_v47 }
 0x90b   :  { %v3702_v56 = vmul.f32 -1.442695, %v1781_v48 }
 0x90c   :  { %5156 = vpow2.f32 %v3701_v52 }
 0x90d   :  { %5158 = vpow2.f32 %v3702_v56 }
 0x916   :  { %v5157_v57 = vpop.eup %5156 }
 0x917   :  { %v5159_v60 = vpop.eup %5158  ;;  %v1775_v63 = vadd.f32 1.0, %v5157_v57 }
 0x918   :  { %v1785_v1 = vadd.f32 1.0, %v5159_v60 }
 0x919   :  { %5160 = vrcp.f32 %v1775_v63 }
 0x91a   :  { %5162 = vrcp.f32 %v1785_v1 }
 0x923   :  { %v5161_v40 = vpop.eup %5160 }
 0x924   :  { %v5163_v21 = vpop.eup %5162  ;;  %v1791_v42 = vmul.f32 %v5161_v40, %v1789_v50 }
 0x925   :  { %v1798_v10 = vmul.f32 %v5163_v21, %v1796_v41  ;;  %v1794_v44 = vsub.f32 1.0, %v5163_v21 }
 0x926   :  { %v1792_v9 = vadd.f32 %v1791_v42, %v5618_v20  ;;  %v5962_v20 = vld [vmem:[%s6493_s0] sm:$0xff]  ;;  %s5208_s0 = smov 127  }
 0x928   :  { %5164 = vtanh.f32 %v1792_v9 }
 0x932   :  { %v5165_v46 = vpop.eup %5164 }
 0x933   :  { %v1795_v49 = vmul.f32 %v5165_v46, %v1794_v44 }
 0x935   :  { %v1799_v54 = vadd.f32 %v1798_v10, %v1795_v49 }
 0x937   :  { %v5944_v45 = vrot.slane %v1799_v54, 6  ;;  %v5948_v55 = vsel %vm1971_vm6, %v5901_v36, %v1799_v54 }
 0x939   :  { %3703 = vmatmul.mubr.msk.f32.vlgmr.msra.gmra.mrb[10].mxu1 %vm181_vm3, %v5944_v45  ;;  %4294 = vmatmul.mubr.msk.f32.vlgmr.msra.gmra.mrb[22].mxu0 %vm181_vm3, %v5944_v45  ;;  %vm2504_vm3 = vcmask 25600  }
 0x93a   :  { %4949 = vmatpush3.bf16.msra.mxu1 %v4948_v39  ;;  %4300 = vmatprep.mubr.msk.f32.mxu1 %vm5200_vm0, %v5201_v3  ;;  %v2195_v39 = vld [vmem:[%s6494_s3 + $0x60] sm:$0xff] }
 0x93b   :  { %4950 = vmatprep.subr.bf16.mxu1 %v5199_v0  ;;  %4338 = vmatprep.mubr.msk.f32.mxu0 %vm5200_vm0, %v5201_v3 }
 0x93c   :  { %4961 = vmatpush3.bf16.msra.mxu0 %v4960_v34 }
 0x93d   :  { %4301 = vmatmul.mubr.msk.f32.vlgmr.msra.gmra.mrb[28].mxu1 %vm1983_vm7, %v5962_v20  ;;  %4962 = vmatprep.subr.bf16.mxu0 %v5199_v0 }
 0x93e   :  { %4303 = vmatprep.mubr.msk.f32.mxu1 %vm5200_vm0, %v5201_v3  ;;  %4952 = vmatpush3.bf16.msra.mxu1 %v4951_v5  ;;  %v2295_v5 = vld [vmem:[%s6494_s3 + $0x80] sm:$0xff] }
 0x93f   :  { %4953 = vmatprep.subr.bf16.mxu1 %v5199_v0  ;;  %v4966_v23 = vpack.c.bf16 %v2295_v5, %v2294_v4  ;;  %v2633_v5 = vld [vmem:[%s6495_s5 + $0x40] sm:$0xff] }
 0x941   :  { %4304 = vmatmul.mubr.msk.f32.gmra.mrb[30].mxu1 %vm1983_vm7, %v5971_v59 }
 0x942   :  { %4306 = vmatprep.mubr.msk.f32.mxu1 %vm5200_vm0, %v5201_v3  ;;  %4955 = vmatpush3.bf16.msra.mxu1 %v4954_v13 }
 0x943   :  { %4956 = vmatprep.subr.bf16.mxu1 %v5199_v0 }
 0x945   :  { %4307 = vmatmul.mubr.msk.f32.gmra.mrb[32].mxu1 %vm1983_vm7, %v5980_v61 }
 0x946   :  { %4321 = vmatprep.mubr.msk.f32.mxu1 %vm5200_vm0, %v5201_v3  ;;  %4958 = vmatpush3.bf16.msra.mxu1 %v4957_v11 }
 0x947   :  { %4971 = vmatprep.subr.bf16.mxu1 %v5199_v0 }
 0xa0c   :  { %v1870_v12 = vpop.f32.mrb[10].mxu1  ;;  %v1941_v17 = vpop.f32.mrb[22].mxu0 }
 0xa0d   :  { %v5056_v18 = vadd.f32 %v5055_v19, %v1870_v12  ;;  %v1872_v28 = vpop.f32.mrb[11].mxu1  ;;  %v4295_v29 = vpop.f32.mrb[23].mxu0  ;;  %v1942_v6 = vadd.f32 %v1941_v17, %v5645_v58  ;;  %v2296_v19 = vld [vmem:[%s6494_s3 + $0x88] sm:$0xff]  ;;  %v2297_v12 = vld [vmem:[%s6494_s3 + $0x90] sm:$0xff] }
 0xa0e   :  { %v5058_v36 = vadd.f32 %v5057_v24, %v1872_v28  ;;  %v4969_v28 = vpack.c.bf16 %v2297_v12, %v2296_v19  ;;  %v2759_v12 = vld [vmem:[%s6495_s5 + $0x58] sm:$0xff] }
 0xa0f   :  { %v3705_v31 = vmul.f32 -1.442695, %v5056_v18 }
 0xa10   :  { %v2056_v14 = vpop.f32.mrb[28].mxu1  ;;  %v3706_v25 = vmul.f32 -1.442695, %v5058_v36 }
 0xa11   :  { %5166 = vpow2.f32 %v3705_v31  ;;  %v2057_v16 = vadd.f32 %v3707_v30, %v2056_v14  ;;  %v4302_v22 = vpop.f32.mrb[29].mxu1 }
 0xa12   :  { %5168 = vpow2.f32 %v3706_v25 }
 0xa13   :  { %v2070_v35 = vmax.f32 %v2057_v16, 0.0  ;;  %v3715_v16 = vld [vmem:[%s6494_s3 + $0x70] ss:$0 sm:$0xff] }
 0xa14   :  { %v2061_v26 = vpop.f32.mrb[30].mxu1 }
 0xa15   :  { %v2062_v37 = vadd.f32 %v3707_v30, %v2061_v26  ;;  %2083 = vrot.lane.b32.xlu0 %v2070_v35, %s5202_s16  ;;  %v4305_v38 = vpop.f32.mrb[31].mxu1 }
 0xa17   :  { %v2071_v43 = vmax.f32 %v2062_v37, 0.0 }
 0xa18   :  { %v2066_v47 = vpop.f32.mrb[32].mxu1 }
 0xa19   :  { %v2067_v48 = vadd.f32 %v3707_v30, %v2066_v47  ;;  %2085 = vrot.lane.b32.xlu0 %v2071_v43, %s5202_s16  ;;  %v4308_v52 = vpop.f32.mrb[33].mxu1 }
 0xa1a   :  { %v2525_v52 = vld [vmem:[%s6495_s5] sm:$0xff] }
 0xa1b   :  { %v5167_v56 = vpop.eup %5166  ;;  %v2072_v57 = vmax.f32 %v2067_v48, 0.0 }
 0xa1c   :  { %v1949_v60 = vadd.f32 1.0, %v5167_v56  ;;  %v5169_v63 = vpop.eup %5168  ;;  %v2526_v56 = vld [vmem:[%s6495_s5 + $0x8] sm:$0xff] }
 0xa1d   :  { %2087 = vrot.lane.b32.xlu1 %v2072_v57, %s5202_s16  ;;  %v1956_v1 = vadd.f32 1.0, %v5169_v63  ;;  %v4972_v57 = vpack.c.bf16 %v2526_v56, %v2525_v52  ;;  %v3719_v63 = vld [vmem:[%s6494_s3 + $0x98] ss:$0 sm:$0xff] }
 0xa1e   :  { %5170 = vrcp.f32 %v1949_v60  ;;  %v2527_v60 = vld [vmem:[%s6495_s5 + $0x10] sm:$0xf] }
 0xa1f   :  { %5172 = vrcp.f32 %v1956_v1 }
 0xa28   :  { %v5171_v50 = vpop.eup %5170 }
 0xa29   :  { %v1959_v40 = vmul.f32 %v5171_v50, %v1942_v6  ;;  %v5173_v21 = vpop.eup %5172 }
 0xa2a   :  { %v1962_v42 = vsub.f32 1.0, %v5173_v21  ;;  %v1965_v44 = vmul.f32 %v5173_v21, %v5944_v45  ;;  %v2196_v45 = vld [vmem:[%s6494_s3 + $0x68] sm:$0xff]  ;;  %s5203_s3 = smov 16  }
 0xa2b   :  { %v1960_v41 = vadd.f32 %v1959_v40, %v5622_v27  ;;  %v4963_v2 = vpack.c.bf16 %v2196_v45, %v2195_v39  ;;  %v2629_v39 = vld [vmem:[%s6495_s5 + $0x20] sm:$0xff]  ;;  %v2630_v45 = vld [vmem:[%s6495_s5 + $0x28] sm:$0xff] }
 0xa2d   :  { %5174 = vtanh.f32 %v1960_v41  ;;  %4964 = vmatpush3.bf16.msra.mxu0 %v4963_v2  ;;  %v2631_v2 = vld [vmem:[%s6495_s5 + $0x30] sm:$0xff] }
 0xa2e   :  { %4965 = vmatprep.subr.bf16.mxu0 %v5199_v0 }
 0xa37   :  { %v5175_v10 = vpop.eup %5174 }
 0xa38   :  { %v1963_v9 = vmul.f32 %v5175_v10, %v1962_v42 }
 0xa3a   :  { %v6027_v46 = vadd.f32 %v1965_v44, %v1963_v9 }
 0xa87   :  { %v2084_v49 = vpop.permute.xlu0 %2083 }
 0xa88   :  { %v2093_v58 = vsel %vm2092_vm8, %v5773_v7, %v2084_v49 }
 0xa89   :  { %4322 = vmatmul.mubr.msk.f32.vlgmr.msra.gmra.mrb[34].mxu1 %vm2100_vm9, %v2093_v58 }
 0xa8a   :  { %4324 = vmatprep.mubr.msk.f32.mxu1 %vm5200_vm0, %v5201_v3  ;;  %4973 = vmatpush3.bf16.msra.mxu1 %v4972_v57 }
 0xa8b   :  { %v2086_v27 = vpop.permute.xlu0 %2085  ;;  %4368 = vmatprep.subr.mxu1 %v5201_v3 }
 0xa8c   :  { %v2094_v51 = vsel %vm2092_vm8, %v5948_v55, %v2086_v27  ;;  %v6122_v27 = vld [vmem:[%s6496_s1] sm:$0xff] }
 0xa8d   :  { %4325 = vmatmul.mubr.msk.f32.gmra.mrb[36].mxu1 %vm2100_vm9, %v2094_v51 }
 0xa8e   :  { %4327 = vmatprep.mubr.msk.f32.mxu1 %vm5200_vm0, %v5201_v3  ;;  %4369 = vmatpush3.msk.msra.mxu1 %vm1969_vm5, %v2527_v60 }
 0xa8f   :  { %v2088_v53 = vpop.permute.xlu1 %2087  ;;  %4983 = vmatprep.subr.bf16.mxu1 %v5199_v0 }
 0xa90   :  { %v2095_v54 = vsel %vm2092_vm8, %v6027_v46, %v2088_v53 }
 0xa91   :  { %4328 = vmatmul.mubr.msk.f32.gmra.mrb[38].mxu1 %vm2100_vm9, %v2095_v54 }
 0xa92   :  { %4370 = vmatprep.mubr.msk.f32.mxu1 %vm5200_vm0, %v5201_v3 }
 0xb5c   :  { %v2176_v8 = vpop.f32.mrb[34].mxu1 }
 0xb5d   :  { %v2177_v13 = vadd.f32 %v3711_v62, %v2176_v8  ;;  %v4323_v15 = vpop.f32.mrb[35].mxu1  ;;  %v2634_v8 = vld [vmem:[%s6495_s5 + $0x48] sm:$0xff] }
 0xb5e   :  { %v3723_v15 = vld [vmem:[%s6495_s5 + $0x18] ss:$0 sm:$0xff] }
 0xb5f   :  { %v2190_v11 = vmax.f32 %v2177_v13, 0.0  ;;  %v4981_v13 = vpack.c.bf16 %v2634_v8, %v2633_v5 }
 0xb60   :  { %v2181_v17 = vpop.f32.mrb[36].mxu1 }
 0xb61   :  { %v2182_v24 = vadd.f32 %v3711_v62, %v2181_v17  ;;  %v4326_v18 = vpop.f32.mrb[37].mxu1  ;;  %4339 = vmatmul.mubr.msk.f32.vlgmr.msra.gmra.mrb[24].mxu0 %vm2092_vm8, %v2190_v11  ;;  %v2760_v17 = vld [vmem:[%s6495_s5 + $0x60] sm:$0xff] }
 0xb62   :  { %4341 = vmatprep.mubr.msk.f32.mxu0 %vm5200_vm0, %v5201_v3  ;;  %4967 = vmatpush3.bf16.msra.mxu0 %v4966_v23  ;;  %v4984_v18 = vpack.c.bf16 %v2760_v17, %v2759_v12 }
 0xb63   :  { %v2191_v29 = vmax.f32 %v2182_v24, 0.0  ;;  %4968 = vmatprep.subr.bf16.mxu0 %v5199_v0 }
 0xb64   :  { %v2186_v30 = vpop.f32.mrb[38].mxu1 }
 0xb65   :  { %v2187_v31 = vadd.f32 %v3711_v62, %v2186_v30  ;;  %v4329_v36 = vpop.f32.mrb[39].mxu1  ;;  %4342 = vmatmul.mubr.msk.f32.gmra.mrb[26].mxu0 %vm2092_vm8, %v2191_v29  ;;  %v4975_v62 = vpack.c.bf16 %v2630_v45, %v2629_v39  ;;  %v2762_v29 = vld [vmem:[%s6495_s5 + $0x70] sm:$0xff]  ;;  %v2870_v39 = vld [vmem:[%s6495_s5 + $0xc8] sm:$0xff] }
 0xb66   :  { %4344 = vmatprep.mubr.msk.f32.mxu0 %vm5200_vm0, %v5201_v3  ;;  %4970 = vmatpush3.bf16.msra.mxu0 %v4969_v28  ;;  %v2761_v28 = vld [vmem:[%s6495_s5 + $0x68] sm:$0xff] }
 0xb67   :  { %v2192_v14 = vmax.f32 %v2187_v31, 0.0  ;;  %4974 = vmatprep.subr.bf16.mxu0 %v5199_v0 }
 0xb69   :  { %4345 = vmatmul.mubr.msk.f32.gmra.mrb[28].mxu0 %vm2092_vm8, %v2192_v14  ;;  %v4987_v14 = vpack.c.bf16 %v2762_v29, %v2761_v28 }
 0xb6a   :  { %4355 = vmatprep.mubr.msk.f32.mxu0 %vm5200_vm0, %v5201_v3 }
 0xc34   :  { %v2277_v22 = vpop.f32.mrb[24].mxu0 }
 0xc35   :  { %v2278_v32 = vadd.f32 %v3715_v16, %v2277_v22  ;;  %v4340_v33 = vpop.f32.mrb[25].mxu0  ;;  %v2764_v22 = vld [vmem:[%s6495_s5 + $0x80] sm:$0xff] }
 0xc37   :  { %v2291_v34 = vmax.f32 %v2278_v32, 0.0 }
 0xc38   :  { %v2282_v35 = vpop.f32.mrb[26].mxu0 }
 0xc39   :  { %v2283_v25 = vadd.f32 %v3715_v16, %v2282_v35  ;;  %v4343_v26 = vpop.f32.mrb[27].mxu0  ;;  %4356 = vmatmul.mubr.msk.f32.vlgmr.msra.gmra.mrb[30].mxu0 %vm2092_vm8, %v2291_v34 }
 0xc3a   :  { %4358 = vmatprep.mubr.msk.f32.mxu0 %vm5200_vm0, %v5201_v3  ;;  %4976 = vmatpush3.bf16.msra.mxu0 %v4975_v62 }
 0xc3b   :  { %v2292_v37 = vmax.f32 %v2283_v25, 0.0  ;;  %4977 = vmatprep.subr.bf16.mxu0 %v5199_v0 }
 0xc3c   :  { %v2287_v38 = vpop.f32.mrb[28].mxu0 }
 0xc3d   :  { %v2288_v43 = vadd.f32 %v3715_v16, %v2287_v38  ;;  %v4346_v47 = vpop.f32.mrb[29].mxu0  ;;  %4359 = vmatmul.mubr.msk.f32.gmra.mrb[32].mxu0 %vm2092_vm8, %v2292_v37  ;;  %v2763_v16 = vld [vmem:[%s6495_s5 + $0x78] sm:$0xff]  ;;  %v6200_v37 = vld [vmem:[%s6496_s1 + $0x8] sm:$0xff] }
 0xc3e   :  { %4361 = vmatprep.mubr.msk.f32.mxu0 %vm5200_vm0, %v5201_v3  ;;  %v4990_v34 = vpack.c.bf16 %v2764_v22, %v2763_v16 }
 0xc3f   :  { %v2293_v48 = vmax.f32 %v2288_v43, 0.0 }
 0xc41   :  { %4362 = vmatmul.mubr.msk.f32.gmra.mrb[34].mxu0 %vm2092_vm8, %v2293_v48 }
 0xc42   :  { %4391 = vmatprep.mubr.msk.f32.mxu0 %vm5200_vm0, %v5201_v3 }
 0xd0c   :  { %v2378_v1 = vpop.f32.mrb[30].mxu0 }
 0xd0d   :  { %v6104_v6 = vadd.f32 %v3719_v63, %v2378_v1  ;;  %v4357_v50 = vpop.f32.mrb[31].mxu0  ;;  %v2765_v1 = vld [vmem:[%s6495_s5 + $0x88] sm:$0xff] }
 0xd0e   :  { %v2766_v50 = vld [vmem:[%s6495_s5 + $0x90] sm:$0xff] }
 0xd0f   :  { %5176 = vtanh.f32 %v6104_v6 }
 0xd10   :  { %v2383_v40 = vpop.f32.mrb[32].mxu0 }
 0xd11   :  { %v6107_v41 = vadd.f32 %v3719_v63, %v2383_v40  ;;  %v4360_v21 = vpop.f32.mrb[33].mxu0  ;;  %v4993_v40 = vpack.c.bf16 %v2766_v50, %v2765_v1  ;;  %v3085_v50 = vld [vmem:[%s6497_s4 + $0x30] sm:$0xff] }
 0xd12   :  { %v2977_v21 = vld [vmem:[%s6497_s4] sm:$0xff] }
 0xd13   :  { %5178 = vtanh.f32 %v6107_v41 }
 0xd14   :  { %v2388_v42 = vpop.f32.mrb[34].mxu0 }
 0xd15   :  { %v6110_v10 = vadd.f32 %v3719_v63, %v2388_v42  ;;  %v4363_v9 = vpop.f32.mrb[35].mxu0  ;;  %v2978_v42 = vld [vmem:[%s6497_s4 + $0x8] sm:$0xff] }
 0xd16   :  { %v5007_v9 = vpack.c.bf16 %v2978_v42, %v2977_v21 }
 0xd17   :  { %5180 = vtanh.f32 %v6110_v10  ;;  %v6294_v22 = vmul.f32 -2.0, %v6110_v10 }
 0xd19   :  { %v5177_v44 = vpop.eup %5176 }
 0xd1a   :  { %2513 = vrot.lane.b32.xlu1 %v5177_v44, %s5203_s3  ;;  %v2865_v44 = vld [vmem:[%s6495_s5 + $0xa0] sm:$0xff] }
 0xd1d   :  { %v5179_v49 = vpop.eup %5178 }
 0xd1e   :  { %2515 = vrot.lane.b32.xlu0 %v5179_v49, %s5203_s3  ;;  %v2866_v49 = vld [vmem:[%s6495_s5 + $0xa8] sm:$0xff] }
 0xd21   :  { %v5181_v58 = vpop.eup %5180 }
 0xd22   :  { %2639 = vrot.lane.b32.xlu0 %v5773_v7, %s5204_s15  ;;  %2517 = vrot.lane.b32.xlu1 %v5181_v58, %s5203_s3  ;;  %v2867_v58 = vld [vmem:[%s6495_s5 + $0xb0] sm:$0xff] }
 0xd26   :  { %2641 = vrot.lane.b32.xlu0 %v5948_v55, %s5204_s15 }
 0xd2a   :  { %2643 = vrot.lane.b32.xlu0 %v6027_v46, %s5204_s15 }
 0xd2e   :  { %2969 = vrot.lane.b32.xlu0 %v6122_v27, %s5203_s3 }
 0xd32   :  { %3090 = vrot.lane.b32.xlu0 %v5773_v7, %s5205_s19 }
 0xd36   :  { %3092 = vrot.lane.b32.xlu0 %v5948_v55, %s5205_s19  ;;  %s5209_s19 = smov 5  }
 0xd8c   :  { %v2514_v51 = vpop.permute.xlu1 %2513 }
 0xd8d   :  { %v6130_v53 = vsel %vm1983_vm7, %v5962_v20, %v2514_v51  ;;  %v4996_v51 = vpack.c.bf16 %v2866_v49, %v2865_v44 }
 0xd8e   :  { %4371 = vmatmul.mubr.msk.f32.vlgmr.msra.gmra.mrb[40].mxu1 %vm2533_vm10, %v6130_v53 }
 0xd8f   :  { %4373 = vmatprep.mubr.msk.f32.mxu1 %vm5200_vm0, %v5201_v3  ;;  %4985 = vmatpush3.bf16.msra.mxu1 %v4984_v18 }
 0xd90   :  { %v2516_v46 = vpop.permute.xlu0 %2515  ;;  %4986 = vmatprep.subr.bf16.mxu1 %v5199_v0 }
 0xd91   :  { %v6138_v54 = vsel %vm1983_vm7, %v5971_v59, %v2516_v46  ;;  %v2868_v46 = vld [vmem:[%s6495_s5 + $0xb8] sm:$0xff] }
 0xd92   :  { %4374 = vmatmul.mubr.msk.f32.gmra.mrb[42].mxu1 %vm2533_vm10, %v6138_v54 }
 0xd93   :  { %4376 = vmatprep.mubr.msk.f32.mxu1 %vm5200_vm0, %v5201_v3  ;;  %4988 = vmatpush3.bf16.msra.mxu1 %v4987_v14  ;;  %v6290_v14 = vmul.f32 -2.0, %v6107_v41 }
 0xd94   :  { %v2518_v7 = vpop.permute.xlu1 %2517  ;;  %4989 = vmatprep.subr.bf16.mxu1 %v5199_v0  ;;  %v2640_v38 = vpop.permute.xlu0 %2639 }
 0xd95   :  { %v2524_v55 = vsel %vm1983_vm7, %v5980_v61, %v2518_v7  ;;  %v2632_v61 = vld [vmem:[%s6495_s5 + $0x38] sm:$0xff]  ;;  %v4999_v7 = vpack.c.bf16 %v2868_v46, %v2867_v58  ;;  %vm2414_vm1 = vcmp.ne.f32.partialorder %v6290_v14, %v6290_v14 }
 0xd96   :  { %4377 = vmatmul.mubr.msk.f32.gmra.mrb[44].mxu1 %vm2533_vm10, %v2524_v55  ;;  %v4978_v4 = vpack.c.bf16 %v2632_v61, %v2631_v2  ;;  %v2869_v55 = vld [vmem:[%s6495_s5 + $0xc0] sm:$0xff]  ;;  %v3728_v2 = vld [vmem:[%s6495_s5 + $0x50] ss:$0 sm:$0xff] }
 0xd97   :  { %4416 = vmatprep.mubr.msk.f32.mxu1 %vm5200_vm0, %v5201_v3  ;;  %4991 = vmatpush3.bf16.msra.mxu1 %v4990_v34  ;;  %v5002_v45 = vpack.c.bf16 %v2870_v39, %v2869_v55  ;;  %v2421_v34 = vand.u32 2147483647, %v6294_v22  ;;  %v3088_v55 = vld [vmem:[%s6497_s4 + $0x48] sm:$0xff] }
 0xd98   :  { %4979 = vmatpush3.bf16.msra.mxu0 %v4978_v4  ;;  %4992 = vmatprep.subr.bf16.mxu1 %v5199_v0  ;;  %v2642_v48 = vpop.permute.xlu0 %2641 }
 0xd99   :  { %4980 = vmatprep.subr.bf16.mxu0 %v5199_v0 }
 0xd9b   :  { %4994 = vmatpush3.bf16.msra.mxu1 %v4993_v40  ;;  %v3086_v40 = vld [vmem:[%s6497_s4 + $0x38] sm:$0xff] }
 0xd9c   :  { %4982 = vmatpush3.bf16.msra.mxu0 %v4981_v13  ;;  %v2644_v57 = vpop.permute.xlu0 %2643  ;;  %5008 = vmatprep.subr.bf16.mxu1 %v5007_v9  ;;  %v2979_v13 = vld [vmem:[%s6497_s4 + $0x10] sm:$0xf]  ;;  %v5015_v49 = vpack.c.bf16 %v3086_v40, %v3085_v50 }
 0xd9d   :  { %4995 = vmatprep.subr.bf16.mxu0 %v5199_v0 }
 0xda0   :  { %v2970_v17 = vpop.permute.xlu0 %2969 }
 0xe61   :  { %v2612_v23 = vpop.f32.mrb[40].mxu1 }
 0xe62   :  { %v2613_v11 = vadd.f32 %v3723_v15, %v2612_v23  ;;  %v4372_v19 = vpop.f32.mrb[41].mxu1 }
 0xe64   :  { %v2626_v24 = vmax.f32 %v2613_v11, 0.0 }
 0xe65   :  { %v2617_v30 = vpop.f32.mrb[42].mxu1 }
 0xe66   :  { %v2618_v31 = vadd.f32 %v3723_v15, %v2617_v30  ;;  %2651 = vrot.lane.b32.xlu1 %v2626_v24, %s5202_s16  ;;  %v4375_v36 = vpop.f32.mrb[43].mxu1  ;;  %v2975_v24 = vsel %vm1983_vm7, %v5962_v20, %v2970_v17  ;;  %v2871_v20 = vld [vmem:[%s6495_s5 + $0xd0] sm:$0xff]  ;;  %v2872_v30 = vld [vmem:[%s6495_s5 + $0xd8] sm:$0xff] }
 0xe68   :  { %v2627_v32 = vmax.f32 %v2618_v31, 0.0  ;;  %v5005_v31 = vpack.c.bf16 %v2872_v30, %v2871_v20 }
 0xe69   :  { %v2622_v33 = vpop.f32.mrb[44].mxu1 }
 0xe6a   :  { %2653 = vrot.lane.b32.xlu1 %v2627_v32, %s5202_s16  ;;  %v2623_v35 = vadd.f32 %v3723_v15, %v2622_v33  ;;  %v4378_v25 = vpop.f32.mrb[45].mxu1  ;;  %v2420_v32 = vand.u32 2147483647, %v6290_v14 }
 0xe6c   :  { %v2628_v26 = vmax.f32 %v2623_v35, 0.0  ;;  %v2423_v35 = vsub.f32 0.0, %v2420_v32 }
 0xe6e   :  { %2655 = vrot.lane.b32.xlu1 %v2628_v26, %s5202_s16  ;;  %v2424_v26 = vsub.f32 0.0, %v2421_v34 }
 0xe72   :  { %2971 = vrot.lane.b32.xlu1 %v6200_v37, %s5203_s3  ;;  %s5210_s3 = smov 126  }
 0xed8   :  { %v2652_v43 = vpop.permute.xlu1 %2651 }
 0xed9   :  { %v2660_v47 = vsel %vm2092_vm8, %v2640_v38, %v2652_v43  ;;  %v2427_v38 = vmul.f32 1.442695, %v2423_v35  ;;  %v2429_v43 = vmul.f32 1.442695, %v2424_v26  ;;  %v2412_v26 = vmax.f32 %v6294_v22, 0.0 }
 0xeda   :  { %4392 = vmatmul.mubr.msk.f32.vlgmr.msra.gmra.mrb[36].mxu0 %vm2100_vm9, %v2660_v47 }
 0xedb   :  { %4394 = vmatprep.mubr.msk.f32.mxu0 %vm5200_vm0, %v5201_v3  ;;  %4997 = vmatpush3.bf16.msra.mxu0 %v4996_v51 }
 0xedc   :  { %v2654_v52 = vpop.permute.xlu1 %2653  ;;  %4998 = vmatprep.subr.bf16.mxu0 %v5199_v0 }
 0xedd   :  { %v2661_v56 = vsel %vm2092_vm8, %v2642_v48, %v2654_v52 }
 0xede   :  { %4395 = vmatmul.mubr.msk.f32.gmra.mrb[38].mxu0 %vm2100_vm9, %v2661_v56 }
 0xedf   :  { %4397 = vmatprep.mubr.msk.f32.mxu0 %vm5200_vm0, %v5201_v3  ;;  %5000 = vmatpush3.bf16.msra.mxu0 %v4999_v7  ;;  %v3087_v7 = vld [vmem:[%s6497_s4 + $0x40] sm:$0xff] }
 0xee0   :  { %v2656_v60 = vpop.permute.xlu1 %2655  ;;  %5001 = vmatprep.subr.bf16.mxu0 %v5199_v0 }
 0xee1   :  { %v2662_v63 = vsel %vm2092_vm8, %v2644_v57, %v2656_v60 }
 0xee2   :  { %4398 = vmatmul.mubr.msk.f32.gmra.mrb[40].mxu0 %vm2100_vm9, %v2662_v63  ;;  %v3732_v63 = vld [vmem:[%s6495_s5 + $0x98] ss:$0 sm:$0xff] }
 0xee3   :  { %4441 = vmatprep.mubr.msk.f32.mxu0 %vm5200_vm0, %v5201_v3  ;;  %5003 = vmatpush3.bf16.msra.mxu0 %v5002_v45 }
 0xee4   :  { %5004 = vmatprep.subr.bf16.mxu0 %v5199_v0  ;;  %v2972_v28 = vpop.permute.xlu1 %2971 }
 0xee5   :  { %v2976_v29 = vsel %vm1983_vm7, %v5971_v59, %v2972_v28  ;;  %v3083_v59 = vld [vmem:[%s6497_s4 + $0x20] sm:$0xff]  ;;  %vm3654_vm7 = vcmask 39936  }
 0xee7   :  { %5006 = vmatpush3.bf16.msra.mxu0 %v5005_v31 }
 0xfad   :  { %v2742_v62 = vpop.f32.mrb[36].mxu0 }
 0xfae   :  { %v2743_v61 = vadd.f32 %v3728_v2, %v2742_v62  ;;  %v4393_v4 = vpop.f32.mrb[37].mxu0 }
 0xfb0   :  { %v2756_v5 = vmax.f32 %v2743_v61, 0.0 }
 0xfb1   :  { %v2747_v8 = vpop.f32.mrb[38].mxu0 }
 0xfb2   :  { %v2748_v15 = vadd.f32 %v3728_v2, %v2747_v8  ;;  %v4396_v23 = vpop.f32.mrb[39].mxu0  ;;  %4417 = vmatmul.mubr.msk.f32.vlgmr.msra.gmra.mrb[46].mxu1 %vm2772_vm11, %v2756_v5 }
 0xfb3   :  { %5010 = vmatpush3.bf16.msra.mxu1 %v5007_v9  ;;  %4419 = vmatprep.mubr.msk.f32.mxu1 %vm5200_vm0, %v5201_v3 }
 0xfb4   :  { %v2757_v0 = vmax.f32 %v2748_v15, 0.0  ;;  %4454 = vmatprep.subr.msk.mxu1 %vm1969_vm5, %v2979_v13 }
 0xfb5   :  { %v2752_v11 = vpop.f32.mrb[40].mxu0 }
 0xfb6   :  { %4420 = vmatmul.mubr.msk.f32.gmra.mrb[48].mxu1 %vm2772_vm11, %v2757_v0  ;;  %v2753_v19 = vadd.f32 %v3728_v2, %v2752_v11  ;;  %v4399_v12 = vpop.f32.mrb[41].mxu0 }
 0xfb7   :  { %4455 = vmatpush3.msk.msra.mxu1 %vm1969_vm5, %v2979_v13  ;;  %4422 = vmatprep.mubr.msk.f32.mxu1 %vm5200_vm0, %v5201_v3  ;;  %v5019_v13 = vpack.c.bf16 %v3088_v55, %v3087_v7  ;;  %vm3649_vm5 = vcmask 15360  }
 0xfb8   :  { %v2758_v18 = vmax.f32 %v2753_v19, 0.0 }
 0xfba   :  { %4423 = vmatmul.mubr.msk.f32.gmra.mrb[50].mxu1 %vm2772_vm11, %v2758_v18 }
 0xfbb   :  { %4456 = vmatprep.mubr.msk.f32.mxu1 %vm2533_vm10, %v2975_v24 }
 0xfbe   :  { %4457 = vmatmul.mubr.msk.f32.vlgmr.msra.gmra.mrb[52].mxu1 %vm2533_vm10, %v2976_v29 }
 0xfbf   :  { %4459 = vmatprep.mubr.msk.f32.mxu1 %vm2533_vm10, %v6130_v53  ;;  %v3084_v53 = vld [vmem:[%s6497_s4 + $0x28] sm:$0xff] }
 0xfc0   :  { %v5011_v36 = vpack.c.bf16 %v3084_v53, %v3083_v59  ;;  %v3740_v59 = vld [vmem:[%s6497_s4 + $0x18] ss:$0 sm:$0xff] }
 0xfc2   :  { %4460 = vmatmul.mubr.msk.f32.gmra.mrb[54].mxu1 %vm2533_vm10, %v6138_v54  ;;  %5012 = vmatprep.subr.bf16.mxu0 %v5011_v36  ;;  %v6287_v54 = vmul.f32 -2.0, %v6104_v6 }
 0xfc4   :  { %v2419_v16 = vand.u32 2147483647, %v6287_v54  ;;  %v2410_v53 = vmax.f32 %v6287_v54, 0.0  ;;  %vm2413_vm15 = vcmp.ne.f32.partialorder %v6287_v54, %v6287_v54 }
 0xfc6   :  { %v2422_v33 = vsub.f32 0.0, %v2419_v16 }
 0xfc8   :  { %v2425_v25 = vmul.f32 1.442695, %v2422_v33 }
 0xfca   :  { %5182 = vpow2.f32 %v2425_v25 }
 0xfcb   :  { %5184 = vpow2.f32 %v2427_v38  ;;  %v2411_v38 = vmax.f32 %v6290_v14, 0.0 }
 0xfcc   :  { %5186 = vpow2.f32 %v2429_v43 }
 0xfd4   :  { %v5183_v47 = vpop.eup %5182 }
 0xfd5   :  { %v5185_v48 = vpop.eup %5184  ;;  %v2431_v52 = vadd.f32 1.0, %v5183_v47  ;;  %v2434_v9 = vmul.f32 -0.5, %v5183_v47  ;;  %v2437_v46 = vand.u32 2147483647, %v5183_v47 }
 0xfd6   :  { %v5187_v56 = vpop.eup %5186  ;;  %v2440_v57 = vadd.f32 1.0, %v5185_v48  ;;  %v2443_v61 = vmul.f32 -0.5, %v5185_v48  ;;  %v2446_v28 = vand.u32 2147483647, %v5185_v48 }
 0xfd7   :  { %5188 = vlog2.f32 %v2431_v52  ;;  %v2449_v60 = vadd.f32 1.0, %v5187_v56  ;;  %v2435_v2 = vadd.f32 1.0, %v2434_v9  ;;  %v2452_v62 = vmul.f32 -0.5, %v5187_v56 }
 0xfd8   :  { %5190 = vlog2.f32 %v2440_v57  ;;  %vm6317_vm12 = vcmp.lt.f32.partialorder %v2437_v46, 0.0004427343  ;;  %v2444_v12 = vadd.f32 1.0, %v2443_v61  ;;  %v2455_v18 = vand.u32 2147483647, %v5187_v56 }
 0xfd9   :  { %5192 = vlog2.f32 %v2449_v60  ;;  %v2436_v0 = vmul.f32 %v5183_v47, %v2435_v2  ;;  %v2453_v19 = vadd.f32 1.0, %v2452_v62  ;;  %vm2447_vm14 = vcmp.lt.f32.partialorder %v2446_v28, 0.0004427343 }
 0xfda   :  { %v2445_v32 = vmul.f32 %v5185_v48, %v2444_v12  ;;  %vm2456_vm13 = vcmp.lt.f32.partialorder %v2455_v18, 0.0004427343 }
 0xfdb   :  { %v2454_v16 = vmul.f32 %v5187_v56, %v2453_v19 }
 0xfe1   :  { %v5189_v58 = vpop.eup %5188 }
 0xfe2   :  { %v5191_v4 = vpop.eup %5190  ;;  %v2433_v8 = vmul.f32 0.6931472, %v5189_v58 }
 0xfe3   :  { %v5193_v15 = vpop.eup %5192  ;;  %v2442_v30 = vmul.f32 0.6931472, %v5191_v4  ;;  %v2394_v4 = vmax.f32 %v6110_v10, -20.0 }
 0xfe4   :  { %v2439_v29 = vsel %vm6317_vm12, %v2436_v0, %v2433_v8  ;;  %v2451_v20 = vmul.f32 0.6931472, %v5193_v15 }
 0xfe5   :  { %v2458_v33 = vadd.f32 %v2439_v29, %v2410_v53  ;;  %v2448_v25 = vsel %vm2447_vm14, %v2445_v32, %v2442_v30  ;;  %v2397_v0 = vmin.f32 %v2394_v4, 2.0  ;;  %v3221_v30 = vld [vmem:[%s6497_s4 + $0x58] sm:$0xff] }
 0xfe6   :  { %v2457_v35 = vsel %vm2456_vm13, %v2454_v16, %v2451_v20  ;;  %v2459_v60 = vadd.f32 %v2448_v25, %v2411_v38  ;;  %v3225_v32 = vld [vmem:[%s6497_s4 + $0x78] sm:$0xff]  ;;  %v3227_v38 = vld [vmem:[%s6497_s4 + $0x88] sm:$0xff] }
 0xfe7   :  { %v2461_v56 = vsel %vm2413_vm15, %v6287_v54, %v2458_v33  ;;  %v2460_v57 = vadd.f32 %v2457_v35, %v2412_v26 }
 0xfe8   :  { %v2462_v54 = vsel %vm2414_vm1, %v6290_v14, %v2459_v60  ;;  %v3091_v14 = vpop.permute.xlu0 %3090 }
0x1085   :  { %v2848_v1 = vpop.f32.mrb[46].mxu1 }
0x1086   :  { %v2849_v21 = vadd.f32 %v3732_v63, %v2848_v1  ;;  %v4418_v42 = vpop.f32.mrb[47].mxu1  ;;  %v2404_v1 = vsub.f32 0.6931472, %v6104_v6 }
0x1088   :  { %v2862_v44 = vmax.f32 %v2849_v21, 0.0  ;;  %v2464_v42 = vsub.f32 %v2404_v1, %v2461_v56 }
0x1089   :  { %v2853_v51 = vpop.f32.mrb[48].mxu1 }
0x108a   :  { %v2854_v39 = vadd.f32 %v3732_v63, %v2853_v51  ;;  %v4421_v45 = vpop.f32.mrb[49].mxu1  ;;  %4442 = vmatmul.mubr.msk.f32.vlgmr.msra.gmra.mrb[42].mxu0 %vm2772_vm11, %v2862_v44  ;;  %v2406_v44 = vsub.f32 0.6931472, %v6110_v10  ;;  %v2467_v51 = vmul.f32 2.0, %v2464_v42 }
0x108b   :  { %4444 = vmatprep.mubr.msk.f32.mxu0 %vm5200_vm0, %v5201_v3  ;;  %5014 = vmatpush3.bf16.msra.mxu0 %v5011_v36  ;;  %v3093_v45 = vpop.permute.xlu0 %3092 }
0x108c   :  { %v2863_v5 = vmax.f32 %v2854_v39, 0.0  ;;  %5016 = vmatprep.subr.bf16.mxu0 %v5015_v49  ;;  %v2392_v39 = vmax.f32 %v6104_v6, -20.0 }
0x108d   :  { %v2858_v23 = vpop.f32.mrb[50].mxu1 }
0x108e   :  { %4445 = vmatmul.mubr.msk.f32.gmra.mrb[44].mxu0 %vm2772_vm11, %v2863_v5  ;;  %v2859_v17 = vadd.f32 %v3732_v63, %v2858_v23  ;;  %v4424_v24 = vpop.f32.mrb[51].mxu1  ;;  %v2395_v61 = vmin.f32 %v2392_v39, 2.0  ;;  %v2393_v5 = vmax.f32 %v6107_v41, -20.0 }
0x108f   :  { %4447 = vmatprep.mubr.msk.f32.mxu0 %vm5200_vm0, %v5201_v3  ;;  %5018 = vmatpush3.bf16.msra.mxu0 %v5015_v49  ;;  %vm2415_vm0 = vcmp.ne.f32.partialorder %v6294_v22, %v6294_v22  ;;  %v2405_v49 = vsub.f32 0.6931472, %v6107_v41  ;;  %v2403_v41 = vsub.f32 -0.9189385, %v2397_v0 }
0x1090   :  { %5020 = vmatprep.subr.bf16.mxu0 %v5019_v13  ;;  %v2864_v31 = vmax.f32 %v2859_v17, 0.0  ;;  %v2463_v9 = vsel %vm2415_vm0, %v6294_v22, %v2460_v57  ;;  %v2401_v6 = vsub.f32 -0.9189385, %v2395_v61  ;;  %v2396_v11 = vmin.f32 %v2393_v5, 2.0 }
0x1091   :  { %v4458_v36 = vpop.f32.mrb[52].mxu1  ;;  %v2466_v46 = vsub.f32 %v2406_v44, %v2463_v9  ;;  %v2465_v7 = vsub.f32 %v2405_v49, %v2462_v54  ;;  %v3746_v54 = vld [vmem:[%s6497_s4 + $0x50] ss:$0 sm:$0xff] }
0x1092   :  { %4448 = vmatmul.mubr.msk.f32.gmra.mrb[46].mxu0 %vm2772_vm11, %v2864_v31  ;;  %v3060_v3 = vpop.f32.mrb[53].mxu1  ;;  %v3066_v43 = vadd.f32 %v4458_v36, %v3740_v59  ;;  %v2402_v24 = vsub.f32 -0.9189385, %v2396_v11  ;;  %v3222_v31 = vld [vmem:[%s6497_s4 + $0x60] sm:$0xff]  ;;  %v3224_v36 = vld [vmem:[%s6497_s4 + $0x70] sm:$0xff] }
0x1093   :  { %v3061_v34 = vadd.f32 %v3740_v59, %v3060_v3  ;;  %5022 = vmatpush3.bf16.msra.mxu0 %v5019_v13  ;;  %v2469_v55 = vmul.f32 2.0, %v2466_v46  ;;  %v2468_v22 = vmul.f32 2.0, %v2465_v7  ;;  %v5023_v53 = vpack.c.bf16 %v3222_v31, %v3221_v30  ;;  %v3226_v3 = vld [vmem:[%s6497_s4 + $0x80] sm:$0xff] }
0x1094   :  { %v3080_v50 = vmax.f32 %v3066_v43, 0.0  ;;  %v5031_v33 = vpack.c.bf16 %v3226_v3, %v3225_v32  ;;  %v3228_v43 = vld [vmem:[%s6497_s4 + $0x90] sm:$0xff] }
0x1095   :  { %v3079_v47 = vmax.f32 %v3061_v34, 0.0  ;;  %v4461_v52 = vpop.f32.mrb[54].mxu1  ;;  %5024 = vmatprep.subr.bf16.mxu1 %v5023_v53 }
0x1096   :  { %v3070_v48 = vpop.f32.mrb[55].mxu1  ;;  %v3076_v40 = vadd.f32 %v4461_v52, %v3740_v59  ;;  %5026 = vmatpush3.bf16.msra.mxu1 %v5023_v53  ;;  %v3339_v53 = vld [vmem:[%s6497_s4 + $0xc0] sm:$0xff] }
0x1097   :  { %v3071_v63 = vadd.f32 %v3740_v59, %v3070_v48  ;;  %3100 = vrot.lane.b32.xlu1 %v3079_v47, %s5202_s16  ;;  %v3223_v59 = vld [vmem:[%s6497_s4 + $0x68] sm:$0xff]  ;;  %v5035_v47 = vpack.c.bf16 %v3228_v43, %v3227_v38  ;;  %v3488_v38 = vsub.f32 1.0, %v6200_v37 }
0x1098   :  { %v3082_v58 = vmax.f32 %v3076_v40, 0.0  ;;  %v5027_v16 = vpack.c.bf16 %v3224_v36, %v3223_v59  ;;  %v3736_v40 = vld [vmem:[%s6495_s5 + $0xe0] ss:$0 sm:$0xff]  ;;  %v3340_v36 = vld [vmem:[%s6497_s4 + $0xc8] sm:$0xff] }
0x1099   :  { %v3081_v21 = vmax.f32 %v3071_v63, 0.0  ;;  %v5047_v32 = vpack.c.bf16 %v3340_v36, %v3339_v53 }
0x109a   :  { %5028 = vmatprep.subr.bf16.mxu1 %v5027_v16 }
0x109b   :  { %3104 = vrot.lane.b32.xlu0 %v3081_v21, %s5202_s16  ;;  %3102 = vrot.lane.b32.xlu1 %v3080_v50, %s5202_s16 }
0x109c   :  { %5030 = vmatpush3.bf16.msra.mxu1 %v5027_v16 }
0x109d   :  { %5032 = vmatprep.subr.bf16.mxu1 %v5031_v33 }
0x109f   :  { %2473 = vrot.lane.b32.xlu0 %v2467_v51, %s5206_s13  ;;  %3106 = vrot.lane.b32.xlu1 %v3082_v58, %s5202_s16  ;;  %s5207_s16 = smov 124  }
0x10a0   :  { %5034 = vmatpush3.bf16.msra.mxu1 %v5031_v33  ;;  %v3341_v33 = vld [vmem:[%s6497_s4 + $0xd0] sm:$0xff] }
0x10a1   :  { %5036 = vmatprep.subr.bf16.mxu1 %v5035_v47 }
0x10a3   :  { %2477 = vrot.lane.b32.xlu0 %v2469_v55, %s5206_s13  ;;  %2475 = vrot.lane.b32.xlu1 %v2468_v22, %s5206_s13 }
0x10a4   :  { %5038 = vmatpush3.bf16.msra.mxu1 %v5035_v47 }
0x1109   :  { %v3101_v2 = vpop.permute.xlu1 %3100 }
0x110a   :  { %v3112_v62 = vsel %vm2092_vm8, %v3091_v14, %v3101_v2 }
0x110b   :  { %4474 = vmatprep.mubr.msk.f32.mxu0 %vm2100_vm9, %v3112_v62 }
0x110d   :  { %v3105_v8 = vpop.permute.xlu0 %3104  ;;  %v3103_v13 = vpop.permute.xlu1 %3102 }
0x110e   :  { %v3114_v15 = vsel %vm2092_vm8, %v3091_v14, %v3105_v8  ;;  %v3113_v23 = vsel %vm2092_vm8, %v3093_v45, %v3103_v13 }
0x110f   :  { %4475 = vmatmul.mubr.msk.f32.vlgmr.msra.gmra.mrb[48].mxu0 %vm2100_vm9, %v3113_v23 }
0x1110   :  { %4477 = vmatprep.mubr.msk.f32.mxu0 %vm2100_vm9, %v3114_v15 }
0x1111   :  { %v2474_v19 = vpop.permute.xlu0 %2473  ;;  %v3107_v12 = vpop.permute.xlu1 %3106 }
0x1112   :  { %v2482_v17 = vsub.f32 %v2401_v6, %v2474_v19  ;;  %v3115_v10 = vsel %vm2092_vm8, %v3093_v45, %v3107_v12 }
0x1113   :  { %4478 = vmatmul.mubr.msk.f32.gmra.mrb[50].mxu0 %vm2100_vm9, %v3115_v10 }
0x1114   :  { %2488 = vrot.lane.b32.xlu1 %v2482_v17, %s5207_s16 }
0x1115   :  { %v2478_v18 = vpop.permute.xlu0 %2477  ;;  %v2476_v28 = vpop.permute.xlu1 %2475 }
0x1116   :  { %v2484_v29 = vsub.f32 %v2403_v41, %v2478_v18  ;;  %v2483_v20 = vsub.f32 %v2402_v24, %v2476_v28  ;;  %v3335_v24 = vld [vmem:[%s6497_s4 + $0xa0] sm:$0xff]  ;;  %v3336_v18 = vld [vmem:[%s6497_s4 + $0xa8] sm:$0xff]  ;;  %v3337_v28 = vld [vmem:[%s6497_s4 + $0xb0] sm:$0xff] }
0x1118   :  { %2492 = vrot.lane.b32.xlu1 %v2484_v29, %s5207_s16  ;;  %2490 = vrot.lane.b32.xlu0 %v2483_v20, %s5207_s16  ;;  %v5039_v29 = vpack.c.bf16 %v3336_v18, %v3335_v24  ;;  %v3338_v20 = vld [vmem:[%s6497_s4 + $0xb8] sm:$0xff] }
0x1119   :  { %v5043_v59 = vpack.c.bf16 %v3338_v20, %v3337_v28 }
0x111a   :  { %5040 = vmatprep.subr.bf16.mxu0 %v5039_v29 }
0x111b   :  { %5042 = vmatpush3.bf16.msra.mxu0 %v5039_v29 }
0x111c   :  { %5044 = vmatprep.subr.bf16.mxu0 %v5043_v59 }
0x111f   :  { %5046 = vmatpush3.bf16.msra.mxu0 %v5043_v59 }
0x1120   :  { %5048 = vmatprep.subr.bf16.mxu0 %v5047_v32 }
0x1123   :  { %5050 = vmatpush3.bf16.msra.mxu0 %v5047_v32 }
0x115d   :  { %v2953_v34 = vpop.f32.mrb[42].mxu0 }
0x115e   :  { %v4443_v35 = vpop.f32.mrb[43].mxu0  ;;  %v2954_v9 = vadd.f32 %v3736_v40, %v2953_v34  ;;  %v3342_v34 = vld [vmem:[%s6497_s4 + $0xd8] sm:$0xff] }
0x115f   :  { %v5051_v35 = vpack.c.bf16 %v3342_v34, %v3341_v33 }
0x1161   :  { %v2958_v25 = vpop.f32.mrb[44].mxu0  ;;  %5052 = vmatprep.subr.bf16.mxu0 %v5051_v35 }
0x1162   :  { %v4446_v26 = vpop.f32.mrb[45].mxu0  ;;  %v2959_v21 = vadd.f32 %v3736_v40, %v2958_v25  ;;  %5054 = vmatpush3.bf16.msra.mxu0 %v5051_v35  ;;  %v3487_v25 = vsub.f32 1.0, %v6122_v27 }
0x1164   :  { %v3489_v26 = vmul.f32 0.99, %v3487_v25 }
0x1165   :  { %v2963_v52 = vpop.f32.mrb[46].mxu0 }
0x1166   :  { %v4449_v48 = vpop.f32.mrb[47].mxu0  ;;  %v2964_v42 = vadd.f32 %v3736_v40, %v2963_v52  ;;  %v3490_v52 = vmul.f32 0.99, %v3488_v38 }
0x1186   :  { %v2489_v56 = vpop.permute.xlu1 %2488 }
0x1187   :  { %v2498_v57 = vsel %vm2497_vm2, %v2489_v56, 0.0 }
0x1188   :  { %2499 = vadd.xlane.f32.xlu0 %v2498_v57  ;;  %v3751_v57 = vld [vmem:[%s6497_s4 + $0x98] ss:$0 sm:$0xff] }
0x118a   :  { %v2491_v60 = vpop.permute.xlu0 %2490  ;;  %v2493_v63 = vpop.permute.xlu1 %2492 }
0x118b   :  { %v2501_v1 = vsel %vm2497_vm2, %v2491_v60, 0.0  ;;  %v2505_v50 = vsel %vm2504_vm3, %v2493_v63, 0.0 }
0x118c   :  { %2502 = vadd.xlane.f32.xlu1 %v2501_v1  ;;  %2506 = vadd.xlane.f32.xlu0 %v2505_v50 }
0x119d   :  { %3471 = vrot.lane.b32.xlu1 %v2959_v21, %s5208_s0 }
0x11a1   :  { %3473 = vrot.lane.b32.xlu1 %v2964_v42, %s5208_s0 }
0x11a2   :  { %3469 = vrot.lane.b32.xlu0 %v2954_v9, %s5208_s0 }
0x11e2   :  { %v4476_v44 = vpop.f32.mrb[48].mxu0 }
0x11e3   :  { %v3204_v49 = vadd.f32 %v4476_v44, %v3746_v54  ;;  %v3198_v58 = vpop.f32.mrb[49].mxu0 }
0x11e4   :  { %v3199_v51 = vadd.f32 %v3746_v54, %v3198_v58 }
0x11e5   :  { %v3218_v55 = vmax.f32 %v3204_v49, 0.0 }
0x11e6   :  { %v3217_v46 = vmax.f32 %v3199_v51, 0.0  ;;  %v4479_v7 = vpop.f32.mrb[50].mxu0 }
0x11e7   :  { %v3214_v22 = vadd.f32 %v4479_v7, %v3746_v54  ;;  %v3208_v14 = vpop.f32.mrb[51].mxu0 }
0x11e8   :  { %v3209_v39 = vadd.f32 %v3746_v54, %v3208_v14  ;;  %4496 = vmatprep.mubr.msk.f32.mxu1 %vm2772_vm11, %v3217_v46 }
0x11e9   :  { %4497 = vmatmul.mubr.msk.f32.vlgmr.msra.gmra.mrb[56].mxu1 %vm2772_vm11, %v3218_v55  ;;  %v3220_v2 = vmax.f32 %v3214_v22, 0.0 }
0x11ea   :  { %v3219_v45 = vmax.f32 %v3209_v39, 0.0 }
0x11ec   :  { %4499 = vmatprep.mubr.msk.f32.mxu1 %vm2772_vm11, %v3219_v45 }
0x11ed   :  { %4500 = vmatmul.mubr.msk.f32.gmra.mrb[58].mxu1 %vm2772_vm11, %v3220_v2  ;;  %v3756_v2 = vld [vmem:[%s6497_s4 + $0xe0] ss:$0 sm:$0xff] }
0x1215   :  { %v6401_v62 = vpop.xlane.xlu0 %2499 }
0x1216   :  { %v6406_v13 = vmul.f32 0.1, %v6401_v62  ;;  %v3624_v59 = vmul.f32 %v6122_v27, %v6401_v62 }
0x1219   :  { %v2507_v61 = vpop.xlane.xlu0 %2506  ;;  %v6403_v4 = vpop.xlane.xlu1 %2502 }
0x121a   :  { %v6409_v15 = vmul.f32 0.1, %v6403_v4  ;;  %v3483_v19 = vmul.f32 0.1, %v2507_v61 }
0x121d   :  { %v3470_v5 = vpop.permute.xlu0 %3469  ;;  %v3472_v8 = vpop.permute.xlu1 %3471 }
0x121e   :  { %v3478_v23 = vmin.f32 %v2954_v9, %v3470_v5  ;;  %v3479_v6 = vmin.f32 %v2959_v21, %v3472_v8 }
0x1220   :  { %v3484_v0 = vsub.f32 %v3478_v23, %v6406_v13  ;;  %v3485_v11 = vsub.f32 %v3479_v6, %v6409_v15 }
0x1221   :  { %v3474_v12 = vpop.permute.xlu1 %3473 }
0x1222   :  { %v3494_v17 = vrot.slane %v3484_v0, 2  ;;  %v3495_v10 = vrot.slane %v3485_v11, 2  ;;  %v3480_v41 = vmin.f32 %v2964_v42, %v3474_v12 }
0x1224   :  { %v3486_v30 = vsub.f32 %v3480_v41, %v3483_v19  ;;  %v3496_v31 = vsel %vm1971_vm6, %v3494_v17, %v3495_v10 }
0x1225   :  { %3499 = vrot.lane.b32.xlu0 %v3496_v31, %s5209_s19  ;;  %v3625_v31 = vmul.f32 %v6200_v37, %v6403_v4 }
0x1226   :  { %v3497_v16 = vrot.slane %v3486_v30, 2 }
0x1228   :  { %v3498_v3 = vsel %vm1971_vm6, %v3495_v10, %v3497_v16  ;;  %vm3651_vm6 = vcmask 23552  }
0x1229   :  { %3501 = vrot.lane.b32.xlu1 %v3498_v3, %s5209_s19 }
0x1297   :  { %v3500_v43 = vpop.permute.xlu0 %3499 }
0x1298   :  { %v3505_v47 = vmul.f32 %v3500_v43, %v3489_v26 }
0x129a   :  { %3509 = vrot.lane.b32.xlu0 %v3505_v47, %s5208_s0 }
0x129b   :  { %v3502_v48 = vpop.permute.xlu1 %3501 }
0x129c   :  { %v3506_v56 = vmul.f32 %v3502_v48, %v3490_v52 }
0x129e   :  { %3517 = vrot.lane.b32.xlu0 %v6122_v27, %s5210_s3  ;;  %3511 = vrot.lane.b32.xlu1 %v3506_v56, %s5208_s0 }
0x12a2   :  { %3519 = vrot.lane.b32.xlu1 %v6200_v37, %s5210_s3  ;;  %3554 = vrot.lane.b32.xlu0 %v6122_v27, %s5211_s23 }
0x12a6   :  { %3556 = vrot.lane.b32.xlu1 %v6200_v37, %s5211_s23 }
0x12bc   :  { %v4498_v60 = vpop.f32.mrb[56].mxu1 }
0x12bd   :  { %v3318_v63 = vadd.f32 %v4498_v60, %v3751_v57  ;;  %v3312_v1 = vpop.f32.mrb[57].mxu1 }
0x12be   :  { %v3313_v50 = vadd.f32 %v3751_v57, %v3312_v1 }
0x12bf   :  { %v3332_v42 = vmax.f32 %v3318_v63, 0.0 }
0x12c0   :  { %v3331_v40 = vmax.f32 %v3313_v50, 0.0  ;;  %v4501_v21 = vpop.f32.mrb[58].mxu1 }
0x12c1   :  { %v3328_v9 = vadd.f32 %v4501_v21, %v3751_v57  ;;  %v3322_v54 = vpop.f32.mrb[59].mxu1 }
0x12c2   :  { %v3323_v44 = vadd.f32 %v3751_v57, %v3322_v54  ;;  %4518 = vmatprep.mubr.msk.f32.mxu0 %vm2772_vm11, %v3331_v40 }
0x12c3   :  { %4519 = vmatmul.mubr.msk.f32.vlgmr.msra.gmra.mrb[52].mxu0 %vm2772_vm11, %v3332_v42  ;;  %v3334_v58 = vmax.f32 %v3328_v9, 0.0 }
0x12c4   :  { %v3333_v49 = vmax.f32 %v3323_v44, 0.0 }
0x12c6   :  { %4521 = vmatprep.mubr.msk.f32.mxu0 %vm2772_vm11, %v3333_v49 }
0x12c7   :  { %4522 = vmatmul.mubr.msk.f32.gmra.mrb[54].mxu0 %vm2772_vm11, %v3334_v58 }
0x130c   :  { %v3510_v51 = vpop.permute.xlu0 %3509 }
0x130d   :  { %v3515_v46 = vadd.f32 %v3510_v51, %v6122_v27 }
0x1310   :  { %v3518_v7 = vpop.permute.xlu0 %3517  ;;  %v3512_v55 = vpop.permute.xlu1 %3511 }
0x1311   :  { %v3523_v22 = vmul.f32 %v3518_v7, %v3515_v46  ;;  %v3516_v14 = vadd.f32 %v3512_v55, %v6200_v37 }
0x1313   :  { %3562 = vrot.lane.b32.xlu0 %v3523_v22, %s5212_s26 }
0x1314   :  { %v3520_v39 = vpop.permute.xlu1 %3519  ;;  %v3555_v0 = vpop.permute.xlu0 %3554 }
0x1315   :  { %v3524_v45 = vmul.f32 %v3520_v39, %v3516_v14 }
0x1317   :  { %3564 = vrot.lane.b32.xlu1 %v3524_v45, %s5212_s26  ;;  %3445 = vrot.lane.b32.xlu0 %v6122_v27, %s5213_s27 }
0x1318   :  { %v3557_v23 = vpop.permute.xlu1 %3556 }
0x131b   :  { %3447 = vrot.lane.b32.xlu1 %v6200_v37, %s5213_s27 }
0x1385   :  { %v3563_v18 = vpop.permute.xlu0 %3562 }
0x1389   :  { %v3565_v24 = vpop.permute.xlu1 %3564  ;;  %v3446_v36 = vpop.permute.xlu0 %3445 }
0x138a   :  { %v3452_v16 = vsel %vm3451_vm4, %v3446_v36, 0.0 }
0x138d   :  { %v3448_v53 = vpop.permute.xlu1 %3447 }
0x138e   :  { %v3453_v32 = vsel %vm3451_vm4, %v3448_v53, 0.0 }
0x138f   :  { %v3454_v3 = vadd.f32 %v3453_v32, %v3452_v16 }
0x1396   :  { %v4520_v61 = vpop.f32.mrb[52].mxu0 }
0x1397   :  { %v3432_v5 = vadd.f32 %v4520_v61, %v3756_v2  ;;  %v3426_v8 = vpop.f32.mrb[53].mxu0 }
0x1398   :  { %v3427_v6 = vadd.f32 %v3756_v2, %v3426_v8 }
0x1399   :  { %v3561_v19 = vmul.f32 %v3557_v23, %v3432_v5  ;;  %v3526_v25 = vmul.f32 %v3448_v53, %v3432_v5 }
0x139a   :  { %v4523_v11 = vpop.f32.mrb[54].mxu0  ;;  %v3560_v10 = vmul.f32 %v3555_v0, %v3427_v6  ;;  %v3525_v26 = vmul.f32 %v3446_v36, %v3427_v6 }
0x139b   :  { %v3442_v12 = vadd.f32 %v4523_v11, %v3756_v2  ;;  %v3436_v17 = vpop.f32.mrb[55].mxu0  ;;  %v3569_v28 = vsub.f32 %v3561_v19, %v3565_v24 }
0x139c   :  { %v3437_v41 = vadd.f32 %v3756_v2, %v3436_v17  ;;  %v3568_v29 = vsub.f32 %v3560_v10, %v3563_v18 }
0x139d   :  { %3598 = vrot.lane.b32.xlu1 %v3442_v12, %s5208_s0  ;;  %v3571_v20 = vmul.f32 %v3569_v28, %v3569_v28 }
0x139e   :  { %3596 = vrot.lane.b32.xlu0 %v3437_v41, %s5208_s0  ;;  %v3570_v30 = vmul.f32 %v3568_v29, %v3568_v29 }
0x13a1   :  { %3531 = vrot.lane.b32.xlu1 %v3524_v45, %s5207_s16 }
0x13a2   :  { %3529 = vrot.lane.b32.xlu0 %v3523_v22, %s5207_s16 }
0x13a5   :  { %3576 = vrot.lane.b32.xlu1 %v3571_v20, %s5208_s0 }
0x13a6   :  { %3574 = vrot.lane.b32.xlu0 %v3570_v30, %s5208_s0 }
0x13a9   :  { %3630 = vrot.lane.b32.xlu1 %v3625_v31, %s5213_s27 }
0x13aa   :  { %3628 = vrot.lane.b32.xlu0 %v3624_v59, %s5213_s27 }
0x13c9   :  { %3455 = vadd.xlane.f32.xlu0 %v3454_v3 }
0x140f   :  { %v3599_v33 = vpop.permute.xlu1 %3598 }
0x1410   :  { %v3603_v34 = vmin.f32 %v3442_v12, %v3599_v33  ;;  %v3597_v35 = vpop.permute.xlu0 %3596 }
0x1411   :  { %v3602_v37 = vmin.f32 %v3437_v41, %v3597_v35 }
0x1412   :  { %v3605_v4 = vsub.f32 0.0, %v3603_v34 }
0x1413   :  { %v3604_v27 = vsub.f32 0.0, %v3602_v37  ;;  %v3532_v62 = vpop.permute.xlu1 %3531 }
0x1414   :  { %v3607_v38 = vadd.f32 %v3605_v4, %v6409_v15  ;;  %v3536_v43 = vsub.f32 %v3526_v25, %v3532_v62  ;;  %v3530_v47 = vpop.permute.xlu0 %3529 }
0x1415   :  { %v3606_v52 = vadd.f32 %v3604_v27, %v6406_v13  ;;  %v3535_v48 = vsub.f32 %v3525_v26, %v3530_v47 }
0x1416   :  { %v3538_v56 = vmul.f32 %v3536_v43, %v3536_v43  ;;  %v3609_v1 = vmul.f32 %v3607_v38, %v3448_v53 }
0x1417   :  { %v3537_v57 = vmul.f32 %v3535_v48, %v3535_v48  ;;  %v3577_v60 = vpop.permute.xlu1 %3576  ;;  %v3608_v63 = vmul.f32 %v3606_v52, %v3446_v36 }
0x1418   :  { %v3581_v50 = vsel %vm3451_vm4, %v3577_v60, 0.0  ;;  %v3575_v40 = vpop.permute.xlu0 %3574  ;;  %v3540_v21 = vsel %vm3451_vm4, %v3538_v56, 0.0  ;;  %v3611_v49 = vsel %vm3451_vm4, %v3609_v1, 0.0 }
0x1419   :  { %v3580_v42 = vsel %vm3451_vm4, %v3575_v40, 0.0  ;;  %v3539_v9 = vsel %vm3451_vm4, %v3537_v57, 0.0  ;;  %v3610_v13 = vsel %vm3451_vm4, %v3608_v63, 0.0 }
0x141a   :  { %v3541_v15 = vadd.f32 %v3540_v21, %v3539_v9  ;;  %v3582_v54 = vadd.f32 %v3581_v50, %v3580_v42  ;;  %v3612_v7 = vadd.f32 %v3611_v49, %v3610_v13 }
0x141b   :  { %v3631_v44 = vpop.permute.xlu1 %3630 }
0x141c   :  { %v3635_v58 = vsel %vm3451_vm4, %v3631_v44, 0.0  ;;  %v3629_v51 = vpop.permute.xlu0 %3628  ;;  %3542 = vadd.xlane.f32.xlu1 %v3541_v15  ;;  %3583 = vadd.xlane.f32.xlu0 %v3582_v54 }
0x141d   :  { %v3634_v46 = vsel %vm3451_vm4, %v3629_v51, 0.0 }
0x141e   :  { %v3636_v55 = vadd.f32 %v3635_v58, %v3634_v46 }
0x1420   :  { %3613 = vadd.xlane.f32.xlu0 %v3612_v7  ;;  %3637 = vadd.xlane.f32.xlu1 %v3636_v55 }
0x1456   :  { %v3456_v22 = vpop.xlane.xlu0 %3455 }
0x1457   :  { %v3457_v14 = vrot.slane %v3456_v22, 4 }
0x1459   :  { %v3458_v39 = vadd.f32 %v3457_v14, %v3456_v22 }
0x145b   :  { %v3459_v45 = vrot.slane %v3458_v39, 2 }
0x145d   :  { %v3460_v2 = vadd.f32 %v3459_v45, %v3458_v39 }
0x145f   :  { %v3461_v61 = vrot.slane %v3460_v2, 1 }
0x1461   :  { %v3462_v5 = vadd.f32 %v3461_v61, %v3460_v2 }
0x1463   :  { %5061 = vpush %v3462_v5 }
0x1494   :  { %s5062_s4 = spop %5061 }
0x1495   :  { %v3464_v25 = vstv %s5062_s4 }
0x1496   :  { %v3465_v27 = vmax.f32 %v3464_v25, 1.0 }
0x1498   :  { %5194 = vrcp.f32 %v3465_v27 }
0x14a2   :  { %v5195_v26 = vpop.eup %5194 }
0x14a9   :  { %v3584_v8 = vpop.xlane.xlu0 %3583  ;;  %v3543_v23 = vpop.xlane.xlu1 %3542 }
0x14aa   :  { %v3585_v6 = vrot.slane %v3584_v8, 4  ;;  %v3544_v0 = vrot.slane %v3543_v23, 4 }
0x14ac   :  { %v3586_v11 = vadd.f32 %v3585_v6, %v3584_v8  ;;  %v3545_v19 = vadd.f32 %v3544_v0, %v3543_v23 }
0x14ad   :  { %v3614_v12 = vpop.xlane.xlu0 %3613  ;;  %v3638_v17 = vpop.xlane.xlu1 %3637 }
0x14ae   :  { %v3587_v10 = vrot.slane %v3586_v11, 2  ;;  %v3546_v41 = vrot.slane %v3545_v19, 2  ;;  %v3615_v24 = vrot.slane %v3614_v12, 4  ;;  %v3639_v18 = vrot.slane %v3638_v17, 4 }
0x14b0   :  { %v3616_v28 = vadd.f32 %v3615_v24, %v3614_v12  ;;  %v3640_v29 = vadd.f32 %v3639_v18, %v3638_v17  ;;  %v3547_v20 = vadd.f32 %v3546_v41, %v3545_v19  ;;  %v3588_v30 = vadd.f32 %v3587_v10, %v3586_v11 }
0x14b2   :  { %v3617_v31 = vrot.slane %v3616_v28, 2  ;;  %v3641_v59 = vrot.slane %v3640_v29, 2  ;;  %v3548_v53 = vrot.slane %v3547_v20, 1  ;;  %v3589_v36 = vrot.slane %v3588_v30, 1 }
0x14b4   :  { %v3618_v16 = vadd.f32 %v3617_v31, %v3616_v28  ;;  %v3642_v32 = vadd.f32 %v3641_v59, %v3640_v29  ;;  %v3549_v3 = vadd.f32 %v3548_v53, %v3547_v20  ;;  %v3590_v33 = vadd.f32 %v3589_v36, %v3588_v30 }
0x14b6   :  { %5063 = vpush %v3549_v3  ;;  %v3619_v34 = vrot.slane %v3618_v16, 1  ;;  %v3643_v35 = vrot.slane %v3642_v32, 1 }
0x14b7   :  { %5065 = vpush %v3590_v33 }
0x14b8   :  { %v3620_v37 = vadd.f32 %v3619_v34, %v3618_v16  ;;  %v3644_v4 = vadd.f32 %v3643_v35, %v3642_v32 }
0x14ba   :  { %5067 = vpush %v3620_v37 }
0x14bb   :  { %5069 = vpush %v3644_v4 }
0x14e7   :  { %s5064_s16 = spop %5063 }
0x14e8   :  { %v3551_v62 = vstv %s5064_s16  ;;  %s5066_s0 = spop %5065 }
0x14e9   :  { %v3592_v38 = vstv %s5066_s0  ;;  %v3553_v43 = vmul.f32 %v5195_v26, %v3551_v62 }
0x14ea   :  { %v3593_v47 = vmul.f32 %v5195_v26, %v3592_v38 }
0x14eb   :  { %s5068_s30 = spop %5067 }
0x14ec   :  { %v3622_v52 = vstv %s5068_s30  ;;  %s5070_s7 = spop %5069  ;;  %v3648_v57 = vsel %vm3451_vm4, %v3553_v43, %v3593_v47 }
0x14ed   :  { %v3623_v48 = vmul.f32 %v5195_v26, %v3622_v52  ;;  %v3646_v56 = vstv %s5070_s7 }
0x14ee   :  { %v3647_v60 = vmul.f32 %v5195_v26, %v3646_v56 }
0x14ef   :  { %v3650_v63 = vsel %vm3649_vm5, %v3648_v57, %v3623_v48 }
0x14f0   :  { %v3652_v1 = vsel %vm3651_vm6, %v3650_v63, %v3647_v60 }
0x14f1   :  { %v3653_v50 = vsel %vm2497_vm2, %v3652_v1, %v3465_v27 }
0x14f2   :  { %v3655_v40 = vsel %vm3654_vm7, %v3653_v50, 0.0 }
0x14f3   :  { %3656 = vst [vmem:[%s6498_s6] sm:$0x1] %v3655_v40 }

</bundles_post_ra>
